<compile_context>
chip_gen: v6e
topology: v6e:2x2x1
jax: 0.10.0
libtpu: 0.0.40
codegen_flags: <defaults>
</compile_context>

<pallas_src>
import jax
import jax.numpy as jnp
from jax.experimental import pallas as pl
from jax.experimental.pallas import tpu as pltpu


def _round_up(v, m):
    return ((v + m - 1) // m) * m


def pool_logsoftmax_kernel(parts_ref, o_ref):
    # parts_ref: [n_row_tiles, G, F] partial mean-pools; sum + log_softmax.
    pooled = jnp.sum(parts_ref[...], axis=0)                       # [G, F]
    m = jnp.max(pooled, axis=-1, keepdims=True)
    z = pooled - m
    lse = jnp.log(jnp.sum(jnp.exp(z), axis=-1, keepdims=True))
    o_ref[...] = z - lse


def gin_forward(x, edge_index, batch, params, num_graphs, *, tile=None):
    """Build padded A / y / P in HBM, then run the tiled fused kernel."""
    eps, w1, b1, w2, b2 = params
    n = x.shape[0]
    f_hid = w1.shape[0]
    f_out = w2.shape[0]

    # ---- tile selection -----------------------------------------------------
    # >=512 per side keeps the bf16 A stream near the HBM roofline; cap so
    # double-buffered tiles stay well under v7x's 64 MiB VMEM (v5e/v6e: 128 MiB).
    if tile is None:
        tile = min(512, _round_up(n, 128))
    n_pad = _round_up(n, tile)
    n_tiles = n_pad // tile
    assert n_pad % tile == 0

    src, dst = edge_index[0], edge_index[1]

    # A[i, j] = multiplicity of edge j -> i (PyG flow source_to_target).
    # Built directly in bf16 -- exact while per-entry counts / degrees <= 256.
    adj = jnp.zeros((n_pad, n_pad), jnp.bfloat16)
    adj = adj.at[dst, src].add(jnp.ones(src.shape, jnp.bfloat16))

    # y = x @ W1^T (PyTorch Linear is x @ W^T + b), computed once in f32 then
    # stored bf16 so the main matmul runs on the native bf16 MXU path.
    y_f32 = jnp.zeros((n_pad, f_hid), jnp.float32).at[:n].set(
        x.astype(jnp.float32) @ w1.T.astype(jnp.float32))
    y = y_f32.astype(jnp.bfloat16)

    # Mean-pool matrix P [G, n_pad]; padded nodes get weight 0, rows sum to 1.
    # Guard zero-node graphs against divide-by-zero.
    onehot = jax.nn.one_hot(batch, num_graphs, dtype=jnp.float32)   # [n, G]
    counts = jnp.maximum(jnp.sum(onehot, axis=0), 1.0)              # [G]
    pool = jnp.zeros((num_graphs, n_pad), jnp.float32)
    pool = pool.at[:, :n].set((onehot / counts[None, :]).T)

    b1_2d = b1[None, :].astype(jnp.float32)                         # [1, 16]
    w2_t = w2.T.astype(jnp.float32)                                 # [16, 4]
    b2_2d = b2[None, :].astype(jnp.float32)                         # [1, 4]

    eps_scale = 1.0 + float(eps)   # static here; see TODO(synk) above.

    def gin_tile_kernel(a_ref, y_ref, b1_ref, w2t_ref, b2_ref, p_ref,
                        o_ref, acc_ref):
        i = pl.program_id(0)          # row-tile index (nodes), "parallel"
        k = pl.program_id(1)          # reduction-tile index, innermost
        nk = pl.num_programs(1)

        # Zero the per-row-tile accumulator at the start of each reduction.
        @pl.when(k == 0)
        def _():
            acc_ref[...] = jnp.zeros_like(acc_ref)

        # acc[tile, 16] += A[tile, tile] @ y[k-slice]   (bf16 x bf16 -> f32 MXU)
        yk = y_ref[pl.ds(pl.multiple_of(k * tile, tile), tile), :]
        acc_ref[...] += jnp.dot(a_ref[...], yk,
                                preferred_element_type=jnp.float32)

        # Finalize this row tile: self term + bias + ReLU + Lin2 + ReLU, then
        # emit its partial mean-pool block (distinct per i -> megacore safe).
        @pl.when(k == nk - 1)
        def _():
            yi = y_ref[pl.ds(pl.multiple_of(i * tile, tile), tile), :]
            h = acc_ref[...] + eps_scale * yi.astype(jnp.float32) + b1_ref[...]
            h = jnp.maximum(h, 0.0)                                  # [tile, 16]
            h = jnp.dot(h, w2t_ref[...],
                        preferred_element_type=jnp.float32) + b2_ref[...]
            h = jnp.maximum(h, 0.0)                                  # [tile, 4]
            o_ref[0] = jnp.dot(p_ref[...], h,
                               preferred_element_type=jnp.float32)   # [G, 4]

    # ---- VMEM budget / compiler params --------------------------------------
    vmem_est = (2 * tile * tile * 2            # double-buffered bf16 A tile
                + 2 * n_pad * f_hid * 2        # resident y (conservative x2)
                + 2 * num_graphs * tile * 4    # P row block (double-buffered)
                + tile * f_hid * 4             # f32 accumulator scratch
                + 256 * 1024)                  # small operands / outputs / slack
    # >= 32 MiB (above v5e's 16 MiB default scoped VMEM), <= 56 MiB (headroom
    # under v7x's 64 MiB physical VMEM).
    vmem_limit = int(min(max(2 * vmem_est, 32 * 1024 * 1024), 56 * 1024 * 1024))

    flops = (2 * n_pad * n_pad * f_hid          # A @ y
             + 4 * n_pad * f_hid                # self term + bias + ReLU
             + 2 * n_pad * f_hid * f_out        # h @ W2^T
             + 2 * num_graphs * n_pad * f_out)  # P @ h
    bytes_accessed = (n_pad * n_pad * 2         # A, streamed once (bf16)
                      + n_pad * f_hid * 2       # y, resident (fetched once)
                      + num_graphs * n_pad * 4  # P, each column block once
                      + n_tiles * num_graphs * f_out * 4)

    partial_pools = pl.pallas_call(
        gin_tile_kernel,
        out_shape=jax.ShapeDtypeStruct((n_tiles, num_graphs, f_out), jnp.float32),
        grid_spec=pltpu.PrefetchScalarGridSpec(
            num_scalar_prefetch=0,
            grid=(n_tiles, n_tiles),
            in_specs=[
                # A tiles; add pipeline_mode=pl.Buffered(3) if profiling still
                # shows exposed DMA after the tile-size bump.
                pl.BlockSpec((tile, tile), lambda i, k: (i, k)),        # A (bf16)
                pl.BlockSpec((n_pad, f_hid), lambda i, k: (0, 0)),      # y resident (bf16)
                pl.BlockSpec((1, f_hid), lambda i, k: (0, 0)),          # b1
                pl.BlockSpec((f_hid, f_out), lambda i, k: (0, 0)),      # W2^T
                pl.BlockSpec((1, f_out), lambda i, k: (0, 0)),          # b2
                pl.BlockSpec((num_graphs, tile), lambda i, k: (0, i)),  # P
            ],
            out_specs=pl.BlockSpec((1, num_graphs, f_out),
                                   lambda i, k: (i, 0, 0)),
            scratch_shapes=[pltpu.VMEM((tile, f_hid), jnp.float32)],
        ),
        compiler_params=pltpu.CompilerParams(
            # Row-tile axis writes distinct output blocks -> megacore parallel
            # (2x on v7x); the reduction axis carries the accumulator.
            dimension_semantics=("parallel", "arbitrary"),
            vmem_limit_bytes=vmem_limit,
        ),
        cost_estimate=pl.CostEstimate(
            flops=int(flops),
            transcendentals=0,
            bytes_accessed=int(bytes_accessed),
        ),
    )(adj, y, b1_2d, w2_t, b2_2d, pool)

    # Tiny finalize: sum partial pools over row tiles + log_softmax.
    out = pl.pallas_call(
        pool_logsoftmax_kernel,
        out_shape=jax.ShapeDtypeStruct((num_graphs, f_out), jnp.float32),
    )(partial_pools)
    return out


def reference_forward(x, edge_index, batch, params, num_graphs):
    """Pure-JAX f32 reference (matches the PyTorch module)."""
    eps, w1, b1, w2, b2 = params
    src, dst = edge_index[0], edge_index[1]
    agg = jnp.zeros_like(x).at[dst].add(x[src])
    h = (1.0 + eps) * x + agg
    h = jnp.maximum(h @ w1.T + b1, 0.0)
    h = h @ w2.T + b2
    h = jnp.maximum(h, 0.0)
    onehot = jax.nn.one_hot(batch, num_graphs, dtype=jnp.float32)
    pooled = (onehot.T @ h) / jnp.sum(onehot, axis=0)[:, None]
    return jax.nn.log_softmax(pooled, axis=1)


def _ring_edges(offset, m):
    idx = jnp.arange(m, dtype=jnp.int32)
    nxt = (idx + 1) % m
    src = jnp.concatenate([idx, nxt]) + offset
    dst = jnp.concatenate([nxt, idx]) + offset
    return src, dst


if __name__ == "__main__":
    key = jax.random.PRNGKey(0)
    k1, k2, k3, k4, k5 = jax.random.split(key, 5)

    # 2 graphs, each a 600-node bidirectional ring, 4 features per node.
    # Padded N = 1536 with 512x512 tiles -> a 3x3 grid, so the tiled reduction
    # and per-row-tile partial-pool path are actually exercised.
    NODES_PER_GRAPH, NUM_GRAPHS, F_IN, F_HID = 600, 2, 4, 16
    N = NODES_PER_GRAPH * NUM_GRAPHS

    x = jax.random.normal(k1, (N, F_IN), dtype=jnp.float32)

    srcs, dsts = [], []
    for g in range(NUM_GRAPHS):
        s, d = _ring_edges(g * NODES_PER_GRAPH, NODES_PER_GRAPH)
        srcs.append(s)
        dsts.append(d)
    edge_index = jnp.stack([jnp.concatenate(srcs), jnp.concatenate(dsts)], axis=0)
    batch = jnp.repeat(jnp.arange(NUM_GRAPHS, dtype=jnp.int32), NODES_PER_GRAPH)

    # Parameters: Seq(Lin(4,16), ReLU, Lin(16,4)), eps learnable, init 0.
    w1 = jax.random.normal(k2, (F_HID, F_IN), dtype=jnp.float32) * 0.2
    b1 = jax.random.normal(k3, (F_HID,), dtype=jnp.float32) * 0.1
    w2 = jax.random.normal(k4, (F_IN, F_HID), dtype=jnp.float32) * 0.2
    b2 = jax.random.normal(k5, (F_IN,), dtype=jnp.float32) * 0.1
    eps = 0.0
    params = (eps, w1, b1, w2, b2)

    out = gin_forward(x, edge_index, batch, params, NUM_GRAPHS, tile=512)
    out = jax.block_until_ready(out)

    ref = reference_forward(x, edge_index, batch, params, NUM_GRAPHS)
    assert out.shape == (NUM_GRAPHS, F_IN)
    # y (= x W1^T) is fed to the MXU in bf16, so tolerance is relaxed vs f32.
    assert jnp.allclose(out, ref, atol=5e-3, rtol=5e-3), (out, ref)

    print("KERNEL_OK")
</pallas_src>

<mosaic_0001>
module attributes {stable_mosaic.version = 11 : i64} {
  func.func @gin_tile_kernel(%arg0: i32, %arg1: i32, %arg2: memref<512x512xbf16, #tpu.memory_space<vmem>>, %arg3: memref<1536x16xbf16, #tpu.memory_space<vmem>>, %arg4: memref<1x16xf32, #tpu.memory_space<vmem>>, %arg5: memref<16x4xf32, #tpu.memory_space<vmem>>, %arg6: memref<1x4xf32, #tpu.memory_space<vmem>>, %arg7: memref<2x512xf32, #tpu.memory_space<vmem>>, %arg8: memref<1x2x4xf32, #tpu.memory_space<vmem>>, %arg9: memref<512x16xf32, #tpu.memory_space<vmem>>) attributes {dimension_semantics = [#tpu.dimension_semantics<parallel>, #tpu.dimension_semantics<arbitrary>], iteration_bounds = array<i64: 3, 3>, scalar_prefetch = 0 : i64, scratch_operands = 1 : i64, tpu.core_type = #tpu.core_type<tc>, window_params = [{transform_indices = @transform_0, window_bounds = array<i64: 512, 512>}, {pipeline_mode = #tpu.pipeline_mode<synchronous>, transform_indices = @transform_1, window_bounds = array<i64: 1536, 16>}, {pipeline_mode = #tpu.pipeline_mode<synchronous>, transform_indices = @transform_2, window_bounds = array<i64: 1, 16>}, {pipeline_mode = #tpu.pipeline_mode<synchronous>, transform_indices = @transform_3, window_bounds = array<i64: 16, 4>}, {pipeline_mode = #tpu.pipeline_mode<synchronous>, transform_indices = @transform_4, window_bounds = array<i64: 1, 4>}, {transform_indices = @transform_5, window_bounds = array<i64: 2, 512>}, {transform_indices = @transform_6, window_bounds = array<i64: 1, 2, 4>}]} {
    %c0_i32 = arith.constant 0 : i32
    %0 = arith.cmpi eq, %arg1, %c0_i32 : i32
    %1 = arith.extui %0 : i1 to i32
    %c0_i32_0 = arith.constant 0 : i32
    %2 = arith.cmpi ne, %1, %c0_i32_0 : i32
    scf.if %2 {
      %cst_8 = arith.constant 0.000000e+00 : f32
      %15 = vector.broadcast %cst_8 : f32 to vector<512x16xf32>
      %c0_9 = arith.constant 0 : index
      %c0_10 = arith.constant 0 : index
      %16 = vector.load %arg9[%c0_9, %c0_10] : memref<512x16xf32, #tpu.memory_space<vmem>>, vector<512x16xf32>
      tpu.vector_store %arg9[%c0_9, %c0_10], %15 {strides = array<i32>} : memref<512x16xf32, #tpu.memory_space<vmem>>, vector<512x16xf32>,
    } else {
    }
    %c512_i32 = arith.constant 512 : i32
    %3 = arith.muli %arg1, %c512_i32 : i32
    %4 = tpu.assume_multiple %3, 512 : i32
    %5 = arith.index_cast %4 : i32 to index
    %c0 = arith.constant 0 : index
    %6 = vector.load %arg3[%5, %c0] : memref<1536x16xbf16, #tpu.memory_space<vmem>>, vector<512x16xbf16>
    %c0_1 = arith.constant 0 : index
    %c0_2 = arith.constant 0 : index
    %7 = vector.load %arg9[%c0_1, %c0_2] : memref<512x16xf32, #tpu.memory_space<vmem>>, vector<512x16xf32>
    %c0_3 = arith.constant 0 : index
    %c0_4 = arith.constant 0 : index
    %8 = vector.load %arg2[%c0_3, %c0_4] : memref<512x512xbf16, #tpu.memory_space<vmem>>, vector<512x512xbf16>
    %cst = arith.constant dense<0.000000e+00> : vector<512x16xf32>
    %9 = tpu.matmul %8, %6, %cst {dimension_numbers = #tpu.dot_dimension_numbers<[1], [0], [0], [1], [0, 0, 1, 1], [], []>} : vector<512x512xbf16>, vector<512x16xbf16>, vector<512x16xf32> -> vector<512x16xf32>
    %10 = arith.addf %7, %9 : vector<512x16xf32>
    %c0_5 = arith.constant 0 : index
    %c0_6 = arith.constant 0 : index
    %11 = vector.load %arg9[%c0_5, %c0_6] : memref<512x16xf32, #tpu.memory_space<vmem>>, vector<512x16xf32>
    tpu.vector_store %arg9[%c0_5, %c0_6], %10 {strides = array<i32>} : memref<512x16xf32, #tpu.memory_space<vmem>>, vector<512x16xf32>,
    %c2_i32 = arith.constant 2 : i32
    %12 = arith.cmpi eq, %arg1, %c2_i32 : i32
    %13 = arith.extui %12 : i1 to i32
    %c0_i32_7 = arith.constant 0 : i32
    %14 = arith.cmpi ne, %13, %c0_i32_7 : i32
    scf.if %14 {
      %c512_i32_8 = arith.constant 512 : i32
      %15 = arith.muli %arg0, %c512_i32_8 : i32
      %16 = tpu.assume_multiple %15, 512 : i32
      %17 = arith.index_cast %16 : i32 to index
      %c0_9 = arith.constant 0 : index
      %18 = vector.load %arg3[%17, %c0_9] : memref<1536x16xbf16, #tpu.memory_space<vmem>>, vector<512x16xbf16>
      %c0_10 = arith.constant 0 : index
      %c0_11 = arith.constant 0 : index
      %19 = vector.load %arg9[%c0_10, %c0_11] : memref<512x16xf32, #tpu.memory_space<vmem>>, vector<512x16xf32>
      %20 = arith.extf %18 : vector<512x16xbf16> to vector<512x16xf32>
      %cst_12 = arith.constant 1.000000e+00 : f32
      %21 = vector.broadcast %cst_12 : f32 to vector<512x16xf32>
      %22 = arith.mulf %21, %20 : vector<512x16xf32>
      %23 = arith.addf %19, %22 : vector<512x16xf32>
      %c0_13 = arith.constant 0 : index
      %c0_14 = arith.constant 0 : index
      %24 = vector.load %arg4[%c0_13, %c0_14] : memref<1x16xf32, #tpu.memory_space<vmem>>, vector<1x16xf32>
      %25 = vector.broadcast %24 : vector<1x16xf32> to vector<512x16xf32>
      %26 = arith.addf %23, %25 : vector<512x16xf32>
      %cst_15 = arith.constant 0.000000e+00 : f32
      %27 = vector.broadcast %cst_15 : f32 to vector<512x16xf32>
      %28 = arith.maximumf %26, %27 : vector<512x16xf32>
      %c0_16 = arith.constant 0 : index
      %c0_17 = arith.constant 0 : index
      %29 = vector.load %arg5[%c0_16, %c0_17] : memref<16x4xf32, #tpu.memory_space<vmem>>, vector<16x4xf32>
      %cst_18 = arith.constant dense<0.000000e+00> : vector<512x4xf32>
      %30 = tpu.matmul %28, %29, %cst_18 {dimension_numbers = #tpu.dot_dimension_numbers<[1], [0], [0], [1], [0, 0, 1, 1], [], []>} : vector<512x16xf32>, vector<16x4xf32>, vector<512x4xf32> -> vector<512x4xf32>
      %c0_19 = arith.constant 0 : index
      %c0_20 = arith.constant 0 : index
      %31 = vector.load %arg6[%c0_19, %c0_20] : memref<1x4xf32, #tpu.memory_space<vmem>>, vector<1x4xf32>
      %32 = vector.broadcast %31 : vector<1x4xf32> to vector<512x4xf32>
      %33 = arith.addf %30, %32 : vector<512x4xf32>
      %cst_21 = arith.constant 0.000000e+00 : f32
      %34 = vector.broadcast %cst_21 : f32 to vector<512x4xf32>
      %35 = arith.maximumf %33, %34 : vector<512x4xf32>
      %c0_22 = arith.constant 0 : index
      %c0_23 = arith.constant 0 : index
      %36 = vector.load %arg7[%c0_22, %c0_23] : memref<2x512xf32, #tpu.memory_space<vmem>>, vector<2x512xf32>
      %cst_24 = arith.constant dense<0.000000e+00> : vector<2x4xf32>
      %37 = tpu.matmul %36, %35, %cst_24 {dimension_numbers = #tpu.dot_dimension_numbers<[1], [0], [0], [1], [0, 0, 1, 1], [], []>} : vector<2x512xf32>, vector<512x4xf32>, vector<2x4xf32> -> vector<2x4xf32>
      %c0_25 = arith.constant 0 : index
      %c0_26 = arith.constant 0 : index
      %c0_27 = arith.constant 0 : index
      %38 = vector.load %arg8[%c0_25, %c0_26, %c0_27] : memref<1x2x4xf32, #tpu.memory_space<vmem>>, vector<1x2x4xf32>
      %39 = vector.shape_cast %38 : vector<1x2x4xf32> to vector<2x4xf32>
      %40 = vector.shape_cast %37 : vector<2x4xf32> to vector<1x2x4xf32>
      tpu.vector_store %arg8[%c0_25, %c0_26, %c0_27], %40 {strides = array<i32>} : memref<1x2x4xf32, #tpu.memory_space<vmem>>, vector<1x2x4xf32>,
    } else {
    }
    return
  }
  func.func @transform_0(%arg0: i32, %arg1: i32) -> (i32, i32) {
    %c0_i32 = arith.constant 0 : i32
    return %arg0, %arg1 : i32, i32
  }
  func.func @transform_1(%arg0: i32, %arg1: i32) -> (i32, i32) {
    %c0_i32 = arith.constant 0 : i32
    %c0_i32_0 = arith.constant 0 : i32
    %c0_i32_1 = arith.constant 0 : i32
    return %c0_i32, %c0_i32_0 : i32, i32
  }
  func.func @transform_2(%arg0: i32, %arg1: i32) -> (i32, i32) {
    %c0_i32 = arith.constant 0 : i32
    %c0_i32_0 = arith.constant 0 : i32
    %c0_i32_1 = arith.constant 0 : i32
    return %c0_i32, %c0_i32_0 : i32, i32
  }
  func.func @transform_3(%arg0: i32, %arg1: i32) -> (i32, i32) {
    %c0_i32 = arith.constant 0 : i32
    %c0_i32_0 = arith.constant 0 : i32
    %c0_i32_1 = arith.constant 0 : i32
    return %c0_i32, %c0_i32_0 : i32, i32
  }
  func.func @transform_4(%arg0: i32, %arg1: i32) -> (i32, i32) {
    %c0_i32 = arith.constant 0 : i32
    %c0_i32_0 = arith.constant 0 : i32
    %c0_i32_1 = arith.constant 0 : i32
    return %c0_i32, %c0_i32_0 : i32, i32
  }
  func.func @transform_5(%arg0: i32, %arg1: i32) -> (i32, i32) {
    %c0_i32 = arith.constant 0 : i32
    %c0_i32_0 = arith.constant 0 : i32
    return %c0_i32, %arg0 : i32, i32
  }
  func.func @transform_6(%arg0: i32, %arg1: i32) -> (i32, i32, i32) {
    %c0_i32 = arith.constant 0 : i32
    %c0_i32_0 = arith.constant 0 : i32
    %c0_i32_1 = arith.constant 0 : i32
    return %arg0, %c0_i32, %c0_i32_0 : i32, i32, i32
  }
}

</mosaic_0001>

<bundles_post_ra>
// kernel: tpu_custom_call.1
= control target key start
LH: loop header
LB: loop body
LE: loop exit
PB: predicated region body
PF: predicated region fallthrough
CT: control target
= control target key end

     0   :  { %s6060_s0 = inlined_call_operand.hbm [shape: bf16[1536,1536], index: 0, kind: input, shape index: {}]   ;;  %s6061_s1 = inlined_call_operand.vmem [shape: bf16[1536,16], index: 1, kind: input, shape index: {}]   ;;  %s6062_s2 = inlined_call_operand.hbm [shape: f32[1,16], index: 2, kind: input, shape index: {}]   ;;  %s6063_s3 = inlined_call_operand.vmem [shape: f32[16,4], index: 3, kind: input, shape index: {}]   ;;  %s6064_s4 = inlined_call_operand.hbm [shape: f32[1,4], index: 4, kind: input, shape index: {}]   ;;  %s6065_s5 = inlined_call_operand.hbm [shape: f32[2,1536], index: 5, kind: input, shape index: {}]   ;;  %s6066_s6 = inlined_call_operand.hbm [shape: f32[3,2,4], index: 6, kind: output, shape index: {}]  }
   0x1   :  { %6076 = sst [smem:[#allocation21_spill]] %s6060_s0 }
   0x2   :  { %6077 = sst [smem:[#allocation22_spill]] %s6061_s1 }
   0x3   :  { %6078 = sst [smem:[#allocation23_spill]] %s6062_s2 }
   0x4   :  { %6079 = sst [smem:[#allocation24_spill]] %s6063_s3 }
   0x5   :  { %6080 = sst [smem:[#allocation25_spill]] %s6064_s4 }
   0x6   :  { %6081 = sst [smem:[#allocation26_spill]] %s6066_s6 }
   0x7   :  { %11 = vsyncpa [#allocation4], 0 }
   0x8   :  { %13 = vsyncpa [#allocation4 + $0x1], 0 }
   0x9   :  { %14 = vsyncpa [#allocation7], 0 }
   0xa   :  { %15 = vsyncpa [#allocation10], 0 }
   0xb   :  { %17 = vsyncpa [#allocation10 + $0x1], 0 }
   0xc   :  { %18 = vsyncpa [#allocation5], 0 }
   0xd   :  { %20 = vsyncpa [#allocation5 + $0x1], 0  ;;  %s4878_s21 = smov 0   ;;  %s4880_s22 = smov 0  }
   0xe   :  { %s4882_s23 = smov 0   ;;  %s4884_s24 = smov 0  }
   0xf   :  { %s4886_s25 = smov 0   ;;  %s4888_s26 = smov 0  }
  0x10   :  { %s4890_s27 = smov 0   ;;  %s4892_s28 = smov 0  }
  0x11   :  { %s4894_s29 = smov 0   ;;  %s4896_s30 = smov 0  }
  0x12   :  { %s4898_s7 = smov 0  }
  0x13 LB: > { %6082 = sst [smem:[#allocation16_spill]] %s4790_s21  ;;  %s3582_s8 = sadd.s32 4294967295, %s4830_s7   ;;  %s4830_s7 = sphi %s4898_s7, %s26_s7   ;;  %s4826_s30 = sphi %s4896_s30, %s6127_s30   ;;  %s4822_s29 = sphi %s4894_s29, %s6126_s29   ;;  %s4818_s28 = sphi %s4892_s28, %s6125_s28   ;;  %s4814_s27 = sphi %s4890_s27, %s6124_s27   ;;  %s4810_s26 = sphi %s4888_s26, %s6123_s26   ;;  %s4806_s25 = sphi %s4886_s25, %s6122_s25   ;;  %s4802_s24 = sphi %s4884_s24, %s6121_s24   ;;  %s4798_s23 = sphi %s4882_s23, %s6120_s23   ;;  %s4794_s22 = sphi %s4880_s22, %s6119_s22   ;;  %s4790_s21 = sphi %s4878_s21, %s6118_s21  }
  0x14   : > { %6083 = sst [smem:[#allocation17_spill]] %s4814_s27  ;;  %p60_p0 = scmp.ne.s32.totalorder %s4806_s25, %s4802_s24 }
  0x15   : > { %6084 = sst [smem:[#allocation18_spill]] %s4818_s28  ;;  %p4933_p1 = scmp.eq.s32.totalorder %s3582_s8, 0 }
  0x16   : > { %p4937_p2 = scmp.eq.s32.totalorder %s3582_s8, 8  ;;  %p3584_p3 = scmp.ge.s32.totalorder %s4830_s7, 1 }
  0x17   : > { %p207_p4 = scmp.lt.s32.totalorder %s4830_s7, 10  ;;  %p4945_p5 = por %p4933_p1, %p60_p0 }
  0x18   : > { %s6086_s10 = scalar_select %p4937_p2, 1, 0 }
  0x19   : > { %s6087_s11 = scalar_select %p4945_p5, 1, 0 }
  0x1a   : > { %p4949_p6 = pnand %p3584_p3, %p207_p4  ;;  %s4832_s13 = smov [#allocation6]  }
  0x1b   : > { %s223_s14 = sshll.u32 %s4832_s13, 4  ;;  %s4833_s16 = smov [#allocation8]   ;;  %s224_s14 = int_to_ptr.vmem [resolvable:$true] %s223_s14 }
  0x1c   : > { %s6088_s12 = scalar_select %p4949_p6, 1, 0 }
  0x1d   : > { %p4253_p7 = pneg %p4949_p6  ;;  %s237_s17 = sshll.u32 %s4833_s16, 4  ;;  %s238_s17 = int_to_ptr.vmem [resolvable:$true] %s237_s17 }
  0x1e   : > { %s4605_s18 = scalar_lea.vmem %s224_s14, 16  ;;  %s4612_s19 = scalar_lea.vmem %s224_s14, 32 }
  0x1f   : > { %p4957_p8 = pnand %p4253_p7, %p4933_p1  ;;  %p4606_p10 = scmp.ne.s32.totalorder %s224_s14, %s4605_s18 }
  0x20   : > { %p4613_p13 = scmp.lt.s32.totalorder %s224_s14, %s224_s14  ;;  %p4614_p0 = scmp.lt.s32.totalorder %s4612_s19, %s4605_s18 }
  0x21   : > { %p4596_p9 = pneg %p4957_p8 }
  0x22   : > { %p4615_p3 = por %p4614_p0, %p4613_p13 }
  0x23   : > { %p4608_p11 = pnand %p4606_p10, %p4596_p9 }
  0x25   : > { %p4609_p12 = pneg %p4608_p11 }
  0x27   : > { %p4616_p4 = pnand %p4615_p3, %p4609_p12 }
  0x29   : > { %4619 = shalt.err (!%p4616_p4)
}
  0x2a   : > { %s6090_s2 = sld [smem:[#allocation23_spill]]  ;;  %s4631_s8 = scalar_lea.vmem %s238_s17, 16 }
  0x2b   : > { %p4632_p7 = scmp.ne.s32.totalorder %s238_s17, %s4631_s8  ;;  %s4638_s13 = scalar_lea.vmem %s238_s17, 32 }
  0x2c   : > { %p4639_p11 = scmp.lt.s32.totalorder %s238_s17, %s238_s17  ;;  %p4640_p6 = scmp.lt.s32.totalorder %s4638_s13, %s4631_s8 }
  0x2d   : > { %p4634_p5 = pnand %p4632_p7, %p4596_p9 }
  0x2e   : > { %p4641_p2 = por %p4640_p6, %p4639_p11 }
  0x2f   : > { %p4635_p10 = pneg %p4634_p5 }
  0x30   : > { %4256 = dma.hbm_to_vmem [thread:$0]  (!%p4957_p8), %s6090_s2, 16, %s224_s14, [#allocation7]  }
  0x31   : > { %p4642_p13 = pnand %p4641_p2, %p4635_p10 }
  0x33   : > { %4645 = shalt.err (!%p4642_p13)
}
  0x34   : > { %s6091_s4 = sld [smem:[#allocation25_spill]]  ;;  %s35_s14 = sadd.s32 1, %s4822_s29 }
  0x35   : > { %p4980_p2 = scmp.ge.s32.totalorder %s35_s14, 3  ;;  %p54_p5 = scmp.ne.s32.totalorder %s4810_s26, %s4806_s25 }
  0x36   : > { %p55_p6 = scmp.eq.s32.totalorder %s4830_s7, 0  ;;  %p4273_p12 = scmp.lt.s32.totalorder %s4830_s7, 9 }
  0x37   : > { %s6129_s14 = smov (%p4980_p2, %s35_s14), 0  ;;  %s248_s24 = sand.u32 1, %s4810_s26  }
  0x38   : > { %p56_p9 = por %p55_p6, %p54_p5  ;;  %s3590_s8 = sshll.u32 %s4822_s29, 2 }
  0x39   : > { %s4238_s13 = smul.u32 768, %s4826_s30  ;;  %s6094_s0 = sld [smem:[#allocation21_spill]] }
  0x3a   : > { %4259 = dma.hbm_to_vmem [thread:$0]  (!%p4957_p8), %s6091_s4, 16, %s238_s17, [#allocation7]  }
  0x3b   : > { %s3588_s17 = sshll.u32 %s248_s24, 10  ;;  %p5002_p8 = pnand %p4273_p12, %p56_p9 }
  0x3c   : > { %s252_s16 = scalar_lea.vmem [#allocation3], %s3588_s17  ;;  %s259_s2 = sadd.s32 %s4238_s13, %s3590_s8 }
  0x3d   : > { %s262_s18 = sshll.u32 %s252_s16, 4  ;;  %s3592_s4 = sshll.u32 %s259_s2, 6  ;;  %s263_s18 = int_to_ptr.vmem [resolvable:$true] %s262_s18 }
  0x3e   : > { %s249_s20 = scalar_lea.sflag [#allocation4], %s248_s24  ;;  %p4648_p0 = pneg %p5002_p8 }
  0x3f   : > { %s261_s3 = scalar_lea.hbm %s6094_s0, %s3592_s4  ;;  %s4659_s1 = scalar_lea.vmem %s263_s18, 16384 }
  0x40   : > { %p4660_p3 = scmp.ne.s32.totalorder %s263_s18, %s4659_s1  ;;  %s4834_s17 = smov [#allocation3]  }
  0x41   : > { %s4664_s16 = sshll.u32 %s4834_s17, 4  ;;  %s4665_s16 = int_to_ptr.vmem [resolvable:$false] %s4664_s16 }
  0x42   : > { %p4662_p4 = pnand %p4660_p3, %p4648_p0  ;;  %s4666_s27 = scalar_lea.vmem %s4665_s16, 32768 }
  0x43   : > { %p4667_p10 = scmp.lt.s32.totalorder %s263_s18, %s4665_s16  ;;  %p4668_p11 = scmp.lt.s32.totalorder %s4666_s27, %s4659_s1 }
  0x44   : > { %p4663_p7 = pneg %p4662_p4 }
  0x45   : > { %p4669_p13 = por %p4668_p11, %p4667_p10 }
  0x47   : > { %p4670_p5 = pnand %p4669_p13, %p4663_p7 }
  0x49   : > { %4673 = shalt.err (!%p4670_p5)
}
  0x4a   : > { %s4835_s2 = smov 768   ;;  %s4836_s4 = smov 256  }
  0x4b   : > { %s4837_s1 = smov 16   ;;  %s3583_s6 = sadd.s32 4294967294, %s4830_s7  }
  0x4c   : > { %4263 = dma.hbm_to_vmem [thread:$0]  (!%p5002_p8), %s261_s3, 16384, %s263_s18, %s249_s20, %s4835_s2, %s4836_s4, %s4837_s1  }
  0x4d   : > { %s38_s27 = sadd.s32 1, %s4826_s30  ;;  %s157_s28 = sadd.s32 1, %s4798_s23 }
  0x4e   : > { %s6131_s27 = smov (!%p4980_p2, %s38_s27), %s4826_s30  ;;  %p164_p9 = scmp.ne.s32.totalorder %s4798_s23, %s4794_s22 }
  0x4f   : > { %p170_p0 = scmp.ne.s32.totalorder %s4794_s22, %s4790_s21  ;;  %p40_p3 = scmp.ge.s32.totalorder %s6131_s27, 3 }
  0x50   : > { %p200_p4 = scmp.eq.s32.totalorder %s3583_s6, 8  ;;  %p5025_p7 = por %p164_p9, %p55_p6 }
  0x51   : > { %p5031_p8 = por %p170_p0, %p4933_p1  ;;  %s6133_s27 = smov (%p40_p3, %s6131_s27), 0 }
  0x52   : > { %6097 = sst [smem:[#allocation19_spill]] %s6133_s27  ;;  %p6098_p2 = scmp.ne.s32.totalorder %s6086_s10, 0 }
  0x53   : > { %p5043_p11 = por %p200_p4, %p170_p0  ;;  %s42_s24 = ssub.s32 %s4826_s30, %s6133_s27 }
  0x54   : > { %p5039_p10 = por %p6098_p2, %p164_p9  ;;  %s272_s8 = sand.u32 1, %s4798_s23  }
  0x55   : > { %s6102_s13 = ssub.s32 %s4822_s29, %s6129_s14  ;;  %p155_p6 = scmp.eq.s32.totalorder %s42_s24, 0 }
  0x56   : > { %s6099_s19 = scalar_select %p5039_p10, 1, 0 }
  0x57   : > { %s44_s18 = sor.u32 %s6102_s13, %s42_s24  ;;  %s6103_s16 = sadd.s32 1, %s4810_s26 }
  0x58   : > { %6100 = sst [smem:[#allocation20_spill]] %s6099_s19  ;;  %p45_p13 = scmp.eq.s32.totalorder %s44_s18, 0 }
  0x59   : > { %s5054_s17 = scalar_select %p155_p6, %s4798_s23, %s157_s28  }
  0x5a   : > { %s5059_s2 = scalar_select %p45_p13, %s4810_s26, %s6103_s16  }
  0x5b   : > { %s3593_s10 = sshll.u32 %s272_s8, 3  ;;  %s3838_s4 = sshll.u32 %s4826_s30, 7 }
  0x5c   : > { %s282_s0 = scalar_lea.hbm %s6065_s5, %s3838_s4  ;;  %s276_s21 = scalar_lea.vmem [#allocation9], %s3593_s10 }
  0x5d   : > { %s284_s19 = sshll.u32 %s276_s21, 4  ;;  %p5069_p5 = pnand %p4273_p12, %p5025_p7  ;;  %s285_s19 = int_to_ptr.vmem [resolvable:$true] %s284_s19 }
  0x5e   : > { %s273_s28 = scalar_lea.sflag [#allocation10], %s272_s8  ;;  %s4687_s24 = scalar_lea.vmem %s285_s19, 128 }
  0x5f   : > { %p4676_p9 = pneg %p5069_p5  ;;  %p4688_p0 = scmp.ne.s32.totalorder %s285_s19, %s4687_s24 }
  0x60   : > { %s4838_s13 = smov [#allocation9]  }
  0x61   : > { %p4690_p3 = pnand %p4688_p0, %p4676_p9  ;;  %s4692_s18 = sshll.u32 %s4838_s13, 4  ;;  %s4693_s18 = int_to_ptr.vmem [resolvable:$false] %s4692_s18 }
  0x62   : > { %s4694_s16 = scalar_lea.vmem %s4693_s18, 256  ;;  %p4695_p2 = scmp.lt.s32.totalorder %s285_s19, %s4693_s18 }
  0x63   : > { %p4691_p4 = pneg %p4690_p3  ;;  %p4696_p6 = scmp.lt.s32.totalorder %s4694_s16, %s4687_s24 }
  0x65   : > { %p4697_p13 = por %p4696_p6, %p4695_p2 }
  0x67   : > { %p4698_p12 = pnand %p4697_p13, %p4691_p4 }
  0x69   : > { %4701 = shalt.err (!%p4698_p12)
}
  0x6a   : > { %4266 = dma.hbm_to_vmem [thread:$0]  (!%p5069_p5), %s282_s0, 128, %s285_s19, %s273_s28  }
  0x6b   : > { %p6105_p7 = scmp.ne.s32.totalorder %s6088_s12, 0 }
  0x6c   : > { %s295_s21 = sand.u32 (!%p6105_p7), 1, %s4806_s25   ;;  %p6106_p9 = scmp.ne.s32.totalorder (!%p6105_p7), %s6087_s11, 0 }
  0x6d   : > { %293 = sbr.rel (%p6105_p7) target bundleno = 1249 (0x4e1), region = 44  ;;  %s3597_s15 = sshll.u32 (!%p6105_p7), %s295_s21, 10 }
  0x6e   : > { %s296_s8 = scalar_lea.sflag (!%p6105_p7), [#allocation4], %s295_s21  ;;  %s5080_s10 = scalar_lea.vmem (!%p6105_p7), [#allocation3], %s3597_s15 }
  0x72   : > { %4773 = dma.done.wait (%p6106_p9), %s296_s8, 16384  }
  0x73   : > { %4775 = vsyncadd (%p6106_p9), %s296_s8, 4294950912 }
  0x74   : > { %4777 = dma.done.wait (%p4933_p1), [#allocation7], 32  }
  0x75   : > { %4779 = vsyncadd (%p4933_p1), [#allocation7], 4294967264  ;;  %s5091_s0 = sand.u32 1, %s4794_s22  }
  0x76   : > { %s3600_s12 = sshll.u32 %s5091_s0, 3  ;;  %s313_s27 = scalar_lea.sflag [#allocation10], %s5091_s0 }
  0x77   : > { %s5095_s19 = scalar_lea.vmem [#allocation9], %s3600_s12 }
  0x78   : > { %4781 = dma.done.wait (%p5031_p8), %s313_s27, 128  }
  0x79   : > { %4783 = vsyncadd (%p5031_p8), %s313_s27, 4294967168  ;;  %s3601_s11 = sshll.u32 %s5091_s0, 1  ;;  %s6107_s9 = sld [smem:[#allocation17_spill]] }
  0x7a   : > { %s5102_s4 = scalar_lea.vmem [#allocation11], %s3601_s11 }
  0x7f   : > { %p3602_p1 = scmp.ne.s32.totalorder %s6107_s9, 0 }
  0x81   : > { %357 = sbr.rel (%p3602_p1) target bundleno = 167 (0xa7), region = 64 }
  0x86   : > { %vm358_vm0 = vcmask 130048   ;;  %v4839_v0 = vmov 0.0  }
  0x87   : > { %359 = vst.msk [vmem:[#allocation2] sm:$0xff] %vm358_vm0, %v4839_v0  ;;  %360 = vst.msk [vmem:[#allocation2 + $0x8] sm:$0xff] %vm358_vm0, %v4839_v0 }
  0x88   : > { %361 = vst.msk [vmem:[#allocation2 + $0x10] sm:$0xff] %vm358_vm0, %v4839_v0  ;;  %362 = vst.msk [vmem:[#allocation2 + $0x18] sm:$0xff] %vm358_vm0, %v4839_v0 }
  0x89   : > { %363 = vst.msk [vmem:[#allocation2 + $0x20] sm:$0xff] %vm358_vm0, %v4839_v0  ;;  %364 = vst.msk [vmem:[#allocation2 + $0x28] sm:$0xff] %vm358_vm0, %v4839_v0 }
  0x8a   : > { %365 = vst.msk [vmem:[#allocation2 + $0x30] sm:$0xff] %vm358_vm0, %v4839_v0  ;;  %366 = vst.msk [vmem:[#allocation2 + $0x38] sm:$0xff] %vm358_vm0, %v4839_v0 }
  0x8b   : > { %367 = vst.msk [vmem:[#allocation2 + $0x40] sm:$0xff] %vm358_vm0, %v4839_v0  ;;  %368 = vst.msk [vmem:[#allocation2 + $0x48] sm:$0xff] %vm358_vm0, %v4839_v0 }
  0x8c   : > { %369 = vst.msk [vmem:[#allocation2 + $0x50] sm:$0xff] %vm358_vm0, %v4839_v0  ;;  %370 = vst.msk [vmem:[#allocation2 + $0x58] sm:$0xff] %vm358_vm0, %v4839_v0 }
  0x8d   : > { %371 = vst.msk [vmem:[#allocation2 + $0x60] sm:$0xff] %vm358_vm0, %v4839_v0  ;;  %372 = vst.msk [vmem:[#allocation2 + $0x68] sm:$0xff] %vm358_vm0, %v4839_v0 }
  0x8e   : > { %373 = vst.msk [vmem:[#allocation2 + $0x70] sm:$0xff] %vm358_vm0, %v4839_v0  ;;  %374 = vst.msk [vmem:[#allocation2 + $0x78] sm:$0xff] %vm358_vm0, %v4839_v0 }
  0x8f   : > { %375 = vst.msk [vmem:[#allocation2 + $0x80] sm:$0xff] %vm358_vm0, %v4839_v0  ;;  %376 = vst.msk [vmem:[#allocation2 + $0x88] sm:$0xff] %vm358_vm0, %v4839_v0 }
  0x90   : > { %377 = vst.msk [vmem:[#allocation2 + $0x90] sm:$0xff] %vm358_vm0, %v4839_v0  ;;  %378 = vst.msk [vmem:[#allocation2 + $0x98] sm:$0xff] %vm358_vm0, %v4839_v0 }
  0x91   : > { %379 = vst.msk [vmem:[#allocation2 + $0xa0] sm:$0xff] %vm358_vm0, %v4839_v0  ;;  %380 = vst.msk [vmem:[#allocation2 + $0xa8] sm:$0xff] %vm358_vm0, %v4839_v0 }
  0x92   : > { %381 = vst.msk [vmem:[#allocation2 + $0xb0] sm:$0xff] %vm358_vm0, %v4839_v0  ;;  %382 = vst.msk [vmem:[#allocation2 + $0xb8] sm:$0xff] %vm358_vm0, %v4839_v0 }
  0x93   : > { %383 = vst.msk [vmem:[#allocation2 + $0xc0] sm:$0xff] %vm358_vm0, %v4839_v0  ;;  %384 = vst.msk [vmem:[#allocation2 + $0xc8] sm:$0xff] %vm358_vm0, %v4839_v0 }
  0x94   : > { %385 = vst.msk [vmem:[#allocation2 + $0xd0] sm:$0xff] %vm358_vm0, %v4839_v0  ;;  %386 = vst.msk [vmem:[#allocation2 + $0xd8] sm:$0xff] %vm358_vm0, %v4839_v0 }
  0x95   : > { %387 = vst.msk [vmem:[#allocation2 + $0xe0] sm:$0xff] %vm358_vm0, %v4839_v0  ;;  %388 = vst.msk [vmem:[#allocation2 + $0xe8] sm:$0xff] %vm358_vm0, %v4839_v0 }
  0x96   : > { %389 = vst.msk [vmem:[#allocation2 + $0xf0] sm:$0xff] %vm358_vm0, %v4839_v0  ;;  %390 = vst.msk [vmem:[#allocation2 + $0xf8] sm:$0xff] %vm358_vm0, %v4839_v0 }
  0x97   : > { %391 = vst.msk [vmem:[#allocation2 + $0x100] sm:$0xff] %vm358_vm0, %v4839_v0  ;;  %392 = vst.msk [vmem:[#allocation2 + $0x108] sm:$0xff] %vm358_vm0, %v4839_v0 }
  0x98   : > { %393 = vst.msk [vmem:[#allocation2 + $0x110] sm:$0xff] %vm358_vm0, %v4839_v0  ;;  %394 = vst.msk [vmem:[#allocation2 + $0x118] sm:$0xff] %vm358_vm0, %v4839_v0 }
  0x99   : > { %395 = vst.msk [vmem:[#allocation2 + $0x120] sm:$0xff] %vm358_vm0, %v4839_v0  ;;  %396 = vst.msk [vmem:[#allocation2 + $0x128] sm:$0xff] %vm358_vm0, %v4839_v0 }
  0x9a   : > { %397 = vst.msk [vmem:[#allocation2 + $0x130] sm:$0xff] %vm358_vm0, %v4839_v0  ;;  %398 = vst.msk [vmem:[#allocation2 + $0x138] sm:$0xff] %vm358_vm0, %v4839_v0 }
  0x9b   : > { %399 = vst.msk [vmem:[#allocation2 + $0x140] sm:$0xff] %vm358_vm0, %v4839_v0  ;;  %400 = vst.msk [vmem:[#allocation2 + $0x148] sm:$0xff] %vm358_vm0, %v4839_v0 }
  0x9c   : > { %401 = vst.msk [vmem:[#allocation2 + $0x150] sm:$0xff] %vm358_vm0, %v4839_v0  ;;  %402 = vst.msk [vmem:[#allocation2 + $0x158] sm:$0xff] %vm358_vm0, %v4839_v0 }
  0x9d   : > { %403 = vst.msk [vmem:[#allocation2 + $0x160] sm:$0xff] %vm358_vm0, %v4839_v0  ;;  %404 = vst.msk [vmem:[#allocation2 + $0x168] sm:$0xff] %vm358_vm0, %v4839_v0 }
  0x9e   : > { %405 = vst.msk [vmem:[#allocation2 + $0x170] sm:$0xff] %vm358_vm0, %v4839_v0  ;;  %406 = vst.msk [vmem:[#allocation2 + $0x178] sm:$0xff] %vm358_vm0, %v4839_v0 }
  0x9f   : > { %407 = vst.msk [vmem:[#allocation2 + $0x180] sm:$0xff] %vm358_vm0, %v4839_v0  ;;  %408 = vst.msk [vmem:[#allocation2 + $0x188] sm:$0xff] %vm358_vm0, %v4839_v0 }
  0xa0   : > { %409 = vst.msk [vmem:[#allocation2 + $0x190] sm:$0xff] %vm358_vm0, %v4839_v0  ;;  %410 = vst.msk [vmem:[#allocation2 + $0x198] sm:$0xff] %vm358_vm0, %v4839_v0 }
  0xa1   : > { %411 = vst.msk [vmem:[#allocation2 + $0x1a0] sm:$0xff] %vm358_vm0, %v4839_v0  ;;  %412 = vst.msk [vmem:[#allocation2 + $0x1a8] sm:$0xff] %vm358_vm0, %v4839_v0 }
  0xa2   : > { %413 = vst.msk [vmem:[#allocation2 + $0x1b0] sm:$0xff] %vm358_vm0, %v4839_v0  ;;  %414 = vst.msk [vmem:[#allocation2 + $0x1b8] sm:$0xff] %vm358_vm0, %v4839_v0 }
  0xa3   : > { %415 = vst.msk [vmem:[#allocation2 + $0x1c0] sm:$0xff] %vm358_vm0, %v4839_v0  ;;  %416 = vst.msk [vmem:[#allocation2 + $0x1c8] sm:$0xff] %vm358_vm0, %v4839_v0 }
  0xa4   : > { %417 = vst.msk [vmem:[#allocation2 + $0x1d0] sm:$0xff] %vm358_vm0, %v4839_v0  ;;  %418 = vst.msk [vmem:[#allocation2 + $0x1d8] sm:$0xff] %vm358_vm0, %v4839_v0 }
  0xa5   : > { %419 = vst.msk [vmem:[#allocation2 + $0x1e0] sm:$0xff] %vm358_vm0, %v4839_v0  ;;  %420 = vst.msk [vmem:[#allocation2 + $0x1e8] sm:$0xff] %vm358_vm0, %v4839_v0 }
  0xa6   : > { %421 = vst.msk [vmem:[#allocation2 + $0x1f0] sm:$0xff] %vm358_vm0, %v4839_v0  ;;  %422 = vst.msk [vmem:[#allocation2 + $0x1f8] sm:$0xff] %vm358_vm0, %v4839_v0 }
  0xa7 PF: > { %s6108_s3 = sld [smem:[#allocation17_spill]]  ;;  %v4840_v1 = vmov 0   ;;  %v4407_v2 = vld [vmem:[%s5080_s10 + $0x4] ss:$16 sps:$4 sm:$0xff]   ;;  %v4410_v3 = vld [vmem:[%s5080_s10 + $0xc] ss:$16 sps:$4 sm:$0xff]  }
  0xa8   : > { %1516 = vmatprep.subr.bf16.mxu0 %v4840_v1  ;;  %1805 = vmatprep.subr.bf16.mxu1 %v4840_v1  ;;  %s6109_s18 = sld [smem:[#allocation22_spill]]  ;;  %v4405_v36 = vld [vmem:[%s5080_s10] ss:$16 sps:$4 sm:$0xff]   ;;  %v4408_v37 = vld [vmem:[%s5080_s10 + $0x8] ss:$16 sps:$4 sm:$0xff]   ;;  %vm2158_vm1 = vcmask 130048  }
  0xa9   : > { %1548 = vmatprep.mubr.bf16.mxu0 %v4407_v2  ;;  %1837 = vmatprep.mubr.bf16.mxu1 %v4410_v3  ;;  %v4411_v38 = vld [vmem:[%s5080_s10 + $0x24] ss:$16 sps:$4 sm:$0xff]   ;;  %v4413_v39 = vld [vmem:[%s5080_s10 + $0x2c] ss:$16 sps:$4 sm:$0xff]   ;;  %v4415_v40 = vld [vmem:[%s5080_s10 + $0x20] ss:$16 sps:$4 sm:$0xff]  }
  0xaa   : > { %v4416_v41 = vld [vmem:[%s5080_s10 + $0x28] ss:$16 sps:$4 sm:$0xff]   ;;  %v4417_v42 = vld [vmem:[%s5080_s10 + $0x44] ss:$16 sps:$4 sm:$0xff]   ;;  %v4419_v43 = vld [vmem:[%s5080_s10 + $0x4c] ss:$16 sps:$4 sm:$0xff]  }
  0xab   : > { %v4421_v44 = vld [vmem:[%s5080_s10 + $0x40] ss:$16 sps:$4 sm:$0xff]   ;;  %v4422_v45 = vld [vmem:[%s5080_s10 + $0x48] ss:$16 sps:$4 sm:$0xff]   ;;  %v4423_v46 = vld [vmem:[%s5080_s10 + $0x64] ss:$16 sps:$4 sm:$0xff]  }
  0xac   : > { %v4425_v47 = vld [vmem:[%s5080_s10 + $0x6c] ss:$16 sps:$4 sm:$0xff]   ;;  %v4427_v48 = vld [vmem:[%s5080_s10 + $0x60] ss:$16 sps:$4 sm:$0xff]   ;;  %v4428_v49 = vld [vmem:[%s5080_s10 + $0x68] ss:$16 sps:$4 sm:$0xff]  }
  0xad   : > { %s3603_s1 = sshll.u32 %s6108_s3, 9  ;;  %v4429_v50 = vld [vmem:[%s5080_s10 + $0x84] ss:$16 sps:$4 sm:$0xff]   ;;  %v4431_v51 = vld [vmem:[%s5080_s10 + $0x8c] ss:$16 sps:$4 sm:$0xff]   ;;  %p3765_p8 = scmp.ne.s32.totalorder %s6108_s3, 2 }
  0xae   : > { %s424_s6 = sshra.s32 %s3603_s1, 3  ;;  %v4433_v52 = vld [vmem:[%s5080_s10 + $0x80] ss:$16 sps:$4 sm:$0xff]   ;;  %v4434_v53 = vld [vmem:[%s5080_s10 + $0x88] ss:$16 sps:$4 sm:$0xff]   ;;  %s6110_s8 = sld [smem:[#allocation24_spill]] (!%p3765_p8) }
  0xaf   : > { %s3604_s28 = sshll.u32 %s424_s6, 2  ;;  %v4435_v54 = vld [vmem:[%s5080_s10 + $0xa4] ss:$16 sps:$4 sm:$0xff]   ;;  %v4437_v55 = vld [vmem:[%s5080_s10 + $0xac] ss:$16 sps:$4 sm:$0xff]  }
  0xb0   : > { %s5241_s16 = scalar_lea.vmem %s6109_s18, %s3604_s28  ;;  %v4439_v56 = vld [vmem:[%s5080_s10 + $0xa0] ss:$16 sps:$4 sm:$0xff]   ;;  %v4440_v57 = vld [vmem:[%s5080_s10 + $0xa8] ss:$16 sps:$4 sm:$0xff]   ;;  %v4441_v58 = vld [vmem:[%s5080_s10 + $0xc4] ss:$16 sps:$4 sm:$0xff]  }
  0xb1   : > { %v4373_v4 = vld [vmem:[%s5241_s16 + $0x38] sm:$0xff]   ;;  %v4375_v6 = vld [vmem:[%s5241_s16 + $0x30] sm:$0xff]   ;;  %v4377_v8 = vld [vmem:[%s5241_s16 + $0x28] sm:$0xff]   ;;  %s6112_s28 = sld [smem:[#allocation22_spill]] (!%p3765_p8) }
  0xb2   : > { %v4374_v5 = vld [vmem:[%s5241_s16 + $0xb8] sm:$0xff]   ;;  %1517 = vmatpush1.bf16.msra.mxu0 %v4373_v4  ;;  %v4376_v7 = vld [vmem:[%s5241_s16 + $0xb0] sm:$0xff]   ;;  %v4378_v9 = vld [vmem:[%s5241_s16 + $0xa8] sm:$0xff]  }
  0xb3   : > { %1806 = vmatpush1.bf16.msra.mxu1 %v4374_v5  ;;  %1518 = vmatprep.subr.bf16.mxu0 %v4840_v1  ;;  %v4379_v10 = vld [vmem:[%s5241_s16 + $0x20] sm:$0xff]   ;;  %v4381_v12 = vld [vmem:[%s5241_s16 + $0x18] sm:$0xff]   ;;  %v4383_v14 = vld [vmem:[%s5241_s16 + $0x10] sm:$0xff]  }
  0xb4   : > { %1807 = vmatprep.subr.bf16.mxu1 %v4840_v1  ;;  %v4380_v11 = vld [vmem:[%s5241_s16 + $0xa0] sm:$0xff]   ;;  %v4382_v13 = vld [vmem:[%s5241_s16 + $0x98] sm:$0xff]   ;;  %v4384_v15 = vld [vmem:[%s5241_s16 + $0x90] sm:$0xff]  }
  0xb5   : > { %v4385_v16 = vld [vmem:[%s5241_s16 + $0x8] sm:$0xff]   ;;  %v4387_v18 = vld [vmem:[%s5241_s16] sm:$0xff]   ;;  %v4389_v20 = vld [vmem:[%s5241_s16 + $0x78] sm:$0xff]  }
  0xb6   : > { %1519 = vmatpush1.bf16.msra.mxu0 %v4375_v6  ;;  %v4386_v17 = vld [vmem:[%s5241_s16 + $0x88] sm:$0xff]   ;;  %v4388_v19 = vld [vmem:[%s5241_s16 + $0x80] sm:$0xff]   ;;  %v4390_v21 = vld [vmem:[%s5241_s16 + $0xf8] sm:$0xff]  }
  0xb7   : > { %1808 = vmatpush1.bf16.msra.mxu1 %v4376_v7  ;;  %1520 = vmatprep.subr.bf16.mxu0 %v4840_v1  ;;  %v4391_v22 = vld [vmem:[%s5241_s16 + $0x70] sm:$0xff]   ;;  %v4393_v24 = vld [vmem:[%s5241_s16 + $0x68] sm:$0xff]   ;;  %v4395_v26 = vld [vmem:[%s5241_s16 + $0x60] sm:$0xff]  }
  0xb8   : > { %1809 = vmatprep.subr.bf16.mxu1 %v4840_v1  ;;  %v4392_v23 = vld [vmem:[%s5241_s16 + $0xf0] sm:$0xff]   ;;  %v4394_v25 = vld [vmem:[%s5241_s16 + $0xe8] sm:$0xff]   ;;  %v4396_v27 = vld [vmem:[%s5241_s16 + $0xe0] sm:$0xff]  }
  0xb9   : > { %v4397_v28 = vld [vmem:[%s5241_s16 + $0x58] sm:$0xff]   ;;  %v4399_v30 = vld [vmem:[%s5241_s16 + $0x50] sm:$0xff]   ;;  %v4401_v32 = vld [vmem:[%s5241_s16 + $0x48] sm:$0xff]  }
  0xba   : > { %1521 = vmatpush1.bf16.msra.mxu0 %v4377_v8  ;;  %v4398_v29 = vld [vmem:[%s5241_s16 + $0xd8] sm:$0xff]   ;;  %v4400_v31 = vld [vmem:[%s5241_s16 + $0xd0] sm:$0xff]   ;;  %v4402_v33 = vld [vmem:[%s5241_s16 + $0xc8] sm:$0xff]  }
  0xbb   : > { %1810 = vmatpush1.bf16.msra.mxu1 %v4378_v9  ;;  %1522 = vmatprep.subr.bf16.mxu0 %v4840_v1  ;;  %v4403_v34 = vld [vmem:[%s5241_s16 + $0x40] sm:$0xff]   ;;  %v4443_v59 = vld [vmem:[%s5080_s10 + $0xcc] ss:$16 sps:$4 sm:$0xff]   ;;  %v4446_v61 = vld [vmem:[%s5080_s10 + $0xc8] ss:$16 sps:$4 sm:$0xff]  }
  0xbc   : > { %1811 = vmatprep.subr.bf16.mxu1 %v4840_v1  ;;  %v4404_v35 = vld [vmem:[%s5241_s16 + $0xc0] sm:$0xff]   ;;  %v4449_v63 = vld [vmem:[%s5080_s10 + $0xec] ss:$16 sps:$4 sm:$0xff]   ;;  %v4458_v5 = vld [vmem:[%s5080_s10 + $0x108] ss:$16 sps:$4 sm:$0xff]  }
  0xbd   : > { %v4445_v60 = vld [vmem:[%s5080_s10 + $0xc0] ss:$16 sps:$4 sm:$0xff]   ;;  %v4447_v62 = vld [vmem:[%s5080_s10 + $0xe4] ss:$16 sps:$4 sm:$0xff]   ;;  %v4455_v3 = vld [vmem:[%s5080_s10 + $0x10c] ss:$16 sps:$4 sm:$0xff]  }
  0xbe   : > { %1523 = vmatpush1.bf16.msra.mxu0 %v4379_v10  ;;  %v4451_v0 = vld [vmem:[%s5080_s10 + $0xe0] ss:$16 sps:$4 sm:$0xff]   ;;  %v4453_v2 = vld [vmem:[%s5080_s10 + $0x104] ss:$16 sps:$4 sm:$0xff]   ;;  %v4461_v7 = vld [vmem:[%s5080_s10 + $0x12c] ss:$16 sps:$4 sm:$0xff]  }
  0xbf   : > { %1812 = vmatpush1.bf16.msra.mxu1 %v4380_v11  ;;  %1524 = vmatprep.subr.bf16.mxu0 %v4840_v1  ;;  %v4457_v4 = vld [vmem:[%s5080_s10 + $0x100] ss:$16 sps:$4 sm:$0xff]   ;;  %v4459_v6 = vld [vmem:[%s5080_s10 + $0x124] ss:$16 sps:$4 sm:$0xff]   ;;  %v4464_v9 = vld [vmem:[%s5080_s10 + $0x128] ss:$16 sps:$4 sm:$0xff]  }
  0xc0   : > { %1813 = vmatprep.subr.bf16.mxu1 %v4840_v1  ;;  %v4463_v8 = vld [vmem:[%s5080_s10 + $0x120] ss:$16 sps:$4 sm:$0xff]   ;;  %v4465_v10 = vld [vmem:[%s5080_s10 + $0x144] ss:$16 sps:$4 sm:$0xff]   ;;  %v4467_v11 = vld [vmem:[%s5080_s10 + $0x14c] ss:$16 sps:$4 sm:$0xff]  }
  0xc2   : > { %1525 = vmatpush1.bf16.msra.mxu0 %v4381_v12  ;;  %v4469_v12 = vld [vmem:[%s5080_s10 + $0x140] ss:$16 sps:$4 sm:$0xff]  }
  0xc3   : > { %1814 = vmatpush1.bf16.msra.mxu1 %v4382_v13  ;;  %1526 = vmatprep.subr.bf16.mxu0 %v4840_v1  ;;  %v4470_v13 = vld [vmem:[%s5080_s10 + $0x148] ss:$16 sps:$4 sm:$0xff]  }
  0xc4   : > { %1815 = vmatprep.subr.bf16.mxu1 %v4840_v1 }
  0xc6   : > { %1527 = vmatpush1.bf16.msra.mxu0 %v4383_v14  ;;  %v4471_v14 = vld [vmem:[%s5080_s10 + $0x164] ss:$16 sps:$4 sm:$0xff]  }
  0xc7   : > { %1816 = vmatpush1.bf16.msra.mxu1 %v4384_v15  ;;  %1528 = vmatprep.subr.bf16.mxu0 %v4840_v1  ;;  %v4473_v15 = vld [vmem:[%s5080_s10 + $0x16c] ss:$16 sps:$4 sm:$0xff]  }
  0xc8   : > { %1817 = vmatprep.subr.bf16.mxu1 %v4840_v1 }
  0xca   : > { %1529 = vmatpush1.bf16.msra.mxu0 %v4385_v16  ;;  %v4475_v16 = vld [vmem:[%s5080_s10 + $0x160] ss:$16 sps:$4 sm:$0xff]  }
  0xcb   : > { %1818 = vmatpush1.bf16.msra.mxu1 %v4386_v17  ;;  %1530 = vmatprep.subr.bf16.mxu0 %v4840_v1  ;;  %v4476_v17 = vld [vmem:[%s5080_s10 + $0x168] ss:$16 sps:$4 sm:$0xff]  }
  0xcc   : > { %1819 = vmatprep.subr.bf16.mxu1 %v4840_v1 }
  0xce   : > { %1531 = vmatpush1.bf16.msra.mxu0 %v4387_v18  ;;  %v4477_v18 = vld [vmem:[%s5080_s10 + $0x184] ss:$16 sps:$4 sm:$0xff]  }
  0xcf   : > { %1820 = vmatpush1.bf16.msra.mxu1 %v4388_v19  ;;  %1532 = vmatprep.subr.bf16.mxu0 %v4840_v1  ;;  %v4479_v19 = vld [vmem:[%s5080_s10 + $0x18c] ss:$16 sps:$4 sm:$0xff]  }
  0xd0   : > { %1821 = vmatprep.subr.bf16.mxu1 %v4840_v1 }
  0xd2   : > { %1533 = vmatpush2.bf16.msra.mxu0 %v4389_v20  ;;  %v4481_v20 = vld [vmem:[%s5080_s10 + $0x180] ss:$16 sps:$4 sm:$0xff]  }
  0xd3   : > { %1822 = vmatpush2.bf16.msra.mxu1 %v4390_v21  ;;  %1534 = vmatprep.subr.bf16.mxu0 %v4840_v1  ;;  %v4482_v21 = vld [vmem:[%s5080_s10 + $0x188] ss:$16 sps:$4 sm:$0xff]  }
  0xd4   : > { %1823 = vmatprep.subr.bf16.mxu1 %v4840_v1 }
  0xd6   : > { %1535 = vmatpush2.bf16.msra.mxu0 %v4391_v22  ;;  %v4483_v22 = vld [vmem:[%s5080_s10 + $0x1a4] ss:$16 sps:$4 sm:$0xff]  }
  0xd7   : > { %1824 = vmatpush2.bf16.msra.mxu1 %v4392_v23  ;;  %1536 = vmatprep.subr.bf16.mxu0 %v4840_v1  ;;  %v4485_v23 = vld [vmem:[%s5080_s10 + $0x1ac] ss:$16 sps:$4 sm:$0xff]  }
  0xd8   : > { %1825 = vmatprep.subr.bf16.mxu1 %v4840_v1 }
  0xda   : > { %1537 = vmatpush2.bf16.msra.mxu0 %v4393_v24  ;;  %v4487_v24 = vld [vmem:[%s5080_s10 + $0x1a0] ss:$16 sps:$4 sm:$0xff]  }
  0xdb   : > { %1826 = vmatpush2.bf16.msra.mxu1 %v4394_v25  ;;  %1538 = vmatprep.subr.bf16.mxu0 %v4840_v1  ;;  %v4488_v25 = vld [vmem:[%s5080_s10 + $0x1a8] ss:$16 sps:$4 sm:$0xff]  }
  0xdc   : > { %1827 = vmatprep.subr.bf16.mxu1 %v4840_v1 }
  0xde   : > { %1539 = vmatpush2.bf16.msra.mxu0 %v4395_v26  ;;  %v4489_v26 = vld [vmem:[%s5080_s10 + $0x1c4] ss:$16 sps:$4 sm:$0xff]  }
  0xdf   : > { %1828 = vmatpush2.bf16.msra.mxu1 %v4396_v27  ;;  %1540 = vmatprep.subr.bf16.mxu0 %v4840_v1  ;;  %v4491_v27 = vld [vmem:[%s5080_s10 + $0x1cc] ss:$16 sps:$4 sm:$0xff]  }
  0xe0   : > { %1829 = vmatprep.subr.bf16.mxu1 %v4840_v1 }
  0xe2   : > { %1541 = vmatpush2.bf16.msra.mxu0 %v4397_v28  ;;  %v4493_v28 = vld [vmem:[%s5080_s10 + $0x1c0] ss:$16 sps:$4 sm:$0xff]  }
  0xe3   : > { %1830 = vmatpush2.bf16.msra.mxu1 %v4398_v29  ;;  %1542 = vmatprep.subr.bf16.mxu0 %v4840_v1  ;;  %v4494_v29 = vld [vmem:[%s5080_s10 + $0x1c8] ss:$16 sps:$4 sm:$0xff]  }
  0xe4   : > { %1831 = vmatprep.subr.bf16.mxu1 %v4840_v1 }
  0xe6   : > { %1543 = vmatpush2.bf16.msra.mxu0 %v4399_v30  ;;  %v4495_v30 = vld [vmem:[%s5080_s10 + $0x1e4] ss:$16 sps:$4 sm:$0xff]  }
  0xe7   : > { %1832 = vmatpush2.bf16.msra.mxu1 %v4400_v31  ;;  %1544 = vmatprep.subr.bf16.mxu0 %v4840_v1  ;;  %v4497_v31 = vld [vmem:[%s5080_s10 + $0x1ec] ss:$16 sps:$4 sm:$0xff]  }
  0xe8   : > { %1833 = vmatprep.subr.bf16.mxu1 %v4840_v1 }
  0xea   : > { %1545 = vmatpush2.bf16.msra.mxu0 %v4401_v32  ;;  %v4499_v32 = vld [vmem:[%s5080_s10 + $0x1e0] ss:$16 sps:$4 sm:$0xff]  }
  0xeb   : > { %1834 = vmatpush2.bf16.msra.mxu1 %v4402_v33  ;;  %1546 = vmatprep.subr.bf16.mxu0 %v4840_v1  ;;  %v4500_v33 = vld [vmem:[%s5080_s10 + $0x1e8] ss:$16 sps:$4 sm:$0xff]  }
  0xec   : > { %1835 = vmatprep.subr.bf16.mxu1 %v4840_v1  ;;  %v4452_v1 = vld [vmem:[%s5080_s10 + $0xe8] ss:$16 sps:$4 sm:$0xff]  }
  0xee   : > { %1547 = vmatpush2.bf16.msra.mxu0 %v4403_v34  ;;  %v4501_v34 = vld [vmem:[%s5080_s10 + $0x204] ss:$16 sps:$4 sm:$0xff]  }
  0xef   : > { %1836 = vmatpush2.bf16.msra.mxu1 %v4404_v35  ;;  %v4503_v35 = vld [vmem:[%s5080_s10 + $0x20c] ss:$16 sps:$4 sm:$0xff]  }
  0xf1   : > { %1549 = vmatmul.mubr.bf16.vlgmr.msra.gmra.mxu0 %v4405_v36  ;;  %v4505_v36 = vld [vmem:[%s5080_s10 + $0x200] ss:$16 sps:$4 sm:$0xff]  }
  0xf2   : > { %1838 = vmatmul.mubr.bf16.vlgmr.msra.gmra.mxu1 %v4408_v37  ;;  %1556 = vmatprep.mubr.bf16.mxu0 %v4411_v38  ;;  %v4506_v37 = vld [vmem:[%s5080_s10 + $0x208] ss:$16 sps:$4 sm:$0xff]   ;;  %v4507_v38 = vld [vmem:[%s5080_s10 + $0x224] ss:$16 sps:$4 sm:$0xff]  }
  0xf3   : > { %1845 = vmatprep.mubr.bf16.mxu1 %v4413_v39  ;;  %v4509_v39 = vld [vmem:[%s5080_s10 + $0x22c] ss:$16 sps:$4 sm:$0xff]  }
  0xf9   : > { %1557 = vmatmul.mubr.bf16.gmra.mxu0 %v4415_v40  ;;  %v4511_v40 = vld [vmem:[%s5080_s10 + $0x220] ss:$16 sps:$4 sm:$0xff]  }
  0xfa   : > { %1846 = vmatmul.mubr.bf16.gmra.mxu1 %v4416_v41  ;;  %1564 = vmatprep.mubr.bf16.mxu0 %v4417_v42  ;;  %v4512_v41 = vld [vmem:[%s5080_s10 + $0x228] ss:$16 sps:$4 sm:$0xff]   ;;  %v4513_v42 = vld [vmem:[%s5080_s10 + $0x244] ss:$16 sps:$4 sm:$0xff]  }
  0xfb   : > { %1853 = vmatprep.mubr.bf16.mxu1 %v4419_v43  ;;  %v4515_v43 = vld [vmem:[%s5080_s10 + $0x24c] ss:$16 sps:$4 sm:$0xff]  }
 0x101   : > { %1565 = vmatmul.mubr.bf16.gmra.mxu0 %v4421_v44  ;;  %v4517_v44 = vld [vmem:[%s5080_s10 + $0x240] ss:$16 sps:$4 sm:$0xff]  }
 0x102   : > { %1854 = vmatmul.mubr.bf16.gmra.mxu1 %v4422_v45  ;;  %1572 = vmatprep.mubr.bf16.mxu0 %v4423_v46  ;;  %v4518_v45 = vld [vmem:[%s5080_s10 + $0x248] ss:$16 sps:$4 sm:$0xff]   ;;  %v4519_v46 = vld [vmem:[%s5080_s10 + $0x264] ss:$16 sps:$4 sm:$0xff]  }
 0x103   : > { %1861 = vmatprep.mubr.bf16.mxu1 %v4425_v47  ;;  %v4521_v47 = vld [vmem:[%s5080_s10 + $0x26c] ss:$16 sps:$4 sm:$0xff]  }
 0x109   : > { %1573 = vmatmul.mubr.bf16.gmra.mxu0 %v4427_v48  ;;  %v4523_v48 = vld [vmem:[%s5080_s10 + $0x260] ss:$16 sps:$4 sm:$0xff]  }
 0x10a   : > { %1862 = vmatmul.mubr.bf16.gmra.mxu1 %v4428_v49  ;;  %1580 = vmatprep.mubr.bf16.mxu0 %v4429_v50  ;;  %v4524_v49 = vld [vmem:[%s5080_s10 + $0x268] ss:$16 sps:$4 sm:$0xff]   ;;  %v4525_v50 = vld [vmem:[%s5080_s10 + $0x284] ss:$16 sps:$4 sm:$0xff]  }
 0x10b   : > { %1869 = vmatprep.mubr.bf16.mxu1 %v4431_v51  ;;  %v4527_v51 = vld [vmem:[%s5080_s10 + $0x28c] ss:$16 sps:$4 sm:$0xff]  }
 0x111   : > { %1581 = vmatmul.mubr.bf16.gmra.mxu0 %v4433_v52  ;;  %v4529_v52 = vld [vmem:[%s5080_s10 + $0x280] ss:$16 sps:$4 sm:$0xff]  }
 0x112   : > { %1870 = vmatmul.mubr.bf16.gmra.mxu1 %v4434_v53  ;;  %1588 = vmatprep.mubr.bf16.mxu0 %v4435_v54  ;;  %v4530_v53 = vld [vmem:[%s5080_s10 + $0x288] ss:$16 sps:$4 sm:$0xff]   ;;  %v4531_v54 = vld [vmem:[%s5080_s10 + $0x2a4] ss:$16 sps:$4 sm:$0xff]  }
 0x113   : > { %1877 = vmatprep.mubr.bf16.mxu1 %v4437_v55  ;;  %v4533_v55 = vld [vmem:[%s5080_s10 + $0x2ac] ss:$16 sps:$4 sm:$0xff]  }
 0x119   : > { %1589 = vmatmul.mubr.bf16.gmra.mxu0 %v4439_v56  ;;  %v4535_v56 = vld [vmem:[%s5080_s10 + $0x2a0] ss:$16 sps:$4 sm:$0xff]  }
 0x11a   : > { %1878 = vmatmul.mubr.bf16.gmra.mxu1 %v4440_v57  ;;  %1596 = vmatprep.mubr.bf16.mxu0 %v4441_v58  ;;  %v4536_v57 = vld [vmem:[%s5080_s10 + $0x2a8] ss:$16 sps:$4 sm:$0xff]   ;;  %v4537_v58 = vld [vmem:[%s5080_s10 + $0x2c4] ss:$16 sps:$4 sm:$0xff]  }
 0x11b   : > { %1885 = vmatprep.mubr.bf16.mxu1 %v4443_v59  ;;  %v4539_v59 = vld [vmem:[%s5080_s10 + $0x2cc] ss:$16 sps:$4 sm:$0xff]  }
 0x121   : > { %1597 = vmatmul.mubr.bf16.gmra.mxu0 %v4445_v60  ;;  %v4541_v60 = vld [vmem:[%s5080_s10 + $0x2c0] ss:$16 sps:$4 sm:$0xff]  }
 0x122   : > { %1886 = vmatmul.mubr.bf16.gmra.mxu1 %v4446_v61  ;;  %1604 = vmatprep.mubr.bf16.mxu0 %v4447_v62  ;;  %v4542_v61 = vld [vmem:[%s5080_s10 + $0x2c8] ss:$16 sps:$4 sm:$0xff]   ;;  %v4543_v62 = vld [vmem:[%s5080_s10 + $0x2e4] ss:$16 sps:$4 sm:$0xff]  }
 0x123   : > { %1893 = vmatprep.mubr.bf16.mxu1 %v4449_v63  ;;  %v4545_v63 = vld [vmem:[%s5080_s10 + $0x2ec] ss:$16 sps:$4 sm:$0xff]  }
 0x129   : > { %1605 = vmatmul.mubr.bf16.gmra.mxu0 %v4451_v0  ;;  %v4547_v0 = vld [vmem:[%s5080_s10 + $0x2e0] ss:$16 sps:$4 sm:$0xff]  }
 0x12a   : > { %1894 = vmatmul.mubr.bf16.gmra.mxu1 %v4452_v1  ;;  %1612 = vmatprep.mubr.bf16.mxu0 %v4453_v2  ;;  %v4548_v1 = vld [vmem:[%s5080_s10 + $0x2e8] ss:$16 sps:$4 sm:$0xff]   ;;  %v4549_v2 = vld [vmem:[%s5080_s10 + $0x304] ss:$16 sps:$4 sm:$0xff]  }
 0x12b   : > { %1901 = vmatprep.mubr.bf16.mxu1 %v4455_v3  ;;  %v4551_v3 = vld [vmem:[%s5080_s10 + $0x30c] ss:$16 sps:$4 sm:$0xff]  }
 0x131   : > { %1613 = vmatmul.mubr.bf16.gmra.mxu0 %v4457_v4  ;;  %v653_v4 = vld [vmem:[%s5080_s10 + $0x308] sm:$0xff] }
 0x132   : > { %1902 = vmatmul.mubr.bf16.gmra.mxu1 %v4458_v5  ;;  %1620 = vmatprep.mubr.bf16.mxu0 %v4459_v6  ;;  %v655_v5 = vld [vmem:[%s5080_s10 + $0x318] sm:$0xff]  ;;  %v4553_v6 = vld [vmem:[%s5080_s10 + $0x300] ss:$16 sps:$4 sm:$0xff]  }
 0x133   : > { %1909 = vmatprep.mubr.bf16.mxu1 %v4461_v7  ;;  %v3703_v7 = vcombine.low %v653_v4, %v655_v5 }
 0x139   : > { %1621 = vmatmul.mubr.bf16.gmra.mxu0 %v4463_v8  ;;  %v4554_v8 = vld [vmem:[%s5080_s10 + $0x324] ss:$16 sps:$4 sm:$0xff]  }
 0x13a   : > { %1910 = vmatmul.mubr.bf16.gmra.mxu1 %v4464_v9  ;;  %1628 = vmatprep.mubr.bf16.mxu0 %v4465_v10  ;;  %v4556_v9 = vld [vmem:[%s5080_s10 + $0x32c] ss:$16 sps:$4 sm:$0xff]  }
 0x13b   : > { %1917 = vmatprep.mubr.bf16.mxu1 %v4467_v11  ;;  %v492_v11 = vld [vmem:[#allocation2] sm:$0xff] }
 0x141   : > { %1629 = vmatmul.mubr.bf16.gmra.mxu0 %v4469_v12 }
 0x142   : > { %1918 = vmatmul.mubr.bf16.gmra.mxu1 %v4470_v13  ;;  %1636 = vmatprep.mubr.bf16.mxu0 %v4471_v14 }
 0x143   : > { %1925 = vmatprep.mubr.bf16.mxu1 %v4473_v15  ;;  %v657_v15 = vld [vmem:[%s5080_s10 + $0x328] sm:$0xff] }
 0x149   : > { %1637 = vmatmul.mubr.bf16.gmra.mxu0 %v4475_v16  ;;  %v659_v16 = vld [vmem:[%s5080_s10 + $0x338] sm:$0xff] }
 0x14a   : > { %1926 = vmatmul.mubr.bf16.gmra.mxu1 %v4476_v17  ;;  %1644 = vmatprep.mubr.bf16.mxu0 %v4477_v18 }
 0x14b   : > { %1933 = vmatprep.mubr.bf16.mxu1 %v4479_v19 }
 0x151   : > { %1645 = vmatmul.mubr.bf16.gmra.mxu0 %v4481_v20  ;;  %v4558_v20 = vld [vmem:[%s5080_s10 + $0x320] ss:$16 sps:$4 sm:$0xff]  }
 0x152   : > { %1934 = vmatmul.mubr.bf16.gmra.mxu1 %v4482_v21  ;;  %1652 = vmatprep.mubr.bf16.mxu0 %v4483_v22  ;;  %v493_v21 = vld [vmem:[#allocation2 + $0x8] sm:$0xff] }
 0x153   : > { %1941 = vmatprep.mubr.bf16.mxu1 %v4485_v23  ;;  %v3707_v23 = vcombine.low %v657_v15, %v659_v16  ;;  %v499_v15 = vld [vmem:[#allocation2 + $0x38] sm:$0xff] }
 0x159   : > { %1653 = vmatmul.mubr.bf16.gmra.mxu0 %v4487_v24  ;;  %v4559_v24 = vld [vmem:[%s5080_s10 + $0x344] ss:$16 sps:$4 sm:$0xff]  }
 0x15a   : > { %1942 = vmatmul.mubr.bf16.gmra.mxu1 %v4488_v25  ;;  %1660 = vmatprep.mubr.bf16.mxu0 %v4489_v26 }
 0x15b   : > { %1949 = vmatprep.mubr.bf16.mxu1 %v4491_v27  ;;  %v4561_v27 = vld [vmem:[%s5080_s10 + $0x34c] ss:$16 sps:$4 sm:$0xff]  }
 0x161   : > { %1661 = vmatmul.mubr.bf16.gmra.mxu0 %v4493_v28 }
 0x162   : > { %1950 = vmatmul.mubr.bf16.gmra.mxu1 %v4494_v29  ;;  %1668 = vmatprep.mubr.bf16.mxu0 %v4495_v30 }
 0x163   : > { %1957 = vmatprep.mubr.bf16.mxu1 %v4497_v31  ;;  %v494_v31 = vld [vmem:[#allocation2 + $0x10] sm:$0xff] }
 0x169   : > { %1669 = vmatmul.mubr.bf16.gmra.mxu0 %v4499_v32 }
 0x16a   : > { %1958 = vmatmul.mubr.bf16.gmra.mxu1 %v4500_v33  ;;  %1676 = vmatprep.mubr.bf16.mxu0 %v4501_v34 }
 0x16b   : > { %1965 = vmatprep.mubr.bf16.mxu1 %v4503_v35  ;;  %v661_v35 = vld [vmem:[%s5080_s10 + $0x348] sm:$0xff] }
 0x171   : > { %1677 = vmatmul.mubr.bf16.gmra.mxu0 %v4505_v36  ;;  %v663_v36 = vld [vmem:[%s5080_s10 + $0x358] sm:$0xff] }
 0x172   : > { %1966 = vmatmul.mubr.bf16.gmra.mxu1 %v4506_v37  ;;  %1684 = vmatprep.mubr.bf16.mxu0 %v4507_v38 }
 0x173   : > { %1973 = vmatprep.mubr.bf16.mxu1 %v4509_v39 }
 0x179   : > { %1685 = vmatmul.mubr.bf16.gmra.mxu0 %v4511_v40  ;;  %v4563_v40 = vld [vmem:[%s5080_s10 + $0x340] ss:$16 sps:$4 sm:$0xff]  }
 0x17a   : > { %1974 = vmatmul.mubr.bf16.gmra.mxu1 %v4512_v41  ;;  %1692 = vmatprep.mubr.bf16.mxu0 %v4513_v42  ;;  %v495_v41 = vld [vmem:[#allocation2 + $0x18] sm:$0xff] }
 0x17b   : > { %1981 = vmatprep.mubr.bf16.mxu1 %v4515_v43  ;;  %v3711_v43 = vcombine.low %v661_v35, %v663_v36  ;;  %v4578_v35 = vld [vmem:[%s5080_s10 + $0x3a8] ss:$16 sps:$4 sm:$0xff]   ;;  %v4583_v36 = vld [vmem:[%s5080_s10 + $0x3c4] ss:$16 sps:$4 sm:$0xff]  }
 0x181   : > { %1693 = vmatmul.mubr.bf16.gmra.mxu0 %v4517_v44  ;;  %v4564_v44 = vld [vmem:[%s5080_s10 + $0x364] ss:$16 sps:$4 sm:$0xff]  }
 0x182   : > { %1982 = vmatmul.mubr.bf16.gmra.mxu1 %v4518_v45  ;;  %1700 = vmatprep.mubr.bf16.mxu0 %v4519_v46 }
 0x183   : > { %1989 = vmatprep.mubr.bf16.mxu1 %v4521_v47  ;;  %v4566_v47 = vld [vmem:[%s5080_s10 + $0x36c] ss:$16 sps:$4 sm:$0xff]  }
 0x189   : > { %1701 = vmatmul.mubr.bf16.gmra.mxu0 %v4523_v48 }
 0x18a   : > { %1990 = vmatmul.mubr.bf16.gmra.mxu1 %v4524_v49  ;;  %1708 = vmatprep.mubr.bf16.mxu0 %v4525_v50 }
 0x18b   : > { %1997 = vmatprep.mubr.bf16.mxu1 %v4527_v51  ;;  %v496_v51 = vld [vmem:[#allocation2 + $0x20] sm:$0xff] }
 0x191   : > { %1709 = vmatmul.mubr.bf16.gmra.mxu0 %v4529_v52 }
 0x192   : > { %1998 = vmatmul.mubr.bf16.gmra.mxu1 %v4530_v53  ;;  %1716 = vmatprep.mubr.bf16.mxu0 %v4531_v54 }
 0x193   : > { %2005 = vmatprep.mubr.bf16.mxu1 %v4533_v55  ;;  %v665_v55 = vld [vmem:[%s5080_s10 + $0x368] sm:$0xff] }
 0x199   : > { %1717 = vmatmul.mubr.bf16.gmra.mxu0 %v4535_v56  ;;  %v667_v56 = vld [vmem:[%s5080_s10 + $0x378] sm:$0xff] }
 0x19a   : > { %2006 = vmatmul.mubr.bf16.gmra.mxu1 %v4536_v57  ;;  %1724 = vmatprep.mubr.bf16.mxu0 %v4537_v58 }
 0x19b   : > { %2013 = vmatprep.mubr.bf16.mxu1 %v4539_v59 }
 0x1a1   : > { %1725 = vmatmul.mubr.bf16.gmra.mxu0 %v4541_v60  ;;  %v4568_v60 = vld [vmem:[%s5080_s10 + $0x360] ss:$16 sps:$4 sm:$0xff]  }
 0x1a2   : > { %2014 = vmatmul.mubr.bf16.gmra.mxu1 %v4542_v61  ;;  %1732 = vmatprep.mubr.bf16.mxu0 %v4543_v62  ;;  %v497_v61 = vld [vmem:[#allocation2 + $0x28] sm:$0xff] }
 0x1a3   : > { %2021 = vmatprep.mubr.bf16.mxu1 %v4545_v63  ;;  %v3715_v63 = vcombine.low %v665_v55, %v667_v56 }
 0x1a9   : > { %1733 = vmatmul.mubr.bf16.gmra.mxu0 %v4547_v0  ;;  %v4571_v0 = vld [vmem:[%s5080_s10 + $0x384] ss:$16 sps:$4 sm:$0xff]  }
 0x1aa   : > { %2022 = vmatmul.mubr.bf16.gmra.mxu1 %v4548_v1  ;;  %1740 = vmatprep.mubr.bf16.mxu0 %v4549_v2 }
 0x1ab   : > { %2029 = vmatprep.mubr.bf16.mxu1 %v4551_v3  ;;  %v4574_v3 = vld [vmem:[%s5080_s10 + $0x38c] ss:$16 sps:$4 sm:$0xff]  }
 0x1b1   : > { %v1550_v10 = vpop.f32.mrf.mxu0  ;;  %1741 = vmatmul.mubr.bf16.gmra.mxu0 %v4553_v6 }
 0x1b2   : > { %v1839_v12 = vpop.f32.mrf.mxu1  ;;  %2030 = vmatmul.mubr.bf16.gmra.mxu1 %v3703_v7  ;;  %1748 = vmatprep.mubr.bf16.mxu0 %v4554_v8  ;;  %v498_v7 = vld [vmem:[#allocation2 + $0x30] sm:$0xff] }
 0x1b3   : > { %v1840_v13 = vadd.f32 %v1839_v12, %v1550_v10  ;;  %v1552_v14 = vpop.f32.mrf.mxu0  ;;  %2037 = vmatprep.mubr.bf16.mxu1 %v4556_v9 }
 0x1b4   : > { %v1841_v17 = vpop.f32.mrf.mxu1  ;;  %v4569_v14 = vld [vmem:[%s5080_s10 + $0x380] ss:$16 sps:$4 sm:$0xff]  }
 0x1b5   : > { %v2094_v18 = vadd.f32 %v1840_v13, %v492_v11  ;;  %v1553_v19 = vpop.f32.mrf.mxu0  ;;  %v4572_v17 = vld [vmem:[%s5080_s10 + $0x388] ss:$16 sps:$4 sm:$0xff]  }
 0x1b6   : > { %v1842_v22 = vpop.f32.mrf.mxu1 }
 0x1b7   : > { %2159 = vst.msk [vmem:[#allocation2] sm:$0xff] %vm2158_vm1, %v2094_v18  ;;  %v1843_v25 = vadd.f32 %v1842_v22, %v1553_v19  ;;  %v1555_v26 = vpop.f32.mrf.mxu0  ;;  %v4577_v18 = vld [vmem:[%s5080_s10 + $0x3a4] ss:$16 sps:$4 sm:$0xff]  }
 0x1b8   : > { %v1844_v28 = vpop.f32.mrf.mxu1 }
 0x1b9   : > { %v2095_v29 = vadd.f32 %v1843_v25, %v493_v21  ;;  %v1558_v30 = vpop.f32.mrf.mxu0  ;;  %1749 = vmatmul.mubr.bf16.gmra.mxu0 %v4558_v20  ;;  %v4580_v21 = vld [vmem:[%s5080_s10 + $0x3ac] ss:$16 sps:$4 sm:$0xff]   ;;  %v500_v25 = vld [vmem:[#allocation2 + $0x40] sm:$0xff] }
 0x1ba   : > { %v1847_v32 = vpop.f32.mrf.mxu1  ;;  %2038 = vmatmul.mubr.bf16.gmra.mxu1 %v3707_v23  ;;  %1756 = vmatprep.mubr.bf16.mxu0 %v4559_v24 }
 0x1bb   : > { %2160 = vst.msk [vmem:[#allocation2 + $0x8] sm:$0xff] %vm2158_vm1, %v2095_v29  ;;  %v1848_v33 = vadd.f32 %v1847_v32, %v1558_v30  ;;  %v1560_v34 = vpop.f32.mrf.mxu0  ;;  %2045 = vmatprep.mubr.bf16.mxu1 %v4561_v27  ;;  %v4575_v32 = vld [vmem:[%s5080_s10 + $0x3a0] ss:$16 sps:$4 sm:$0xff]  }
 0x1bc   : > { %v1849_v37 = vpop.f32.mrf.mxu1 }
 0x1bd   : > { %v2096_v38 = vadd.f32 %v1848_v33, %v494_v31  ;;  %v1561_v39 = vpop.f32.mrf.mxu0  ;;  %v501_v33 = vld [vmem:[#allocation2 + $0x48] sm:$0xff] }
 0x1be   : > { %v1850_v42 = vpop.f32.mrf.mxu1 }
 0x1bf   : > { %2161 = vst.msk [vmem:[#allocation2 + $0x10] sm:$0xff] %vm2158_vm1, %v2096_v38  ;;  %v1851_v45 = vadd.f32 %v1850_v42, %v1561_v39  ;;  %v1563_v46 = vpop.f32.mrf.mxu0  ;;  %v4586_v39 = vld [vmem:[%s5080_s10 + $0x3cc] ss:$16 sps:$4 sm:$0xff]  }
 0x1c0   : > { %v1852_v48 = vpop.f32.mrf.mxu1 }
 0x1c1   : > { %v2097_v49 = vadd.f32 %v1851_v45, %v495_v41  ;;  %v1566_v50 = vpop.f32.mrf.mxu0  ;;  %1757 = vmatmul.mubr.bf16.gmra.mxu0 %v4563_v40 }
 0x1c2   : > { %v1855_v52 = vpop.f32.mrf.mxu1  ;;  %2046 = vmatmul.mubr.bf16.gmra.mxu1 %v3711_v43  ;;  %1764 = vmatprep.mubr.bf16.mxu0 %v4564_v44  ;;  %v502_v43 = vld [vmem:[#allocation2 + $0x50] sm:$0xff] }
 0x1c3   : > { %2162 = vst.msk [vmem:[#allocation2 + $0x18] sm:$0xff] %vm2158_vm1, %v2097_v49  ;;  %v1856_v53 = vadd.f32 %v1855_v52, %v1566_v50  ;;  %v1568_v54 = vpop.f32.mrf.mxu0  ;;  %2053 = vmatprep.mubr.bf16.mxu1 %v4566_v47  ;;  %v4581_v50 = vld [vmem:[%s5080_s10 + $0x3c0] ss:$16 sps:$4 sm:$0xff]  }
 0x1c4   : > { %v1857_v57 = vpop.f32.mrf.mxu1  ;;  %v4589_v54 = vld [vmem:[%s5080_s10 + $0x3e4] ss:$16 sps:$4 sm:$0xff]  }
 0x1c5   : > { %v2098_v58 = vadd.f32 %v1856_v53, %v496_v51  ;;  %v1569_v59 = vpop.f32.mrf.mxu0  ;;  %v503_v51 = vld [vmem:[#allocation2 + $0x58] sm:$0xff] }
 0x1c6   : > { %v1858_v62 = vpop.f32.mrf.mxu1  ;;  %v4584_v53 = vld [vmem:[%s5080_s10 + $0x3c8] ss:$16 sps:$4 sm:$0xff]   ;;  %v4592_v57 = vld [vmem:[%s5080_s10 + $0x3ec] ss:$16 sps:$4 sm:$0xff]  }
 0x1c7   : > { %2163 = vst.msk [vmem:[#allocation2 + $0x20] sm:$0xff] %vm2158_vm1, %v2098_v58  ;;  %v1859_v1 = vadd.f32 %v1858_v62, %v1569_v59  ;;  %v1571_v2 = vpop.f32.mrf.mxu0 }
 0x1c8   : > { %v1860_v4 = vpop.f32.mrf.mxu1 }
 0x1c9   : > { %v2099_v5 = vadd.f32 %v1859_v1, %v497_v61  ;;  %v1574_v6 = vpop.f32.mrf.mxu0  ;;  %1765 = vmatmul.mubr.bf16.gmra.mxu0 %v4568_v60  ;;  %v504_v61 = vld [vmem:[#allocation2 + $0x60] sm:$0xff] }
 0x1ca   : > { %v1863_v8 = vpop.f32.mrf.mxu1  ;;  %2054 = vmatmul.mubr.bf16.gmra.mxu1 %v3715_v63  ;;  %1772 = vmatprep.mubr.bf16.mxu0 %v4571_v0  ;;  %v4587_v4 = vld [vmem:[%s5080_s10 + $0x3e0] ss:$16 sps:$4 sm:$0xff]  }
 0x1cb   : > { %2164 = vst.msk [vmem:[#allocation2 + $0x28] sm:$0xff] %vm2158_vm1, %v2099_v5  ;;  %v1864_v9 = vadd.f32 %v1863_v8, %v1574_v6  ;;  %v1576_v10 = vpop.f32.mrf.mxu0  ;;  %2061 = vmatprep.mubr.bf16.mxu1 %v4574_v3  ;;  %v505_v5 = vld [vmem:[#allocation2 + $0x68] sm:$0xff] }
 0x1cc   : > { %v1865_v11 = vpop.f32.mrf.mxu1 }
 0x1cd   : > { %v2100_v12 = vadd.f32 %v1864_v9, %v498_v7  ;;  %v1577_v13 = vpop.f32.mrf.mxu0  ;;  %v4590_v7 = vld [vmem:[%s5080_s10 + $0x3e8] ss:$16 sps:$4 sm:$0xff]   ;;  %s6111_s10 = sld [smem:[#allocation18_spill]] (!%p3765_p8) }
 0x1ce   : > { %v1866_v16 = vpop.f32.mrf.mxu1 }
 0x1cf   : > { %2165 = vst.msk [vmem:[#allocation2 + $0x30] sm:$0xff] %vm2158_vm1, %v2100_v12  ;;  %v1867_v19 = vadd.f32 %v1866_v16, %v1577_v13  ;;  %v1579_v20 = vpop.f32.mrf.mxu0  ;;  %v506_v13 = vld [vmem:[#allocation2 + $0x70] sm:$0xff] }
 0x1d0   : > { %v1868_v22 = vpop.f32.mrf.mxu1  ;;  %v507_v20 = vld [vmem:[#allocation2 + $0x78] sm:$0xff] }
 0x1d1   : > { %v2101_v23 = vadd.f32 %v1867_v19, %v499_v15  ;;  %v1582_v24 = vpop.f32.mrf.mxu0  ;;  %1773 = vmatmul.mubr.bf16.gmra.mxu0 %v4569_v14 }
 0x1d2   : > { %v1871_v26 = vpop.f32.mrf.mxu1  ;;  %2062 = vmatmul.mubr.bf16.gmra.mxu1 %v4572_v17  ;;  %1780 = vmatprep.mubr.bf16.mxu0 %v4577_v18 }
 0x1d3   : > { %2166 = vst.msk [vmem:[#allocation2 + $0x38] sm:$0xff] %vm2158_vm1, %v2101_v23  ;;  %v1872_v27 = vadd.f32 %v1871_v26, %v1582_v24  ;;  %v1584_v28 = vpop.f32.mrf.mxu0  ;;  %2069 = vmatprep.mubr.bf16.mxu1 %v4580_v21  ;;  %s3766_s11 = sshll.u32 (!%p3765_p8), %s6111_s10, 9 }
 0x1d4   : > { %v1873_v29 = vpop.f32.mrf.mxu1  ;;  %s2228_s9 = sshra.s32 (!%p3765_p8), %s3766_s11, 3 }
 0x1d5   : > { %v2102_v30 = vadd.f32 %v1872_v27, %v500_v25  ;;  %v1585_v31 = vpop.f32.mrf.mxu0  ;;  %v508_v27 = vld [vmem:[#allocation2 + $0x80] sm:$0xff]  ;;  %s3767_s1 = sshll.u32 (!%p3765_p8), %s2228_s9, 2 }
 0x1d6   : > { %v1874_v34 = vpop.f32.mrf.mxu1  ;;  %s5510_s24 = scalar_lea.vmem (!%p3765_p8), %s6112_s28, %s3767_s1 }
 0x1d7   : > { %2167 = vst.msk [vmem:[#allocation2 + $0x40] sm:$0xff] %vm2158_vm1, %v2102_v30  ;;  %v1875_v37 = vadd.f32 %v1874_v34, %v1585_v31  ;;  %v1587_v38 = vpop.f32.mrf.mxu0  ;;  %v509_v34 = vld [vmem:[#allocation2 + $0x88] sm:$0xff] }
 0x1d8   : > { %v1876_v40 = vpop.f32.mrf.mxu1 }
 0x1d9   : > { %v2103_v41 = vadd.f32 %v1875_v37, %v501_v33  ;;  %v1590_v42 = vpop.f32.mrf.mxu0  ;;  %1781 = vmatmul.mubr.bf16.gmra.mxu0 %v4575_v32 }
 0x1da   : > { %v1879_v44 = vpop.f32.mrf.mxu1  ;;  %2070 = vmatmul.mubr.bf16.gmra.mxu1 %v4578_v35  ;;  %1788 = vmatprep.mubr.bf16.mxu0 %v4583_v36 }
 0x1db   : > { %2168 = vst.msk [vmem:[#allocation2 + $0x48] sm:$0xff] %vm2158_vm1, %v2103_v41  ;;  %v1880_v45 = vadd.f32 %v1879_v44, %v1590_v42  ;;  %v1592_v46 = vpop.f32.mrf.mxu0  ;;  %2077 = vmatprep.mubr.bf16.mxu1 %v4586_v39  ;;  %v510_v41 = vld [vmem:[#allocation2 + $0x90] sm:$0xff] }
 0x1dc   : > { %v1881_v47 = vpop.f32.mrf.mxu1 }
 0x1dd   : > { %v2104_v48 = vadd.f32 %v1880_v45, %v502_v43  ;;  %v1593_v49 = vpop.f32.mrf.mxu0 }
 0x1de   : > { %v1882_v52 = vpop.f32.mrf.mxu1 }
 0x1df   : > { %2169 = vst.msk [vmem:[#allocation2 + $0x50] sm:$0xff] %vm2158_vm1, %v2104_v48  ;;  %v1883_v55 = vadd.f32 %v1882_v52, %v1593_v49  ;;  %v1595_v56 = vpop.f32.mrf.mxu0  ;;  %v511_v48 = vld [vmem:[#allocation2 + $0x98] sm:$0xff] }
 0x1e0   : > { %v1884_v58 = vpop.f32.mrf.mxu1 }
 0x1e1   : > { %v2105_v59 = vadd.f32 %v1883_v55, %v503_v51  ;;  %v1598_v60 = vpop.f32.mrf.mxu0  ;;  %1789 = vmatmul.mubr.bf16.gmra.mxu0 %v4581_v50  ;;  %v512_v55 = vld [vmem:[#allocation2 + $0xa0] sm:$0xff] }
 0x1e2   : > { %v1887_v62 = vpop.f32.mrf.mxu1  ;;  %2078 = vmatmul.mubr.bf16.gmra.mxu1 %v4584_v53  ;;  %1796 = vmatprep.mubr.bf16.mxu0 %v4589_v54 }
 0x1e3   : > { %2170 = vst.msk [vmem:[#allocation2 + $0x58] sm:$0xff] %vm2158_vm1, %v2105_v59  ;;  %v1888_v63 = vadd.f32 %v1887_v62, %v1598_v60  ;;  %v1600_v0 = vpop.f32.mrf.mxu0  ;;  %2085 = vmatprep.mubr.bf16.mxu1 %v4592_v57  ;;  %v513_v62 = vld [vmem:[#allocation2 + $0xa8] sm:$0xff] }
 0x1e4   : > { %v1889_v1 = vpop.f32.mrf.mxu1 }
 0x1e5   : > { %v2106_v2 = vadd.f32 %v1888_v63, %v504_v61  ;;  %v1601_v3 = vpop.f32.mrf.mxu0 }
 0x1e6   : > { %v1890_v6 = vpop.f32.mrf.mxu1 }
 0x1e7   : > { %2171 = vst.msk [vmem:[#allocation2 + $0x60] sm:$0xff] %vm2158_vm1, %v2106_v2  ;;  %v1891_v8 = vadd.f32 %v1890_v6, %v1601_v3  ;;  %v1603_v9 = vpop.f32.mrf.mxu0 }
 0x1e8   : > { %v1892_v10 = vpop.f32.mrf.mxu1 }
 0x1e9   : > { %v2107_v11 = vadd.f32 %v1891_v8, %v505_v5  ;;  %v1606_v12 = vpop.f32.mrf.mxu0  ;;  %1797 = vmatmul.mubr.bf16.gmra.mxu0 %v4587_v4  ;;  %v514_v5 = vld [vmem:[#allocation2 + $0xb0] sm:$0xff] }
 0x1ea   : > { %v1895_v14 = vpop.f32.mrf.mxu1  ;;  %2086 = vmatmul.mubr.bf16.gmra.mxu1 %v4590_v7 }
 0x1eb   : > { %2172 = vst.msk [vmem:[#allocation2 + $0x68] sm:$0xff] %vm2158_vm1, %v2107_v11  ;;  %v1896_v15 = vadd.f32 %v1895_v14, %v1606_v12  ;;  %v1608_v16 = vpop.f32.mrf.mxu0  ;;  %v515_v12 = vld [vmem:[#allocation2 + $0xb8] sm:$0xff] }
 0x1ec   : > { %v1897_v17 = vpop.f32.mrf.mxu1 }
 0x1ed   : > { %v2108_v18 = vadd.f32 %v1896_v15, %v506_v13  ;;  %v1609_v19 = vpop.f32.mrf.mxu0 }
 0x1ee   : > { %v1898_v21 = vpop.f32.mrf.mxu1 }
 0x1ef   : > { %2173 = vst.msk [vmem:[#allocation2 + $0x70] sm:$0xff] %vm2158_vm1, %v2108_v18  ;;  %v1899_v22 = vadd.f32 %v1898_v21, %v1609_v19  ;;  %v1611_v23 = vpop.f32.mrf.mxu0  ;;  %v516_v19 = vld [vmem:[#allocation2 + $0xc0] sm:$0xff] }
 0x1f0   : > { %v1900_v24 = vpop.f32.mrf.mxu1 }
 0x1f1   : > { %v2109_v25 = vadd.f32 %v1899_v22, %v507_v20  ;;  %v1614_v26 = vpop.f32.mrf.mxu0 }
 0x1f2   : > { %v1903_v28 = vpop.f32.mrf.mxu1 }
 0x1f3   : > { %2174 = vst.msk [vmem:[#allocation2 + $0x78] sm:$0xff] %vm2158_vm1, %v2109_v25  ;;  %v1904_v29 = vadd.f32 %v1903_v28, %v1614_v26  ;;  %v1616_v30 = vpop.f32.mrf.mxu0  ;;  %v517_v26 = vld [vmem:[#allocation2 + $0xc8] sm:$0xff] }
 0x1f4   : > { %v1905_v31 = vpop.f32.mrf.mxu1 }
 0x1f5   : > { %v2110_v32 = vadd.f32 %v1904_v29, %v508_v27  ;;  %v1617_v33 = vpop.f32.mrf.mxu0 }
 0x1f6   : > { %v1906_v35 = vpop.f32.mrf.mxu1 }
 0x1f7   : > { %2175 = vst.msk [vmem:[#allocation2 + $0x80] sm:$0xff] %vm2158_vm1, %v2110_v32  ;;  %v1907_v36 = vadd.f32 %v1906_v35, %v1617_v33  ;;  %v1619_v37 = vpop.f32.mrf.mxu0  ;;  %v518_v33 = vld [vmem:[#allocation2 + $0xd0] sm:$0xff] }
 0x1f8   : > { %v1908_v38 = vpop.f32.mrf.mxu1 }
 0x1f9   : > { %v2111_v39 = vadd.f32 %v1907_v36, %v509_v34  ;;  %v1622_v40 = vpop.f32.mrf.mxu0 }
 0x1fa   : > { %v1911_v42 = vpop.f32.mrf.mxu1 }
 0x1fb   : > { %2176 = vst.msk [vmem:[#allocation2 + $0x88] sm:$0xff] %vm2158_vm1, %v2111_v39  ;;  %v1912_v43 = vadd.f32 %v1911_v42, %v1622_v40  ;;  %v1624_v44 = vpop.f32.mrf.mxu0  ;;  %v519_v40 = vld [vmem:[#allocation2 + $0xd8] sm:$0xff] }
 0x1fc   : > { %v1913_v45 = vpop.f32.mrf.mxu1 }
 0x1fd   : > { %v2112_v46 = vadd.f32 %v1912_v43, %v510_v41  ;;  %v1625_v47 = vpop.f32.mrf.mxu0 }
 0x1fe   : > { %v1914_v49 = vpop.f32.mrf.mxu1 }
 0x1ff   : > { %2177 = vst.msk [vmem:[#allocation2 + $0x90] sm:$0xff] %vm2158_vm1, %v2112_v46  ;;  %v1915_v50 = vadd.f32 %v1914_v49, %v1625_v47  ;;  %v1627_v51 = vpop.f32.mrf.mxu0  ;;  %v520_v47 = vld [vmem:[#allocation2 + $0xe0] sm:$0xff] }
 0x200   : > { %v1916_v52 = vpop.f32.mrf.mxu1 }
 0x201   : > { %v2113_v53 = vadd.f32 %v1915_v50, %v511_v48  ;;  %v1630_v54 = vpop.f32.mrf.mxu0 }
 0x202   : > { %v1919_v56 = vpop.f32.mrf.mxu1 }
 0x203   : > { %2178 = vst.msk [vmem:[#allocation2 + $0x98] sm:$0xff] %vm2158_vm1, %v2113_v53  ;;  %v1920_v57 = vadd.f32 %v1919_v56, %v1630_v54  ;;  %v1632_v58 = vpop.f32.mrf.mxu0  ;;  %v521_v54 = vld [vmem:[#allocation2 + $0xe8] sm:$0xff] }
 0x204   : > { %v1921_v59 = vpop.f32.mrf.mxu1 }
 0x205   : > { %v2114_v60 = vadd.f32 %v1920_v57, %v512_v55  ;;  %v1633_v61 = vpop.f32.mrf.mxu0 }
 0x206   : > { %v1922_v63 = vpop.f32.mrf.mxu1 }
 0x207   : > { %2179 = vst.msk [vmem:[#allocation2 + $0xa0] sm:$0xff] %vm2158_vm1, %v2114_v60  ;;  %v1923_v0 = vadd.f32 %v1922_v63, %v1633_v61  ;;  %v1635_v1 = vpop.f32.mrf.mxu0  ;;  %v522_v61 = vld [vmem:[#allocation2 + $0xf0] sm:$0xff] }
 0x208   : > { %v1924_v2 = vpop.f32.mrf.mxu1 }
 0x209   : > { %v2115_v3 = vadd.f32 %v1923_v0, %v513_v62  ;;  %v1638_v4 = vpop.f32.mrf.mxu0 }
 0x20a   : > { %v1927_v6 = vpop.f32.mrf.mxu1 }
 0x20b   : > { %2180 = vst.msk [vmem:[#allocation2 + $0xa8] sm:$0xff] %vm2158_vm1, %v2115_v3  ;;  %v1928_v7 = vadd.f32 %v1927_v6, %v1638_v4  ;;  %v1640_v8 = vpop.f32.mrf.mxu0  ;;  %v523_v4 = vld [vmem:[#allocation2 + $0xf8] sm:$0xff] }
 0x20c   : > { %v1929_v9 = vpop.f32.mrf.mxu1 }
 0x20d   : > { %v2116_v10 = vadd.f32 %v1928_v7, %v514_v5  ;;  %v1641_v11 = vpop.f32.mrf.mxu0 }
 0x20e   : > { %v1930_v13 = vpop.f32.mrf.mxu1 }
 0x20f   : > { %2181 = vst.msk [vmem:[#allocation2 + $0xb0] sm:$0xff] %vm2158_vm1, %v2116_v10  ;;  %v1931_v14 = vadd.f32 %v1930_v13, %v1641_v11  ;;  %v1643_v15 = vpop.f32.mrf.mxu0  ;;  %v524_v11 = vld [vmem:[#allocation2 + $0x100] sm:$0xff] }
 0x210   : > { %v1932_v16 = vpop.f32.mrf.mxu1 }
 0x211   : > { %v2117_v17 = vadd.f32 %v1931_v14, %v515_v12  ;;  %v1646_v18 = vpop.f32.mrf.mxu0 }
 0x212   : > { %v1935_v20 = vpop.f32.mrf.mxu1 }
 0x213   : > { %2182 = vst.msk [vmem:[#allocation2 + $0xb8] sm:$0xff] %vm2158_vm1, %v2117_v17  ;;  %v1936_v21 = vadd.f32 %v1935_v20, %v1646_v18  ;;  %v1648_v22 = vpop.f32.mrf.mxu0  ;;  %v525_v18 = vld [vmem:[#allocation2 + $0x108] sm:$0xff] }
 0x214   : > { %v1937_v23 = vpop.f32.mrf.mxu1 }
 0x215   : > { %v2118_v24 = vadd.f32 %v1936_v21, %v516_v19  ;;  %v1649_v25 = vpop.f32.mrf.mxu0 }
 0x216   : > { %v1938_v27 = vpop.f32.mrf.mxu1 }
 0x217   : > { %2183 = vst.msk [vmem:[#allocation2 + $0xc0] sm:$0xff] %vm2158_vm1, %v2118_v24  ;;  %v1939_v28 = vadd.f32 %v1938_v27, %v1649_v25  ;;  %v1651_v29 = vpop.f32.mrf.mxu0  ;;  %v526_v25 = vld [vmem:[#allocation2 + $0x110] sm:$0xff] }
 0x218   : > { %v1940_v30 = vpop.f32.mrf.mxu1 }
 0x219   : > { %v2119_v31 = vadd.f32 %v1939_v28, %v517_v26  ;;  %v1654_v32 = vpop.f32.mrf.mxu0 }
 0x21a   : > { %v1943_v34 = vpop.f32.mrf.mxu1 }
 0x21b   : > { %2184 = vst.msk [vmem:[#allocation2 + $0xc8] sm:$0xff] %vm2158_vm1, %v2119_v31  ;;  %v1944_v35 = vadd.f32 %v1943_v34, %v1654_v32  ;;  %v1656_v36 = vpop.f32.mrf.mxu0  ;;  %v527_v32 = vld [vmem:[#allocation2 + $0x118] sm:$0xff] }
 0x21c   : > { %v1945_v37 = vpop.f32.mrf.mxu1 }
 0x21d   : > { %v2120_v38 = vadd.f32 %v1944_v35, %v518_v33  ;;  %v1657_v39 = vpop.f32.mrf.mxu0 }
 0x21e   : > { %v1946_v41 = vpop.f32.mrf.mxu1 }
 0x21f   : > { %2185 = vst.msk [vmem:[#allocation2 + $0xd0] sm:$0xff] %vm2158_vm1, %v2120_v38  ;;  %v1947_v42 = vadd.f32 %v1946_v41, %v1657_v39  ;;  %v1659_v43 = vpop.f32.mrf.mxu0  ;;  %v528_v39 = vld [vmem:[#allocation2 + $0x120] sm:$0xff] }
 0x220   : > { %v1948_v44 = vpop.f32.mrf.mxu1 }
 0x221   : > { %v2121_v45 = vadd.f32 %v1947_v42, %v519_v40  ;;  %v1662_v46 = vpop.f32.mrf.mxu0 }
 0x222   : > { %v1951_v48 = vpop.f32.mrf.mxu1 }
 0x223   : > { %2186 = vst.msk [vmem:[#allocation2 + $0xd8] sm:$0xff] %vm2158_vm1, %v2121_v45  ;;  %v1952_v49 = vadd.f32 %v1951_v48, %v1662_v46  ;;  %v1664_v50 = vpop.f32.mrf.mxu0  ;;  %v529_v46 = vld [vmem:[#allocation2 + $0x128] sm:$0xff] }
 0x224   : > { %v1953_v51 = vpop.f32.mrf.mxu1 }
 0x225   : > { %v2122_v52 = vadd.f32 %v1952_v49, %v520_v47  ;;  %v1665_v53 = vpop.f32.mrf.mxu0 }
 0x226   : > { %v1954_v55 = vpop.f32.mrf.mxu1 }
 0x227   : > { %2187 = vst.msk [vmem:[#allocation2 + $0xe0] sm:$0xff] %vm2158_vm1, %v2122_v52  ;;  %v1955_v56 = vadd.f32 %v1954_v55, %v1665_v53  ;;  %v1667_v57 = vpop.f32.mrf.mxu0  ;;  %v530_v53 = vld [vmem:[#allocation2 + $0x130] sm:$0xff] }
 0x228   : > { %v1956_v58 = vpop.f32.mrf.mxu1 }
 0x229   : > { %v2123_v59 = vadd.f32 %v1955_v56, %v521_v54  ;;  %v1670_v60 = vpop.f32.mrf.mxu0 }
 0x22a   : > { %v1959_v62 = vpop.f32.mrf.mxu1 }
 0x22b   : > { %2188 = vst.msk [vmem:[#allocation2 + $0xe8] sm:$0xff] %vm2158_vm1, %v2123_v59  ;;  %v1960_v63 = vadd.f32 %v1959_v62, %v1670_v60  ;;  %v1672_v0 = vpop.f32.mrf.mxu0  ;;  %v531_v60 = vld [vmem:[#allocation2 + $0x138] sm:$0xff] }
 0x22c   : > { %v1961_v1 = vpop.f32.mrf.mxu1 }
 0x22d   : > { %v2124_v2 = vadd.f32 %v1960_v63, %v522_v61  ;;  %v1673_v3 = vpop.f32.mrf.mxu0 }
 0x22e   : > { %v1962_v5 = vpop.f32.mrf.mxu1 }
 0x22f   : > { %2189 = vst.msk [vmem:[#allocation2 + $0xf0] sm:$0xff] %vm2158_vm1, %v2124_v2  ;;  %v1963_v6 = vadd.f32 %v1962_v5, %v1673_v3  ;;  %v1675_v7 = vpop.f32.mrf.mxu0  ;;  %v532_v3 = vld [vmem:[#allocation2 + $0x140] sm:$0xff] }
 0x230   : > { %v1964_v8 = vpop.f32.mrf.mxu1 }
 0x231   : > { %v2125_v9 = vadd.f32 %v1963_v6, %v523_v4  ;;  %v1678_v10 = vpop.f32.mrf.mxu0 }
 0x232   : > { %v1967_v12 = vpop.f32.mrf.mxu1 }
 0x233   : > { %2190 = vst.msk [vmem:[#allocation2 + $0xf8] sm:$0xff] %vm2158_vm1, %v2125_v9  ;;  %v1968_v13 = vadd.f32 %v1967_v12, %v1678_v10  ;;  %v1680_v14 = vpop.f32.mrf.mxu0  ;;  %v533_v10 = vld [vmem:[#allocation2 + $0x148] sm:$0xff] }
 0x234   : > { %v1969_v15 = vpop.f32.mrf.mxu1 }
 0x235   : > { %v2126_v16 = vadd.f32 %v1968_v13, %v524_v11  ;;  %v1681_v17 = vpop.f32.mrf.mxu0 }
 0x236   : > { %v1970_v19 = vpop.f32.mrf.mxu1 }
 0x237   : > { %2191 = vst.msk [vmem:[#allocation2 + $0x100] sm:$0xff] %vm2158_vm1, %v2126_v16  ;;  %v1971_v20 = vadd.f32 %v1970_v19, %v1681_v17  ;;  %v1683_v21 = vpop.f32.mrf.mxu0  ;;  %v534_v17 = vld [vmem:[#allocation2 + $0x150] sm:$0xff] }
 0x238   : > { %v1972_v22 = vpop.f32.mrf.mxu1 }
 0x239   : > { %v2127_v23 = vadd.f32 %v1971_v20, %v525_v18  ;;  %v1686_v24 = vpop.f32.mrf.mxu0 }
 0x23a   : > { %v1975_v26 = vpop.f32.mrf.mxu1 }
 0x23b   : > { %2192 = vst.msk [vmem:[#allocation2 + $0x108] sm:$0xff] %vm2158_vm1, %v2127_v23  ;;  %v1976_v27 = vadd.f32 %v1975_v26, %v1686_v24  ;;  %v1688_v28 = vpop.f32.mrf.mxu0  ;;  %v535_v24 = vld [vmem:[#allocation2 + $0x158] sm:$0xff] }
 0x23c   : > { %v1977_v29 = vpop.f32.mrf.mxu1 }
 0x23d   : > { %v2128_v30 = vadd.f32 %v1976_v27, %v526_v25  ;;  %v1689_v31 = vpop.f32.mrf.mxu0 }
 0x23e   : > { %v1978_v33 = vpop.f32.mrf.mxu1 }
 0x23f   : > { %2193 = vst.msk [vmem:[#allocation2 + $0x110] sm:$0xff] %vm2158_vm1, %v2128_v30  ;;  %v1979_v34 = vadd.f32 %v1978_v33, %v1689_v31  ;;  %v1691_v35 = vpop.f32.mrf.mxu0  ;;  %v536_v31 = vld [vmem:[#allocation2 + $0x160] sm:$0xff] }
 0x240   : > { %v1980_v36 = vpop.f32.mrf.mxu1 }
 0x241   : > { %v2129_v37 = vadd.f32 %v1979_v34, %v527_v32  ;;  %v1694_v38 = vpop.f32.mrf.mxu0 }
 0x242   : > { %v1983_v40 = vpop.f32.mrf.mxu1 }
 0x243   : > { %2194 = vst.msk [vmem:[#allocation2 + $0x118] sm:$0xff] %vm2158_vm1, %v2129_v37  ;;  %v1984_v41 = vadd.f32 %v1983_v40, %v1694_v38  ;;  %v1696_v42 = vpop.f32.mrf.mxu0  ;;  %v537_v38 = vld [vmem:[#allocation2 + $0x168] sm:$0xff] }
 0x244   : > { %v1985_v43 = vpop.f32.mrf.mxu1 }
 0x245   : > { %v2130_v44 = vadd.f32 %v1984_v41, %v528_v39  ;;  %v1697_v45 = vpop.f32.mrf.mxu0 }
 0x246   : > { %v1986_v47 = vpop.f32.mrf.mxu1 }
 0x247   : > { %2195 = vst.msk [vmem:[#allocation2 + $0x120] sm:$0xff] %vm2158_vm1, %v2130_v44  ;;  %v1987_v48 = vadd.f32 %v1986_v47, %v1697_v45  ;;  %v1699_v49 = vpop.f32.mrf.mxu0  ;;  %v538_v45 = vld [vmem:[#allocation2 + $0x170] sm:$0xff] }
 0x248   : > { %v1988_v50 = vpop.f32.mrf.mxu1 }
 0x249   : > { %v2131_v51 = vadd.f32 %v1987_v48, %v529_v46  ;;  %v1702_v52 = vpop.f32.mrf.mxu0 }
 0x24a   : > { %v1991_v54 = vpop.f32.mrf.mxu1 }
 0x24b   : > { %2196 = vst.msk [vmem:[#allocation2 + $0x128] sm:$0xff] %vm2158_vm1, %v2131_v51  ;;  %v1992_v55 = vadd.f32 %v1991_v54, %v1702_v52  ;;  %v1704_v56 = vpop.f32.mrf.mxu0  ;;  %v539_v52 = vld [vmem:[#allocation2 + $0x178] sm:$0xff] }
 0x24c   : > { %v1993_v57 = vpop.f32.mrf.mxu1 }
 0x24d   : > { %v2132_v58 = vadd.f32 %v1992_v55, %v530_v53  ;;  %v1705_v59 = vpop.f32.mrf.mxu0 }
 0x24e   : > { %v1994_v61 = vpop.f32.mrf.mxu1 }
 0x24f   : > { %2197 = vst.msk [vmem:[#allocation2 + $0x130] sm:$0xff] %vm2158_vm1, %v2132_v58  ;;  %v1995_v62 = vadd.f32 %v1994_v61, %v1705_v59  ;;  %v1707_v63 = vpop.f32.mrf.mxu0  ;;  %v540_v59 = vld [vmem:[#allocation2 + $0x180] sm:$0xff] }
 0x250   : > { %v1996_v0 = vpop.f32.mrf.mxu1 }
 0x251   : > { %v2133_v1 = vadd.f32 %v1995_v62, %v531_v60  ;;  %v1710_v2 = vpop.f32.mrf.mxu0 }
 0x252   : > { %v1999_v4 = vpop.f32.mrf.mxu1 }
 0x253   : > { %2198 = vst.msk [vmem:[#allocation2 + $0x138] sm:$0xff] %vm2158_vm1, %v2133_v1  ;;  %v2000_v5 = vadd.f32 %v1999_v4, %v1710_v2  ;;  %v1712_v6 = vpop.f32.mrf.mxu0  ;;  %v541_v2 = vld [vmem:[#allocation2 + $0x188] sm:$0xff] }
 0x254   : > { %v2001_v7 = vpop.f32.mrf.mxu1 }
 0x255   : > { %v2134_v8 = vadd.f32 %v2000_v5, %v532_v3  ;;  %v1713_v9 = vpop.f32.mrf.mxu0 }
 0x256   : > { %v2002_v11 = vpop.f32.mrf.mxu1 }
 0x257   : > { %2199 = vst.msk [vmem:[#allocation2 + $0x140] sm:$0xff] %vm2158_vm1, %v2134_v8  ;;  %v2003_v12 = vadd.f32 %v2002_v11, %v1713_v9  ;;  %v1715_v13 = vpop.f32.mrf.mxu0  ;;  %v542_v9 = vld [vmem:[#allocation2 + $0x190] sm:$0xff] }
 0x258   : > { %v2004_v14 = vpop.f32.mrf.mxu1 }
 0x259   : > { %v2135_v15 = vadd.f32 %v2003_v12, %v533_v10  ;;  %v1718_v16 = vpop.f32.mrf.mxu0 }
 0x25a   : > { %v2007_v18 = vpop.f32.mrf.mxu1 }
 0x25b   : > { %2200 = vst.msk [vmem:[#allocation2 + $0x148] sm:$0xff] %vm2158_vm1, %v2135_v15  ;;  %v2008_v19 = vadd.f32 %v2007_v18, %v1718_v16  ;;  %v1720_v20 = vpop.f32.mrf.mxu0  ;;  %v543_v16 = vld [vmem:[#allocation2 + $0x198] sm:$0xff] }
 0x25c   : > { %v2009_v21 = vpop.f32.mrf.mxu1 }
 0x25d   : > { %v2136_v22 = vadd.f32 %v2008_v19, %v534_v17  ;;  %v1721_v23 = vpop.f32.mrf.mxu0 }
 0x25e   : > { %v2010_v25 = vpop.f32.mrf.mxu1 }
 0x25f   : > { %2201 = vst.msk [vmem:[#allocation2 + $0x150] sm:$0xff] %vm2158_vm1, %v2136_v22  ;;  %v2011_v26 = vadd.f32 %v2010_v25, %v1721_v23  ;;  %v1723_v27 = vpop.f32.mrf.mxu0  ;;  %v544_v23 = vld [vmem:[#allocation2 + $0x1a0] sm:$0xff] }
 0x260   : > { %v2012_v28 = vpop.f32.mrf.mxu1 }
 0x261   : > { %v2137_v29 = vadd.f32 %v2011_v26, %v535_v24  ;;  %v1726_v30 = vpop.f32.mrf.mxu0 }
 0x262   : > { %v2015_v32 = vpop.f32.mrf.mxu1 }
 0x263   : > { %2202 = vst.msk [vmem:[#allocation2 + $0x158] sm:$0xff] %vm2158_vm1, %v2137_v29  ;;  %v2016_v33 = vadd.f32 %v2015_v32, %v1726_v30  ;;  %v1728_v34 = vpop.f32.mrf.mxu0  ;;  %v545_v30 = vld [vmem:[#allocation2 + $0x1a8] sm:$0xff] }
 0x264   : > { %v2017_v35 = vpop.f32.mrf.mxu1 }
 0x265   : > { %v2138_v36 = vadd.f32 %v2016_v33, %v536_v31  ;;  %v1729_v37 = vpop.f32.mrf.mxu0 }
 0x266   : > { %v2018_v39 = vpop.f32.mrf.mxu1 }
 0x267   : > { %2203 = vst.msk [vmem:[#allocation2 + $0x160] sm:$0xff] %vm2158_vm1, %v2138_v36  ;;  %v2019_v40 = vadd.f32 %v2018_v39, %v1729_v37  ;;  %v1731_v41 = vpop.f32.mrf.mxu0  ;;  %v546_v37 = vld [vmem:[#allocation2 + $0x1b0] sm:$0xff] }
 0x268   : > { %v2020_v42 = vpop.f32.mrf.mxu1 }
 0x269   : > { %v2139_v43 = vadd.f32 %v2019_v40, %v537_v38  ;;  %v1734_v44 = vpop.f32.mrf.mxu0 }
 0x26a   : > { %v2023_v46 = vpop.f32.mrf.mxu1 }
 0x26b   : > { %2204 = vst.msk [vmem:[#allocation2 + $0x168] sm:$0xff] %vm2158_vm1, %v2139_v43  ;;  %v2024_v47 = vadd.f32 %v2023_v46, %v1734_v44  ;;  %v1736_v48 = vpop.f32.mrf.mxu0  ;;  %v547_v44 = vld [vmem:[#allocation2 + $0x1b8] sm:$0xff] }
 0x26c   : > { %v2025_v49 = vpop.f32.mrf.mxu1 }
 0x26d   : > { %v2140_v50 = vadd.f32 %v2024_v47, %v538_v45  ;;  %v1737_v51 = vpop.f32.mrf.mxu0 }
 0x26e   : > { %v2026_v53 = vpop.f32.mrf.mxu1 }
 0x26f   : > { %2205 = vst.msk [vmem:[#allocation2 + $0x170] sm:$0xff] %vm2158_vm1, %v2140_v50  ;;  %v2027_v54 = vadd.f32 %v2026_v53, %v1737_v51  ;;  %v1739_v55 = vpop.f32.mrf.mxu0  ;;  %v548_v51 = vld [vmem:[#allocation2 + $0x1c0] sm:$0xff] }
 0x270   : > { %v2028_v56 = vpop.f32.mrf.mxu1 }
 0x271   : > { %v2141_v57 = vadd.f32 %v2027_v54, %v539_v52  ;;  %v1742_v58 = vpop.f32.mrf.mxu0 }
 0x272   : > { %v2031_v60 = vpop.f32.mrf.mxu1 }
 0x273   : > { %2206 = vst.msk [vmem:[#allocation2 + $0x178] sm:$0xff] %vm2158_vm1, %v2141_v57  ;;  %v2032_v61 = vadd.f32 %v2031_v60, %v1742_v58  ;;  %v1744_v62 = vpop.f32.mrf.mxu0  ;;  %v549_v58 = vld [vmem:[#allocation2 + $0x1c8] sm:$0xff] }
 0x274   : > { %v2033_v63 = vpop.f32.mrf.mxu1 }
 0x275   : > { %v2142_v0 = vadd.f32 %v2032_v61, %v540_v59  ;;  %v1745_v1 = vpop.f32.mrf.mxu0 }
 0x276   : > { %v2034_v3 = vpop.f32.mrf.mxu1 }
 0x277   : > { %2207 = vst.msk [vmem:[#allocation2 + $0x180] sm:$0xff] %vm2158_vm1, %v2142_v0  ;;  %v2035_v4 = vadd.f32 %v2034_v3, %v1745_v1  ;;  %v1747_v5 = vpop.f32.mrf.mxu0  ;;  %v550_v1 = vld [vmem:[#allocation2 + $0x1d0] sm:$0xff] }
 0x278   : > { %v2036_v6 = vpop.f32.mrf.mxu1 }
 0x279   : > { %v2143_v7 = vadd.f32 %v2035_v4, %v541_v2  ;;  %v1750_v8 = vpop.f32.mrf.mxu0 }
 0x27a   : > { %v2039_v10 = vpop.f32.mrf.mxu1 }
 0x27b   : > { %2208 = vst.msk [vmem:[#allocation2 + $0x188] sm:$0xff] %vm2158_vm1, %v2143_v7  ;;  %v2040_v11 = vadd.f32 %v2039_v10, %v1750_v8  ;;  %v1752_v12 = vpop.f32.mrf.mxu0  ;;  %v551_v8 = vld [vmem:[#allocation2 + $0x1d8] sm:$0xff] }
 0x27c   : > { %v2041_v13 = vpop.f32.mrf.mxu1 }
 0x27d   : > { %v2144_v14 = vadd.f32 %v2040_v11, %v542_v9  ;;  %v1753_v15 = vpop.f32.mrf.mxu0 }
 0x27e   : > { %v2042_v17 = vpop.f32.mrf.mxu1 }
 0x27f   : > { %2209 = vst.msk [vmem:[#allocation2 + $0x190] sm:$0xff] %vm2158_vm1, %v2144_v14  ;;  %v2043_v18 = vadd.f32 %v2042_v17, %v1753_v15  ;;  %v1755_v19 = vpop.f32.mrf.mxu0  ;;  %v552_v15 = vld [vmem:[#allocation2 + $0x1e0] sm:$0xff] }
 0x280   : > { %v2044_v20 = vpop.f32.mrf.mxu1 }
 0x281   : > { %v2145_v21 = vadd.f32 %v2043_v18, %v543_v16  ;;  %v1758_v22 = vpop.f32.mrf.mxu0 }
 0x282   : > { %v2047_v24 = vpop.f32.mrf.mxu1 }
 0x283   : > { %2210 = vst.msk [vmem:[#allocation2 + $0x198] sm:$0xff] %vm2158_vm1, %v2145_v21  ;;  %v2048_v25 = vadd.f32 %v2047_v24, %v1758_v22  ;;  %v1760_v26 = vpop.f32.mrf.mxu0  ;;  %v553_v22 = vld [vmem:[#allocation2 + $0x1e8] sm:$0xff] }
 0x284   : > { %v2049_v27 = vpop.f32.mrf.mxu1 }
 0x285   : > { %v2146_v28 = vadd.f32 %v2048_v25, %v544_v23  ;;  %v1761_v29 = vpop.f32.mrf.mxu0 }
 0x286   : > { %v2050_v31 = vpop.f32.mrf.mxu1 }
 0x287   : > { %2211 = vst.msk [vmem:[#allocation2 + $0x1a0] sm:$0xff] %vm2158_vm1, %v2146_v28  ;;  %v2051_v32 = vadd.f32 %v2050_v31, %v1761_v29  ;;  %v1763_v33 = vpop.f32.mrf.mxu0  ;;  %v554_v29 = vld [vmem:[#allocation2 + $0x1f0] sm:$0xff] }
 0x288   : > { %v2052_v34 = vpop.f32.mrf.mxu1 }
 0x289   : > { %v2147_v35 = vadd.f32 %v2051_v32, %v545_v30  ;;  %v1766_v36 = vpop.f32.mrf.mxu0 }
 0x28a   : > { %v2055_v38 = vpop.f32.mrf.mxu1 }
 0x28b   : > { %2212 = vst.msk [vmem:[#allocation2 + $0x1a8] sm:$0xff] %vm2158_vm1, %v2147_v35  ;;  %v2056_v39 = vadd.f32 %v2055_v38, %v1766_v36  ;;  %v1768_v40 = vpop.f32.mrf.mxu0  ;;  %v555_v36 = vld [vmem:[#allocation2 + $0x1f8] sm:$0xff] }
 0x28c   : > { %v2057_v41 = vpop.f32.mrf.mxu1 }
 0x28d   : > { %v2148_v42 = vadd.f32 %v2056_v39, %v546_v37  ;;  %v1769_v43 = vpop.f32.mrf.mxu0 }
 0x28e   : > { %v2058_v45 = vpop.f32.mrf.mxu1 }
 0x28f   : > { %2213 = vst.msk [vmem:[#allocation2 + $0x1b0] sm:$0xff] %vm2158_vm1, %v2148_v42  ;;  %v2059_v46 = vadd.f32 %v2058_v45, %v1769_v43  ;;  %v1771_v47 = vpop.f32.mrf.mxu0 }
 0x290   : > { %v2060_v48 = vpop.f32.mrf.mxu1 }
 0x291   : > { %v2149_v49 = vadd.f32 %v2059_v46, %v547_v44  ;;  %v1774_v50 = vpop.f32.mrf.mxu0 }
 0x292   : > { %v2063_v52 = vpop.f32.mrf.mxu1 }
 0x293   : > { %2214 = vst.msk [vmem:[#allocation2 + $0x1b8] sm:$0xff] %vm2158_vm1, %v2149_v49  ;;  %v2064_v53 = vadd.f32 %v2063_v52, %v1774_v50  ;;  %v1776_v54 = vpop.f32.mrf.mxu0 }
 0x294   : > { %v2065_v55 = vpop.f32.mrf.mxu1 }
 0x295   : > { %v2150_v56 = vadd.f32 %v2064_v53, %v548_v51  ;;  %v1777_v57 = vpop.f32.mrf.mxu0 }
 0x296   : > { %v2066_v59 = vpop.f32.mrf.mxu1 }
 0x297   : > { %2215 = vst.msk [vmem:[#allocation2 + $0x1c0] sm:$0xff] %vm2158_vm1, %v2150_v56  ;;  %v2067_v60 = vadd.f32 %v2066_v59, %v1777_v57  ;;  %v1779_v61 = vpop.f32.mrf.mxu0 }
 0x298   : > { %v2068_v62 = vpop.f32.mrf.mxu1 }
 0x299   : > { %v2151_v63 = vadd.f32 %v2067_v60, %v549_v58  ;;  %v1782_v0 = vpop.f32.mrf.mxu0 }
 0x29a   : > { %v2071_v2 = vpop.f32.mrf.mxu1 }
 0x29b   : > { %2216 = vst.msk [vmem:[#allocation2 + $0x1c8] sm:$0xff] %vm2158_vm1, %v2151_v63  ;;  %v2072_v3 = vadd.f32 %v2071_v2, %v1782_v0  ;;  %v1784_v4 = vpop.f32.mrf.mxu0 }
 0x29c   : > { %v2073_v5 = vpop.f32.mrf.mxu1 }
 0x29d   : > { %v2152_v6 = vadd.f32 %v2072_v3, %v550_v1  ;;  %v1785_v7 = vpop.f32.mrf.mxu0 }
 0x29e   : > { %v2074_v9 = vpop.f32.mrf.mxu1 }
 0x29f   : > { %2217 = vst.msk [vmem:[#allocation2 + $0x1d0] sm:$0xff] %vm2158_vm1, %v2152_v6  ;;  %v2075_v10 = vadd.f32 %v2074_v9, %v1785_v7  ;;  %v1787_v11 = vpop.f32.mrf.mxu0 }
 0x2a0   : > { %v2076_v12 = vpop.f32.mrf.mxu1 }
 0x2a1   : > { %v2153_v13 = vadd.f32 %v2075_v10, %v551_v8  ;;  %v1790_v14 = vpop.f32.mrf.mxu0 }
 0x2a2   : > { %v2079_v16 = vpop.f32.mrf.mxu1 }
 0x2a3   : > { %2218 = vst.msk [vmem:[#allocation2 + $0x1d8] sm:$0xff] %vm2158_vm1, %v2153_v13  ;;  %v2080_v17 = vadd.f32 %v2079_v16, %v1790_v14  ;;  %v1792_v18 = vpop.f32.mrf.mxu0 }
 0x2a4   : > { %v2081_v19 = vpop.f32.mrf.mxu1 }
 0x2a5   : > { %v2154_v20 = vadd.f32 %v2080_v17, %v552_v15  ;;  %v1793_v21 = vpop.f32.mrf.mxu0 }
 0x2a6   : > { %v2082_v23 = vpop.f32.mrf.mxu1 }
 0x2a7   : > { %2219 = vst.msk [vmem:[#allocation2 + $0x1e0] sm:$0xff] %vm2158_vm1, %v2154_v20  ;;  %v2083_v24 = vadd.f32 %v2082_v23, %v1793_v21  ;;  %v1795_v25 = vpop.f32.mrf.mxu0 }
 0x2a8   : > { %v2084_v26 = vpop.f32.mrf.mxu1 }
 0x2a9   : > { %v2155_v27 = vadd.f32 %v2083_v24, %v553_v22  ;;  %v1798_v28 = vpop.f32.mrf.mxu0 }
 0x2aa   : > { %v2087_v30 = vpop.f32.mrf.mxu1 }
 0x2ab   : > { %2220 = vst.msk [vmem:[#allocation2 + $0x1e8] sm:$0xff] %vm2158_vm1, %v2155_v27  ;;  %v2088_v31 = vadd.f32 %v2087_v30, %v1798_v28  ;;  %v1800_v32 = vpop.f32.mrf.mxu0 }
 0x2ac   : > { %v2089_v33 = vpop.f32.mrf.mxu1 }
 0x2ad   : > { %v2156_v34 = vadd.f32 %v2088_v31, %v554_v29  ;;  %v1801_v35 = vpop.f32.mrf.mxu0 }
 0x2ae   : > { %v2090_v37 = vpop.f32.mrf.mxu1 }
 0x2af   : > { %2221 = vst.msk [vmem:[#allocation2 + $0x1f0] sm:$0xff] %vm2158_vm1, %v2156_v34  ;;  %v2091_v38 = vadd.f32 %v2090_v37, %v1801_v35  ;;  %v1803_v39 = vpop.f32.mrf.mxu0  ;;  %2226 = sbr.rel (%p3765_p8) target bundleno = 1225 (0x4c9), region = 68 }
 0x2b0   : > { %v2092_v40 = vpop.f32.mrf.mxu1 }
 0x2b1   : > { %v2157_v41 = vadd.f32 %v2091_v38, %v555_v36 }
 0x2b3   : > { %2222 = vst.msk [vmem:[#allocation2 + $0x1f8] sm:$0xff] %vm2158_vm1, %v2157_v41 }
 0x2b4   : > { %v2624_v42 = vld [vmem:[%s6110_s8 + $0x8] sm:$0xff]  ;;  %v2623_v43 = vld [vmem:[%s6110_s8] sm:$0xff]  ;;  %v2298_v46 = vld [vmem:[#allocation2 + $0x10] sm:$0xff]  ;;  %vm3436_vm2 = vcmask 25600  }
 0x2b5   : > { %4134 = vmatprep.subr.mxu0 %v2624_v42  ;;  %4234 = vmatprep.subr.mxu1 %v2624_v42  ;;  %v2296_v44 = vld [vmem:[#allocation2] sm:$0xff]  ;;  %v2297_v45 = vld [vmem:[#allocation2 + $0x8] sm:$0xff]  ;;  %v2299_v47 = vld [vmem:[#allocation2 + $0x18] sm:$0xff] }
 0x2b6   : > { %4135 = vmatpush3.msra.mxu0 %v2624_v42  ;;  %4236 = vmatpush3.msra.mxu1 %v2624_v42  ;;  %v3840_v48 = vld [vmem:[%s5510_s24] sm:$0xff]   ;;  %v3967_v49 = vld [vmem:[%s5510_s24 + $0x8] sm:$0xff]   ;;  %v3968_v50 = vld [vmem:[%s5510_s24 + $0x10] sm:$0xff]  }
 0x2b7   : > { %4136 = vmatprep.subr.mxu0 %v2623_v43  ;;  %4235 = vmatprep.subr.mxu1 %v2623_v43  ;;  %v3841_v51 = vunpack.c.l.bf16 %v3840_v48  ;;  %v3842_v52 = vunpack.c.h.bf16 %v3840_v48  ;;  %v3845_v53 = vunpack.c.l.bf16 %v3967_v49  ;;  %v3846_v54 = vunpack.c.h.bf16 %v3967_v49  ;;  %v2300_v55 = vld [vmem:[#allocation2 + $0x20] sm:$0xff]  ;;  %v3969_v56 = vld [vmem:[%s5510_s24 + $0x18] sm:$0xff]   ;;  %v2301_v60 = vld [vmem:[#allocation2 + $0x28] sm:$0xff] }
 0x2b8   : > { %4137 = vmatpush3.msra.mxu0 %v2623_v43  ;;  %4237 = vmatpush3.msra.mxu1 %v2623_v43  ;;  %v5516_v57 = vld [vmem:[#allocation6] ss:$0 sm:$0xff]  ;;  %v3849_v58 = vunpack.c.l.bf16 %v3968_v50  ;;  %v3850_v59 = vunpack.c.h.bf16 %v3968_v50  ;;  %v3853_v61 = vunpack.c.l.bf16 %v3969_v56  ;;  %v3854_v62 = vunpack.c.h.bf16 %v3969_v56  ;;  %v2302_v3 = vld [vmem:[#allocation2 + $0x30] sm:$0xff]  ;;  %v2303_v4 = vld [vmem:[#allocation2 + $0x38] sm:$0xff] }
 0x2b9   : > { %v2424_v63 = vadd.f32 %v3841_v51, %v2296_v44  ;;  %v2425_v0 = vadd.f32 %v3842_v52, %v2297_v45  ;;  %v2426_v1 = vadd.f32 %v3845_v53, %v2298_v46  ;;  %v2427_v2 = vadd.f32 %v3846_v54, %v2299_v47  ;;  %v3970_v13 = vld [vmem:[%s5510_s24 + $0x20] sm:$0xff]   ;;  %v3971_v14 = vld [vmem:[%s5510_s24 + $0x28] sm:$0xff]   ;;  %v3972_v20 = vld [vmem:[%s5510_s24 + $0x30] sm:$0xff]  }
 0x2ba   : > { %v2428_v5 = vadd.f32 %v3849_v58, %v2300_v55  ;;  %v2429_v9 = vadd.f32 %v3850_v59, %v2301_v60  ;;  %v2430_v11 = vadd.f32 %v3853_v61, %v2302_v3  ;;  %v2431_v12 = vadd.f32 %v3854_v62, %v2303_v4  ;;  %v2304_v19 = vld [vmem:[#allocation2 + $0x40] sm:$0xff]  ;;  %v2305_v24 = vld [vmem:[#allocation2 + $0x48] sm:$0xff]  ;;  %v2306_v26 = vld [vmem:[#allocation2 + $0x50] sm:$0xff] }
 0x2bb   : > { %v2495_v6 = vadd.f32 %v5516_v57, %v2424_v63  ;;  %v2496_v7 = vadd.f32 %v5516_v57, %v2425_v0  ;;  %v2497_v8 = vadd.f32 %v5516_v57, %v2426_v1  ;;  %v2498_v10 = vadd.f32 %v5516_v57, %v2427_v2  ;;  %v3973_v27 = vld [vmem:[%s5510_s24 + $0x38] sm:$0xff]   ;;  %v2308_v39 = vld [vmem:[#allocation2 + $0x60] sm:$0xff]  ;;  %v2309_v40 = vld [vmem:[#allocation2 + $0x68] sm:$0xff] }
 0x2bc   : > { %v2499_v18 = vadd.f32 %v5516_v57, %v2428_v5  ;;  %v2500_v21 = vadd.f32 %v5516_v57, %v2429_v9  ;;  %v3857_v22 = vunpack.c.l.bf16 %v3970_v13  ;;  %v3858_v23 = vunpack.c.h.bf16 %v3970_v13  ;;  %v2307_v34 = vld [vmem:[#allocation2 + $0x58] sm:$0xff]  ;;  %v2310_v43 = vld [vmem:[#allocation2 + $0x70] sm:$0xff]  ;;  %v3974_v48 = vld [vmem:[%s5510_s24 + $0x40] sm:$0xff]  }
 0x2bd   : > { %v2559_v15 = vmax.f32 %v2495_v6, 0.0  ;;  %v2560_v16 = vmax.f32 %v2496_v7, 0.0  ;;  %v2561_v17 = vmax.f32 %v2497_v8, 0.0  ;;  %v3861_v25 = vunpack.c.l.bf16 %v3971_v14  ;;  %v2311_v44 = vld [vmem:[#allocation2 + $0x78] sm:$0xff]  ;;  %v3975_v49 = vld [vmem:[%s5510_s24 + $0x48] sm:$0xff]   ;;  %v3976_v54 = vld [vmem:[%s5510_s24 + $0x50] sm:$0xff]  }
 0x2be   : > { %v2562_v28 = vmax.f32 %v2498_v10, 0.0  ;;  %v2501_v29 = vadd.f32 %v5516_v57, %v2430_v11  ;;  %v5532_v30 = vadd.f32 %v5516_v57, %v2431_v12  ;;  %v3862_v31 = vunpack.c.h.bf16 %v3971_v14  ;;  %v3977_v55 = vld [vmem:[%s5510_s24 + $0x58] sm:$0xff]   ;;  %v2312_v62 = vld [vmem:[#allocation2 + $0x80] sm:$0xff]  ;;  %v2313_v0 = vld [vmem:[#allocation2 + $0x88] sm:$0xff] }
 0x2bf   : > { %4138 = vmatprep.mubr.msk.f32.mxu0 %vm2158_vm1, %v2559_v15  ;;  %v2563_v32 = vmax.f32 %v2499_v18, 0.0  ;;  %v2432_v33 = vadd.f32 %v3857_v22, %v2304_v19  ;;  %v3865_v35 = vunpack.c.l.bf16 %v3972_v20  ;;  %v3866_v36 = vunpack.c.h.bf16 %v3972_v20  ;;  %v2314_v4 = vld [vmem:[#allocation2 + $0x90] sm:$0xff]  ;;  %v2315_v5 = vld [vmem:[#allocation2 + $0x98] sm:$0xff]  ;;  %v2316_v7 = vld [vmem:[#allocation2 + $0xa0] sm:$0xff] }
 0x2c0   : > { %4139 = vmatmul.mubr.msk.f32.vlgmr.msra.gmra.mxu0 %vm2158_vm1, %v2560_v16  ;;  %v2433_v37 = vadd.f32 %v3858_v23, %v2305_v24  ;;  %v2434_v38 = vadd.f32 %v3861_v25, %v2306_v26  ;;  %v3869_v41 = vunpack.c.l.bf16 %v3973_v27  ;;  %v3870_v42 = vunpack.c.h.bf16 %v3973_v27  ;;  %v2317_v13 = vld [vmem:[#allocation2 + $0xa8] sm:$0xff]  ;;  %v2318_v14 = vld [vmem:[#allocation2 + $0xb0] sm:$0xff]  ;;  %v2319_v20 = vld [vmem:[#allocation2 + $0xb8] sm:$0xff] }
 0x2c1   : > { %4141 = vmatprep.mubr.msk.f32.mxu0 %vm2158_vm1, %v2561_v17  ;;  %v2564_v45 = vmax.f32 %v2500_v21, 0.0  ;;  %v2565_v46 = vmax.f32 %v2501_v29, 0.0  ;;  %v2435_v47 = vadd.f32 %v3862_v31, %v2307_v34  ;;  %v2566_v50 = vmax.f32 %v5532_v30, 0.0 }
 0x2c2   : > { %v2503_v51 = vadd.f32 %v5516_v57, %v2432_v33  ;;  %v2436_v52 = vadd.f32 %v3865_v35, %v2308_v39  ;;  %v2437_v53 = vadd.f32 %v3866_v36, %v2309_v40  ;;  %v2504_v56 = vadd.f32 %v5516_v57, %v2433_v37  ;;  %v5572_v33 = vld [vmem:[%s5510_s24 + $0xb0] sm:$0xff]  }
 0x2c3   : > { %v5545_v58 = vadd.f32 %v5516_v57, %v2434_v38  ;;  %v2438_v59 = vadd.f32 %v3869_v41, %v2310_v43  ;;  %v2439_v60 = vadd.f32 %v3870_v42, %v2311_v44  ;;  %v3873_v61 = vunpack.c.l.bf16 %v3974_v48  ;;  %v3978_v38 = vld [vmem:[%s5510_s24 + $0x60] sm:$0xff]   ;;  %v2338_v39 = vld [vmem:[#allocation2 + $0x150] sm:$0xff]  ;;  %v2339_v44 = vld [vmem:[#allocation2 + $0x158] sm:$0xff] }
 0x2c4   : > { %4142 = vmatmul.mubr.msk.f32.gmra.mxu0 %vm2158_vm1, %v2562_v28  ;;  %v3874_v63 = vunpack.c.h.bf16 %v3974_v48  ;;  %v3877_v1 = vunpack.c.l.bf16 %v3975_v49  ;;  %v3878_v2 = vunpack.c.h.bf16 %v3975_v49  ;;  %v5549_v3 = vadd.f32 %v5516_v57, %v2435_v47  ;;  %v3987_v28 = vld [vmem:[%s5510_s24 + $0xa8] sm:$0xff]  }
 0x2c5   : > { %4144 = vmatprep.mubr.msk.f32.mxu0 %vm2158_vm1, %v2563_v32  ;;  %v3881_v6 = vunpack.c.l.bf16 %v3976_v54  ;;  %v3882_v8 = vunpack.c.h.bf16 %v3976_v54  ;;  %v3885_v9 = vunpack.c.l.bf16 %v3977_v55  ;;  %v2567_v10 = vmax.f32 %v2503_v51, 0.0  ;;  %v3979_v48 = vld [vmem:[%s5510_s24 + $0x68] sm:$0xff]  }
 0x2c6   : > { %v5553_v11 = vadd.f32 %v5516_v57, %v2436_v52  ;;  %v5556_v12 = vadd.f32 %v5516_v57, %v2437_v53  ;;  %v3886_v15 = vunpack.c.h.bf16 %v3977_v55  ;;  %v5559_v16 = vadd.f32 %v5516_v57, %v2438_v59  ;;  %v5606_v55 = vld [vmem:[%s5510_s24 + $0x70] sm:$0xff]   ;;  %v2320_v59 = vld [vmem:[#allocation2 + $0xc0] sm:$0xff] }
 0x2c7   : > { %v5562_v17 = vadd.f32 %v5516_v57, %v2439_v60  ;;  %v2440_v18 = vadd.f32 %v3873_v61, %v2312_v62  ;;  %v2441_v19 = vadd.f32 %v3874_v63, %v2313_v0  ;;  %v2442_v21 = vadd.f32 %v3877_v1, %v2314_v4  ;;  %v2321_v60 = vld [vmem:[#allocation2 + $0xc8] sm:$0xff]  ;;  %v2322_v4 = vld [vmem:[#allocation2 + $0xd0] sm:$0xff] }
 0x2c8   : > { %4145 = vmatmul.mubr.msk.f32.gmra.mxu0 %vm2158_vm1, %v2564_v45  ;;  %v2443_v22 = vadd.f32 %v3878_v2, %v2315_v5  ;;  %v2444_v23 = vadd.f32 %v3881_v6, %v2316_v7  ;;  %v2568_v24 = vmax.f32 %v2504_v56, 0.0  ;;  %v2569_v25 = vmax.f32 %v5545_v58, 0.0  ;;  %v2340_v45 = vld [vmem:[#allocation2 + $0x160] sm:$0xff]  ;;  %v2323_v5 = vld [vmem:[#allocation2 + $0xd8] sm:$0xff] }
 0x2c9   : > { %4147 = vmatprep.mubr.msk.f32.mxu0 %vm2158_vm1, %v2565_v46  ;;  %v2445_v26 = vadd.f32 %v3882_v8, %v2317_v13  ;;  %v2446_v27 = vadd.f32 %v3885_v9, %v2318_v14  ;;  %v2570_v29 = vmax.f32 %v5549_v3, 0.0  ;;  %v2571_v30 = vmax.f32 %v5553_v11, 0.0  ;;  %v3989_v9 = vld [vmem:[%s5510_s24 + $0xb8] sm:$0xff]  }
 0x2ca   : > { %v2572_v31 = vmax.f32 %v5556_v12, 0.0  ;;  %v2447_v32 = vadd.f32 %v3886_v15, %v2319_v20  ;;  %v2573_v34 = vmax.f32 %v5559_v16, 0.0  ;;  %v2574_v35 = vmax.f32 %v5562_v17, 0.0  ;;  %v2324_v15 = vld [vmem:[#allocation2 + $0xe0] sm:$0xff] }
 0x2cb   : > { %v5577_v36 = vadd.f32 %v5516_v57, %v2440_v18  ;;  %v5580_v37 = vadd.f32 %v5516_v57, %v2441_v19  ;;  %v5584_v40 = vadd.f32 %v5516_v57, %v2442_v21  ;;  %v5587_v41 = vadd.f32 %v5516_v57, %v2443_v22  ;;  %v3990_v18 = vld [vmem:[%s5510_s24 + $0xc0] sm:$0xff]  }
 0x2cc   : > { %4148 = vmatmul.mubr.msk.f32.gmra.mxu0 %vm2158_vm1, %v2566_v50  ;;  %v5590_v42 = vadd.f32 %v5516_v57, %v2444_v23  ;;  %v3925_v43 = vunpack.c.l.bf16 %v3987_v28  ;;  %v5594_v46 = vadd.f32 %v5516_v57, %v2445_v26  ;;  %v5597_v47 = vadd.f32 %v5516_v57, %v2446_v27  ;;  %v2341_v23 = vld [vmem:[#allocation2 + $0x168] sm:$0xff] }
 0x2cd   : > { %4150 = vmatprep.mubr.msk.f32.mxu0 %vm2158_vm1, %v2567_v10  ;;  %v3926_v49 = vunpack.c.h.bf16 %v3987_v28  ;;  %v3929_v50 = vunpack.c.l.bf16 %v5572_v33  ;;  %v5603_v51 = vadd.f32 %v5516_v57, %v2447_v32  ;;  %v3889_v52 = vunpack.c.l.bf16 %v3978_v38  ;;  %v2342_v28 = vld [vmem:[#allocation2 + $0x170] sm:$0xff] }
 0x2ce   : > { %v3890_v53 = vunpack.c.h.bf16 %v3978_v38  ;;  %v2466_v54 = vadd.f32 %v3925_v43, %v2338_v39  ;;  %v2575_v56 = vmax.f32 %v5577_v36, 0.0  ;;  %v2576_v58 = vmax.f32 %v5580_v37, 0.0  ;;  %v2326_v36 = vld [vmem:[#allocation2 + $0xf0] sm:$0xff]  ;;  %v2352_v37 = vld [vmem:[#allocation2 + $0x1c0] sm:$0xff] }
 0x2cf   : > { %v2467_v61 = vadd.f32 %v3926_v49, %v2339_v44  ;;  %v2468_v62 = vadd.f32 %v3929_v50, %v2340_v45  ;;  %v2577_v63 = vmax.f32 %v5584_v40, 0.0  ;;  %v3893_v0 = vunpack.c.l.bf16 %v3979_v48  ;;  %v2345_v44 = vld [vmem:[#allocation2 + $0x188] sm:$0xff]  ;;  %v3981_v50 = vld [vmem:[%s5510_s24 + $0x78] sm:$0xff]  }
 0x2d0   : > { %4151 = vmatmul.mubr.msk.f32.gmra.mxu0 %vm2158_vm1, %v2568_v24  ;;  %v2537_v1 = vadd.f32 %v5516_v57, %v2466_v54  ;;  %v3894_v2 = vunpack.c.h.bf16 %v3979_v48  ;;  %v2578_v3 = vmax.f32 %v5587_v41, 0.0  ;;  %v3897_v7 = vunpack.c.l.bf16 %v5606_v55  ;;  %v3991_v45 = vld [vmem:[%s5510_s24 + $0xc8] sm:$0xff]  }
 0x2d1   : > { %4153 = vmatprep.mubr.msk.f32.mxu0 %vm2158_vm1, %v2569_v25  ;;  %v2538_v6 = vadd.f32 %v5516_v57, %v2467_v61  ;;  %v2539_v8 = vadd.f32 %v5516_v57, %v2468_v62  ;;  %v2579_v10 = vmax.f32 %v5590_v42, 0.0  ;;  %v2448_v11 = vadd.f32 %v3889_v52, %v2320_v59  ;;  %v2325_v54 = vld [vmem:[#allocation2 + $0xe8] sm:$0xff]  ;;  %v2354_v42 = vld [vmem:[#allocation2 + $0x1d0] sm:$0xff] }
 0x2d2   : > { %v2449_v13 = vadd.f32 %v3890_v53, %v2321_v60  ;;  %v2601_v14 = vmax.f32 %v2537_v1, 0.0  ;;  %v2580_v19 = vmax.f32 %v5594_v46, 0.0  ;;  %v2581_v20 = vmax.f32 %v5597_v47, 0.0  ;;  %v2357_v47 = vld [vmem:[#allocation2 + $0x1e8] sm:$0xff] }
 0x2d3   : > { %v2602_v21 = vmax.f32 %v2538_v6, 0.0  ;;  %v2603_v22 = vmax.f32 %v2539_v8, 0.0  ;;  %v2450_v24 = vadd.f32 %v3893_v0, %v2322_v4  ;;  %v2451_v25 = vadd.f32 %v3894_v2, %v2323_v5  ;;  %v2346_v2 = vld [vmem:[#allocation2 + $0x190] sm:$0xff]  ;;  %v3994_v8 = vld [vmem:[%s5510_s24 + $0xe0] sm:$0xff]  }
 0x2d4   : > { %4154 = vmatmul.mubr.msk.f32.gmra.mxu0 %vm2158_vm1, %v2570_v29  ;;  %4201 = vmatprep.mubr.msk.f32.mxu1 %vm2158_vm1, %v2601_v14  ;;  %v3930_v26 = vunpack.c.h.bf16 %v5572_v33  ;;  %v3933_v27 = vunpack.c.l.bf16 %v3989_v9  ;;  %v2343_v29 = vld [vmem:[#allocation2 + $0x178] sm:$0xff]  ;;  %v2452_v32 = vadd.f32 %v3897_v7, %v2324_v15  ;;  %v3934_v38 = vunpack.c.h.bf16 %v3989_v9  ;;  %v3992_v4 = vld [vmem:[%s5510_s24 + $0xd0] sm:$0xff]  }
 0x2d5   : > { %4156 = vmatprep.mubr.msk.f32.mxu0 %vm2158_vm1, %v2571_v30  ;;  %v2344_v30 = vld [vmem:[#allocation2 + $0x180] sm:$0xff]  ;;  %4202 = vmatmul.mubr.msk.f32.vlgmr.msra.gmra.mxu1 %vm2158_vm1, %v2602_v21  ;;  %v3937_v39 = vunpack.c.l.bf16 %v3990_v18  ;;  %v3938_v43 = vunpack.c.h.bf16 %v3990_v18  ;;  %v2582_v33 = vmax.f32 %v5603_v51, 0.0  ;;  %v5635_v48 = vadd.f32 %v5516_v57, %v2448_v11  ;;  %v3993_v7 = vld [vmem:[%s5510_s24 + $0xd8] sm:$0xff]  }
 0x2d6   : > { %v5638_v12 = vadd.f32 %v5516_v57, %v2449_v13  ;;  %4204 = vmatprep.mubr.msk.f32.mxu1 %vm2158_vm1, %v2603_v22  ;;  %v3898_v49 = vunpack.c.h.bf16 %v5606_v55  ;;  %v2470_v52 = vadd.f32 %v3933_v27, %v2342_v28  ;;  %v2471_v53 = vadd.f32 %v3934_v38, %v2343_v29  ;;  %v2347_v15 = vld [vmem:[#allocation2 + $0x198] sm:$0xff]  ;;  %v2348_v18 = vld [vmem:[#allocation2 + $0x1a0] sm:$0xff]  ;;  %v2350_v28 = vld [vmem:[#allocation2 + $0x1b0] sm:$0xff] }
 0x2d7   : > { %v2472_v16 = vadd.f32 %v3937_v39, %v2344_v30  ;;  %v2473_v60 = vadd.f32 %v3938_v43, %v2345_v44  ;;  %v3941_v61 = vunpack.c.l.bf16 %v3991_v45  ;;  %v5651_v55 = vadd.f32 %v5516_v57, %v2451_v25  ;;  %v2327_v21 = vld [vmem:[#allocation2 + $0xf8] sm:$0xff]  ;;  %v2349_v25 = vld [vmem:[#allocation2 + $0x1a8] sm:$0xff] }
 0x2d8   : > { %4157 = vmatmul.mubr.msk.f32.gmra.mxu0 %vm2158_vm1, %v2572_v31  ;;  %v2469_v31 = vadd.f32 %v3930_v26, %v2341_v23  ;;  %v2541_v62 = vadd.f32 %v5516_v57, %v2470_v52  ;;  %v2542_v0 = vadd.f32 %v5516_v57, %v2471_v53  ;;  %v5661_v5 = vadd.f32 %v5516_v57, %v2452_v32  ;;  %v2351_v43 = vld [vmem:[#allocation2 + $0x1b8] sm:$0xff]  ;;  %v3995_v52 = vld [vmem:[%s5510_s24 + $0xe8] sm:$0xff]  }
 0x2d9   : > { %4159 = vmatprep.mubr.msk.f32.mxu0 %vm2158_vm1, %v2573_v34  ;;  %v5644_v34 = vadd.f32 %v5516_v57, %v2450_v24  ;;  %v2543_v1 = vadd.f32 %v5516_v57, %v2472_v16  ;;  %v3902_v6 = vunpack.c.h.bf16 %v3981_v50  ;;  %v2453_v9 = vadd.f32 %v3898_v49, %v2325_v54 }
 0x2da   : > { %v2540_v59 = vadd.f32 %v5516_v57, %v2469_v31  ;;  %v2605_v11 = vmax.f32 %v2541_v62, 0.0  ;;  %v2606_v13 = vmax.f32 %v2542_v0, 0.0  ;;  %v2544_v14 = vadd.f32 %v5516_v57, %v2473_v60 }
 0x2db   : > { %v2474_v22 = vadd.f32 %v3941_v61, %v2346_v2  ;;  %v3942_v23 = vunpack.c.h.bf16 %v3991_v45  ;;  %v3945_v24 = vunpack.c.l.bf16 %v3992_v4  ;;  %v3946_v26 = vunpack.c.h.bf16 %v3992_v4 }
 0x2dc   : > { %4160 = vmatmul.mubr.msk.f32.gmra.mxu0 %vm2158_vm1, %v2574_v35  ;;  %v2604_v17 = vmax.f32 %v2540_v59, 0.0  ;;  %v3901_v35 = vunpack.c.l.bf16 %v3981_v50  ;;  %v3949_v27 = vunpack.c.l.bf16 %v3993_v7  ;;  %v3950_v29 = vunpack.c.h.bf16 %v3993_v7  ;;  %v2353_v50 = vld [vmem:[#allocation2 + $0x1c8] sm:$0xff] }
 0x2dd   : > { %4162 = vmatprep.mubr.msk.f32.mxu0 %vm2158_vm1, %v2575_v56  ;;  %v2607_v56 = vmax.f32 %v2543_v1, 0.0  ;;  %v3953_v30 = vunpack.c.l.bf16 %v3994_v8  ;;  %v2545_v32 = vadd.f32 %v5516_v57, %v2474_v22  ;;  %v2475_v38 = vadd.f32 %v3942_v23, %v2347_v15  ;;  %v2330_v22 = vld [vmem:[#allocation2 + $0x110] sm:$0xff] }
 0x2de   : > { %4205 = vmatmul.mubr.msk.f32.gmra.mxu1 %vm2158_vm1, %v2604_v17  ;;  %v2476_v39 = vadd.f32 %v3945_v24, %v2348_v18  ;;  %v3954_v44 = vunpack.c.h.bf16 %v3994_v8  ;;  %v2454_v45 = vadd.f32 %v3901_v35, %v2326_v36  ;;  %v2455_v31 = vadd.f32 %v3902_v6, %v2327_v21  ;;  %v3997_v35 = vld [vmem:[%s5510_s24 + $0xf8] sm:$0xff]  }
 0x2df   : > { %4207 = vmatprep.mubr.msk.f32.mxu1 %vm2158_vm1, %v2605_v11  ;;  %v2477_v49 = vadd.f32 %v3946_v26, %v2349_v25  ;;  %v5678_v53 = vadd.f32 %v5516_v57, %v2453_v9  ;;  %v2608_v40 = vmax.f32 %v2544_v14, 0.0  ;;  %v2478_v16 = vadd.f32 %v3949_v27, %v2350_v28  ;;  %v3996_v11 = vld [vmem:[%s5510_s24 + $0xf0] sm:$0xff]   ;;  %v2355_v21 = vld [vmem:[#allocation2 + $0x1d8] sm:$0xff]  ;;  %v2356_v27 = vld [vmem:[#allocation2 + $0x1e0] sm:$0xff] }
 0x2e0   : > { %4163 = vmatmul.mubr.msk.f32.gmra.mxu0 %vm2158_vm1, %v2576_v58  ;;  %v2583_v58 = vmax.f32 %v5635_v48, 0.0  ;;  %v2609_v54 = vmax.f32 %v2545_v32, 0.0  ;;  %v2547_v59 = vadd.f32 %v5516_v57, %v2476_v39  ;;  %v2479_v60 = vadd.f32 %v3950_v29, %v2351_v43  ;;  %v2328_v32 = vld [vmem:[#allocation2 + $0x100] sm:$0xff]  ;;  %v2359_v43 = vld [vmem:[#allocation2 + $0x1f8] sm:$0xff] }
 0x2e1   : > { %4165 = vmatprep.mubr.msk.f32.mxu0 %vm2158_vm1, %v2577_v63  ;;  %v2546_v63 = vadd.f32 %v5516_v57, %v2475_v38  ;;  %v2480_v61 = vadd.f32 %v3953_v30, %v2352_v37  ;;  %v2584_v62 = vmax.f32 %v5638_v12, 0.0  ;;  %v2585_v41 = vmax.f32 %v5644_v34, 0.0  ;;  %v3986_v48 = vld [vmem:[%s5510_s24 + $0xa0] sm:$0xff]  }
 0x2e2   : > { %4208 = vmatmul.mubr.msk.f32.gmra.mxu1 %vm2158_vm1, %v2606_v13  ;;  %v3957_v0 = vunpack.c.l.bf16 %v3995_v52  ;;  %v2586_v1 = vmax.f32 %v5651_v55, 0.0  ;;  %v2587_v2 = vmax.f32 %v5661_v5, 0.0  ;;  %v5695_v4 = vadd.f32 %v5516_v57, %v2454_v45  ;;  %v3982_v13 = vld [vmem:[%s5510_s24 + $0x80] sm:$0xff]  }
 0x2e3   : > { %4210 = vmatprep.mubr.msk.f32.mxu1 %vm2158_vm1, %v2607_v56  ;;  %v2548_v17 = vadd.f32 %v5516_v57, %v2477_v49  ;;  %v2588_v6 = vmax.f32 %v5678_v53, 0.0  ;;  %v5704_v7 = vadd.f32 %v5516_v57, %v2455_v31  ;;  %v2610_v8 = vmax.f32 %v2546_v63, 0.0  ;;  %v2358_v56 = vld [vmem:[#allocation2 + $0x1f0] sm:$0xff]  ;;  %v2329_v31 = vld [vmem:[#allocation2 + $0x108] sm:$0xff]  ;;  %v3985_v63 = vld [vmem:[%s5510_s24 + $0x98] sm:$0xff]  }
 0x2e4   : > { %4166 = vmatmul.mubr.msk.f32.gmra.mxu0 %vm2158_vm1, %v2578_v3  ;;  %v2481_v3 = vadd.f32 %v3954_v44, %v2353_v50  ;;  %v3958_v9 = vunpack.c.h.bf16 %v3995_v52  ;;  %v2611_v14 = vmax.f32 %v2547_v59, 0.0  ;;  %v2549_v15 = vadd.f32 %v5516_v57, %v2478_v16  ;;  %v3984_v50 = vld [vmem:[%s5510_s24 + $0x90] sm:$0xff]  }
 0x2e5   : > { %4168 = vmatprep.mubr.msk.f32.mxu0 %vm2158_vm1, %v2579_v10  ;;  %v5700_v10 = vld [vmem:[%s5510_s24 + $0x88] sm:$0xff]   ;;  %v5715_v18 = vadd.f32 %v5516_v57, %v2479_v60  ;;  %v5718_v36 = vadd.f32 %v5516_v57, %v2480_v61  ;;  %v3965_v23 = vunpack.c.l.bf16 %v3997_v35  ;;  %v2612_v25 = vmax.f32 %v2548_v17, 0.0  ;;  %v2331_v61 = vld [vmem:[#allocation2 + $0x118] sm:$0xff] }
 0x2e6   : > { %4211 = vmatmul.mubr.msk.f32.gmra.mxu1 %vm2158_vm1, %v2608_v40  ;;  %v5724_v46 = vadd.f32 %v5516_v57, %v2481_v3  ;;  %v3909_v24 = vunpack.c.l.bf16 %v5700_v10  ;;  %v3961_v26 = vunpack.c.l.bf16 %v3996_v11  ;;  %v3905_v28 = vunpack.c.l.bf16 %v3982_v13  ;;  %v2332_v3 = vld [vmem:[#allocation2 + $0x120] sm:$0xff] }
 0x2e7   : > { %4213 = vmatprep.mubr.msk.f32.mxu1 %vm2158_vm1, %v2609_v54  ;;  %v3962_v29 = vunpack.c.h.bf16 %v3996_v11  ;;  %v2483_v30 = vadd.f32 %v3958_v9, %v2355_v21  ;;  %v3906_v38 = vunpack.c.h.bf16 %v3982_v13  ;;  %v2613_v37 = vmax.f32 %v2549_v15, 0.0  ;;  %v2335_v9 = vld [vmem:[#allocation2 + $0x138] sm:$0xff] }
 0x2e8   : > { %4169 = vmatmul.mubr.msk.f32.gmra.mxu0 %vm2158_vm1, %v2580_v19  ;;  %v2482_v19 = vadd.f32 %v3957_v0, %v2354_v42  ;;  %v2458_v39 = vadd.f32 %v3909_v24, %v2330_v22  ;;  %v2614_v44 = vmax.f32 %v5715_v18, 0.0  ;;  %v2615_v45 = vmax.f32 %v5718_v36, 0.0  ;;  %v2336_v18 = vld [vmem:[#allocation2 + $0x140] sm:$0xff]  ;;  %v2337_v36 = vld [vmem:[#allocation2 + $0x148] sm:$0xff] }
 0x2e9   : > { %4171 = vmatprep.mubr.msk.f32.mxu0 %vm2158_vm1, %v2581_v20  ;;  %v2486_v20 = vadd.f32 %v3965_v23, %v2358_v56  ;;  %v3966_v49 = vunpack.c.h.bf16 %v3997_v35  ;;  %v2616_v52 = vmax.f32 %v5724_v46, 0.0  ;;  %v2484_v16 = vadd.f32 %v3961_v26, %v2356_v27  ;;  %v2333_v35 = vld [vmem:[#allocation2 + $0x128] sm:$0xff] }
 0x2ea   : > { %4214 = vmatmul.mubr.msk.f32.gmra.mxu1 %vm2158_vm1, %v2610_v8  ;;  %v2553_v51 = vadd.f32 %v5516_v57, %v2482_v19  ;;  %v5744_v40 = vadd.f32 %v5516_v57, %v2458_v39  ;;  %v2456_v54 = vadd.f32 %v3905_v28, %v2328_v32  ;;  %v2485_v59 = vadd.f32 %v3962_v29, %v2357_v47  ;;  %v2334_v8 = vld [vmem:[#allocation2 + $0x130] sm:$0xff] }
 0x2eb   : > { %4216 = vmatprep.mubr.msk.f32.mxu1 %vm2158_vm1, %v2611_v14  ;;  %v2487_v60 = vadd.f32 %v3966_v49, %v2359_v43  ;;  %v2457_v0 = vadd.f32 %v3906_v38, %v2329_v31  ;;  %v3910_v17 = vunpack.c.h.bf16 %v5700_v10  ;;  %v3913_v42 = vunpack.c.l.bf16 %v3984_v50 }
 0x2ec   : > { %4172 = vmatmul.mubr.msk.f32.gmra.mxu0 %vm2158_vm1, %v2582_v33  ;;  %v5741_v33 = vadd.f32 %v5516_v57, %v2486_v20  ;;  %v3914_v13 = vunpack.c.h.bf16 %v3984_v50  ;;  %v3917_v14 = vunpack.c.l.bf16 %v3985_v63  ;;  %v3918_v15 = vunpack.c.h.bf16 %v3985_v63 }
 0x2ed   : > { %4174 = vmatprep.mubr.msk.f32.mxu0 %vm2158_vm1, %v2583_v58  ;;  %v2554_v58 = vadd.f32 %v5516_v57, %v2483_v30  ;;  %v2558_v11 = vadd.f32 %v5516_v57, %v2487_v60  ;;  %v2459_v10 = vadd.f32 %v3910_v17, %v2331_v61  ;;  %v2460_v21 = vadd.f32 %v3913_v42, %v2332_v3 }
 0x2ee   : > { %4217 = vmatmul.mubr.msk.f32.gmra.mxu1 %vm2158_vm1, %v2612_v25  ;;  %v3921_v56 = vunpack.c.l.bf16 %v3986_v48  ;;  %v3922_v22 = vunpack.c.h.bf16 %v3986_v48  ;;  %v2555_v12 = vadd.f32 %v5516_v57, %v2484_v16  ;;  %v2462_v46 = vadd.f32 %v3917_v14, %v2334_v8  ;;  %v3273_v16 = vld [vmem:[%s5095_s19] sm:$0xff] }
 0x2ef   : > { %4219 = vmatprep.mubr.msk.f32.mxu1 %vm2158_vm1, %v2613_v37  ;;  %v2463_v19 = vadd.f32 %v3918_v15, %v2335_v9  ;;  %v2530_v23 = vadd.f32 %v5516_v57, %v2459_v10  ;;  %v2531_v24 = vadd.f32 %v5516_v57, %v2460_v21  ;;  %v2617_v34 = vmax.f32 %v2553_v51, 0.0 }
 0x2f0   : > { %4175 = vmatmul.mubr.msk.f32.gmra.mxu0 %vm2158_vm1, %v2584_v62  ;;  %v2461_v62 = vadd.f32 %v3914_v13, %v2333_v35  ;;  %v2464_v25 = vadd.f32 %v3921_v56, %v2336_v18  ;;  %v2465_v26 = vadd.f32 %v3922_v22, %v2337_v36  ;;  %v2533_v27 = vadd.f32 %v5516_v57, %v2462_v46 }
 0x2f1   : > { %4177 = vmatprep.mubr.msk.f32.mxu0 %vm2158_vm1, %v2585_v41  ;;  %v2534_v28 = vadd.f32 %v5516_v57, %v2463_v19  ;;  %v2589_v29 = vmax.f32 %v5695_v4, 0.0  ;;  %v2527_v30 = vadd.f32 %v5516_v57, %v2456_v54  ;;  %v2618_v32 = vmax.f32 %v2554_v58, 0.0 }
 0x2f2   : > { %4220 = vmatmul.mubr.msk.f32.gmra.mxu1 %vm2158_vm1, %v2614_v44  ;;  %v2532_v41 = vadd.f32 %v5516_v57, %v2461_v62  ;;  %v2535_v55 = vadd.f32 %v5516_v57, %v2464_v25  ;;  %v2556_v47 = vadd.f32 %v5516_v57, %v2485_v59  ;;  %v2590_v5 = vmax.f32 %v5704_v7, 0.0 }
 0x2f3   : > { %4222 = vmatprep.mubr.msk.f32.mxu1 %vm2158_vm1, %v2615_v45  ;;  %v2528_v4 = vadd.f32 %v5516_v57, %v2457_v0  ;;  %v2591_v38 = vmax.f32 %v2527_v30, 0.0  ;;  %v2593_v7 = vmax.f32 %v5744_v40, 0.0  ;;  %v2594_v39 = vmax.f32 %v2530_v23, 0.0 }
 0x2f4   : > { %4178 = vmatmul.mubr.msk.f32.gmra.mxu0 %vm2158_vm1, %v2586_v1  ;;  %v2536_v1 = vadd.f32 %v5516_v57, %v2465_v26  ;;  %v2620_v20 = vmax.f32 %v2556_v47, 0.0  ;;  %v2622_v57 = vmax.f32 %v2558_v11, 0.0  ;;  %v2595_v43 = vmax.f32 %v2531_v24, 0.0 }
 0x2f5   : > { %4180 = vmatprep.mubr.msk.f32.mxu0 %vm2158_vm1, %v2587_v2  ;;  %v2619_v2 = vmax.f32 %v2555_v12, 0.0  ;;  %v2592_v53 = vmax.f32 %v2528_v4, 0.0  ;;  %v2596_v37 = vmax.f32 %v2532_v41, 0.0  ;;  %v2597_v44 = vmax.f32 %v2533_v27, 0.0 }
 0x2f6   : > { %4223 = vmatmul.mubr.msk.f32.gmra.mxu1 %vm2158_vm1, %v2616_v52  ;;  %v2598_v45 = vmax.f32 %v2534_v28, 0.0  ;;  %v2599_v31 = vmax.f32 %v2535_v55, 0.0  ;;  %v2600_v49 = vmax.f32 %v2536_v1, 0.0  ;;  %v4841_v50 = vmov 1983009808  }
 0x2f7   : > { %4225 = vmatprep.mubr.msk.f32.mxu1 %vm2158_vm1, %v2617_v34  ;;  %v3277_v52 = vunpack.c.l.s4 %v4841_v50  ;;  %v3279_v51 = vlaneseq  ;;  %v3275_v60 = vcombine.high %v3273_v16, %v3273_v16 }
 0x2f8   : > { %4181 = vmatmul.mubr.msk.f32.gmra.mxu0 %vm2158_vm1, %v2588_v6  ;;  %v2621_v6 = vmax.f32 %v5741_v33, 0.0 }
 0x2f9   : > { %4183 = vmatprep.mubr.msk.f32.mxu0 %vm2158_vm1, %v2589_v29  ;;  %v3278_v33 = vunpack.c.0.s8 %v3277_v52  ;;  %v3280_v40 = vshrl.u32 %v3279_v51, 7 }
 0x2fa   : > { %4226 = vmatmul.mubr.msk.f32.gmra.mxu1 %vm2158_vm1, %v2618_v32 }
 0x2fb   : > { %4228 = vmatprep.mubr.msk.f32.mxu1 %vm2158_vm1, %v2619_v2  ;;  %v3281_v63 = vsub.s32 %v3278_v33, %v3280_v40 }
 0x2fc   : > { %4184 = vmatmul.mubr.msk.f32.gmra.mxu0 %vm2158_vm1, %v2590_v5 }
 0x2fd   : > { %4186 = vmatprep.mubr.msk.f32.mxu0 %vm2158_vm1, %v2591_v38  ;;  %v5805_v54 = vrot.slane %v3273_v16, %v3281_v63  ;;  %v5809_v61 = vrot.slane %v3275_v60, %v3281_v63 }
 0x2fe   : > { %4229 = vmatmul.mubr.msk.f32.gmra.mxu1 %vm2158_vm1, %v2620_v20 }
 0x2ff   : > { %4231 = vmatprep.mubr.msk.f32.mxu1 %vm2158_vm1, %v2621_v6  ;;  %v3290_v59 = vcombine.high %v5805_v54, %v5805_v54 }
 0x300   : > { %4187 = vmatmul.mubr.msk.f32.gmra.mxu0 %vm2158_vm1, %v2592_v53 }
 0x301   : > { %4189 = vmatprep.mubr.msk.f32.mxu0 %vm2158_vm1, %v2593_v7  ;;  %v5873_v7 = vld [vmem:[#allocation8] ss:$0 sm:$0xff] }
 0x302   : > { %4232 = vmatmul.mubr.msk.f32.gmra.mxu1 %vm2158_vm1, %v2622_v57 }
 0x303   : > { %3360 = vmatprep.mubr.f32.mxu1 %v3290_v59 }
 0x304   : > { %4190 = vmatmul.mubr.msk.f32.gmra.mxu0 %vm2158_vm1, %v2594_v39 }
 0x305   : > { %4192 = vmatprep.mubr.msk.f32.mxu0 %vm2158_vm1, %v2595_v43 }
 0x308   : > { %4193 = vmatmul.mubr.msk.f32.gmra.mxu0 %vm2158_vm1, %v2596_v37 }
 0x309   : > { %4195 = vmatprep.mubr.msk.f32.mxu0 %vm2158_vm1, %v2597_v44 }
 0x30c   : > { %4196 = vmatmul.mubr.msk.f32.gmra.mxu0 %vm2158_vm1, %v2598_v45 }
 0x30d   : > { %4198 = vmatprep.mubr.msk.f32.mxu0 %vm2158_vm1, %v2599_v31 }
 0x310   : > { %4199 = vmatmul.mubr.msk.f32.gmra.mxu0 %vm2158_vm1, %v2600_v49 }
 0x380   : > { %v5811_v3 = vpop.f32.mrf.mxu0 }
 0x382   : > { %v5813_v48 = vpop.f32.mrf.mxu0 }
 0x384   : > { %v5815_v58 = vpop.f32.mrf.mxu0 }
 0x386   : > { %v5817_v0 = vpop.f32.mrf.mxu0 }
 0x388   : > { %v5819_v17 = vpop.f32.mrf.mxu0 }
 0x38a   : > { %v5821_v42 = vpop.f32.mrf.mxu0 }
 0x38c   : > { %v5823_v35 = vpop.f32.mrf.mxu0 }
 0x38e   : > { %v5825_v8 = vpop.f32.mrf.mxu0 }
 0x390   : > { %v5827_v9 = vpop.f32.mrf.mxu0 }
 0x392   : > { %v5829_v11 = vpop.f32.mrf.mxu0 }
 0x394   : > { %v4155_v13 = vpop.f32.mrf.mxu0 }
 0x395   : > { %v5831_v18 = vpop.f32.mrf.mxu1 }
 0x396   : > { %v2940_v14 = vpop.f32.mrf.mxu0 }
 0x397   : > { %v5833_v10 = vpop.f32.mrf.mxu1 }
 0x398   : > { %v4158_v15 = vpop.f32.mrf.mxu0 }
 0x399   : > { %v2956_v52 = vadd.f32 %v4158_v15, %v5873_v7 }
 0x39a   : > { %v2950_v36 = vpop.f32.mrf.mxu0 }
 0x39b   : > { %v2951_v63 = vadd.f32 %v5873_v7, %v2950_v36  ;;  %v3222_v15 = vmax.f32 %v2956_v52, 0.0  ;;  %v2941_v36 = vadd.f32 %v5873_v7, %v2940_v14  ;;  %v2931_v14 = vadd.f32 %v5873_v7, %v5829_v11 }
 0x39c   : > { %v4161_v21 = vpop.f32.mrf.mxu0  ;;  %v2921_v11 = vadd.f32 %v5873_v7, %v5825_v8  ;;  %v2911_v8 = vadd.f32 %v5873_v7, %v5821_v42  ;;  %v2901_v42 = vadd.f32 %v5873_v7, %v5817_v0 }
 0x39d   : > { %v2966_v57 = vadd.f32 %v4161_v21, %v5873_v7 }
 0x39e   : > { %v2960_v56 = vpop.f32.mrf.mxu0  ;;  %v5835_v22 = vpop.f32.mrf.mxu1 }
 0x39f   : > { %v2961_v37 = vadd.f32 %v5873_v7, %v2960_v56  ;;  %v3224_v51 = vmax.f32 %v2966_v57, 0.0 }
 0x3a0   : > { %v5837_v12 = vpop.f32.mrf.mxu0  ;;  %v5839_v62 = vpop.f32.mrf.mxu1 }
 0x3a1   : > { %v3223_v16 = vmax.f32 %v2961_v37, 0.0 }
 0x3a2   : > { %v5841_v46 = vpop.f32.mrf.mxu0  ;;  %v5843_v19 = vpop.f32.mrf.mxu1 }
 0x3a4   : > { %v5845_v23 = vpop.f32.mrf.mxu0  ;;  %v5847_v24 = vpop.f32.mrf.mxu1 }
 0x3a6   : > { %v5849_v25 = vpop.f32.mrf.mxu0  ;;  %v5851_v26 = vpop.f32.mrf.mxu1 }
 0x3a8   : > { %v5853_v34 = vpop.f32.mrf.mxu0  ;;  %v5855_v41 = vpop.f32.mrf.mxu1 }
 0x3aa   : > { %v5857_v27 = vpop.f32.mrf.mxu0  ;;  %v5859_v28 = vpop.f32.mrf.mxu1 }
 0x3ac   : > { %v4173_v29 = vpop.f32.mrf.mxu0  ;;  %v5861_v30 = vpop.f32.mrf.mxu1 }
 0x3ae   : > { %v5863_v55 = vpop.f32.mrf.mxu0  ;;  %v5865_v1 = vpop.f32.mrf.mxu1 }
 0x3b0   : > { %v4176_v32 = vpop.f32.mrf.mxu0  ;;  %v5867_v5 = vpop.f32.mrf.mxu1 }
 0x3b2   : > { %v3010_v47 = vpop.f32.mrf.mxu0  ;;  %v5869_v38 = vpop.f32.mrf.mxu1 }
 0x3b4   : > { %v4179_v2 = vpop.f32.mrf.mxu0  ;;  %v5871_v6 = vpop.f32.mrf.mxu1 }
 0x3b5   : > { %v3026_v60 = vadd.f32 %v4179_v2, %v5873_v7  ;;  %v3016_v2 = vadd.f32 %v4176_v32, %v5873_v7  ;;  %v3006_v32 = vadd.f32 %v4173_v29, %v5873_v7 }
 0x3b6   : > { %v3020_v4 = vpop.f32.mrf.mxu0  ;;  %v5878_v45 = vpop.f32.mrf.mxu1 }
 0x3b7   : > { %v3236_v37 = vmax.f32 %v3026_v60, 0.0  ;;  %v2996_v60 = vadd.f32 %v5853_v34, %v5873_v7 }
 0x3b8   : > { %v4182_v20 = vpop.f32.mrf.mxu0  ;;  %v5885_v59 = vpop.f32.mrf.mxu1 }
 0x3b9   : > { %v3036_v31 = vadd.f32 %v4182_v20, %v5873_v7  ;;  %v2946_v20 = vadd.f32 %v4155_v13, %v5873_v7  ;;  %v2936_v13 = vadd.f32 %v5827_v9, %v5873_v7  ;;  %v2926_v9 = vadd.f32 %v5823_v35, %v5873_v7 }
 0x3ba   : > { %v3030_v53 = vpop.f32.mrf.mxu0  ;;  %v2916_v35 = vadd.f32 %v5819_v17, %v5873_v7  ;;  %v2906_v17 = vadd.f32 %v5815_v58, %v5873_v7  ;;  %v2896_v58 = vadd.f32 %v5811_v3, %v5873_v7  ;;  %v3126_v3 = vadd.f32 %v5843_v19, %v5873_v7 }
 0x3bb   : > { %v3031_v33 = vadd.f32 %v5873_v7, %v3030_v53  ;;  %v3238_v21 = vmax.f32 %v3036_v31, 0.0  ;;  %v3021_v53 = vadd.f32 %v5873_v7, %v3020_v4  ;;  %v3220_v31 = vmax.f32 %v2946_v20, 0.0 }
 0x3bc   : > { %v4185_v39 = vpop.f32.mrf.mxu0  ;;  %v3011_v4 = vadd.f32 %v5873_v7, %v3010_v47  ;;  %v3001_v47 = vadd.f32 %v5873_v7, %v5863_v55  ;;  %v2991_v55 = vadd.f32 %v5873_v7, %v5857_v27  ;;  %v2981_v27 = vadd.f32 %v5873_v7, %v5849_v25 }
 0x3bd   : > { %v3046_v43 = vadd.f32 %v4185_v39, %v5873_v7  ;;  %v3237_v57 = vmax.f32 %v3031_v33, 0.0  ;;  %v3221_v39 = vmax.f32 %v2951_v63, 0.0  ;;  %v2971_v25 = vadd.f32 %v5873_v7, %v5841_v46 }
 0x3be   : > { %v3040_v44 = vpop.f32.mrf.mxu0  ;;  %v3233_v63 = vmax.f32 %v3011_v4, 0.0  ;;  %v2976_v4 = vadd.f32 %v5837_v12, %v5873_v7  ;;  %v3211_v12 = vmax.f32 %v2901_v42, 0.0  ;;  %v3116_v19 = vadd.f32 %v5835_v22, %v5873_v7 }
 0x3bf   : > { %v3240_v49 = vmax.f32 %v3046_v43, 0.0  ;;  %v3041_v50 = vadd.f32 %v5873_v7, %v3040_v44  ;;  %v5893_v43 = vpop.f32.mrf.mxu1 }
 0x3c0   : > { %v5888_v56 = vpop.f32.mrf.mxu0 }
 0x3c1   : > { %v3239_v40 = vmax.f32 %v3041_v50, 0.0  ;;  %4064 = vmatprep.subr.mxu1 %v3240_v49  ;;  %v3235_v49 = vmax.f32 %v3021_v53, 0.0  ;;  %v3219_v50 = vmax.f32 %v2941_v36, 0.0  ;;  %v5903_v52 = vpop.f32.mrf.mxu1  ;;  %v3231_v53 = vmax.f32 %v3001_v47, 0.0 }
 0x3c2   : > { %4065 = vmatpush3.msra.mxu1 %v3224_v51  ;;  %v5896_v44 = vpop.f32.mrf.mxu0  ;;  %v3234_v51 = vmax.f32 %v3016_v2, 0.0  ;;  %v2986_v36 = vadd.f32 %v5845_v23, %v5873_v7 }
 0x3c3   : > { %4066 = vmatprep.subr.mxu1 %v3239_v40  ;;  %v3218_v40 = vmax.f32 %v2936_v13, 0.0  ;;  %v4230_v29 = vpop.f32.mrf.mxu1  ;;  %v3229_v13 = vmax.f32 %v2991_v55, 0.0  ;;  %v3256_v55 = vmax.f32 %v3126_v3, 0.0 }
 0x3c4   : > { %4067 = vmatpush3.msra.mxu1 %v3223_v16  ;;  %v5906_v33 = vpop.f32.mrf.mxu0  ;;  %v3217_v16 = vmax.f32 %v2931_v14, 0.0 }
 0x3c5   : > { %4068 = vmatprep.subr.mxu1 %v3238_v21  ;;  %v3232_v21 = vmax.f32 %v3006_v32, 0.0  ;;  %v3190_v34 = vpop.f32.mrf.mxu1  ;;  %v3227_v32 = vmax.f32 %v2981_v27, 0.0  ;;  %v3176_v27 = vadd.f32 %v5878_v45, %v5873_v7 }
 0x3c6   : > { %4069 = vmatpush3.msra.mxu1 %v3222_v15  ;;  %v5916_v20 = vpop.f32.mrf.mxu0  ;;  %v3216_v15 = vmax.f32 %v2926_v9, 0.0 }
 0x3c7   : > { %4070 = vmatprep.subr.mxu1 %v3237_v57  ;;  %v3215_v57 = vmax.f32 %v2921_v11, 0.0  ;;  %v4233_v23 = vpop.f32.mrf.mxu1  ;;  %v3225_v11 = vmax.f32 %v2971_v25, 0.0 }
 0x3c8   : > { %4071 = vmatpush3.msra.mxu1 %v3221_v39  ;;  %v3230_v39 = vmax.f32 %v2996_v60, 0.0  ;;  %v5926_v2 = vpop.f32.mrf.mxu0  ;;  %v3206_v0 = vadd.f32 %v4233_v23, %v5873_v7 }
 0x3c9   : > { %4072 = vmatprep.subr.mxu1 %v3236_v37  ;;  %v3214_v37 = vmax.f32 %v2916_v35, 0.0  ;;  %v3200_v9 = vpop.f32.mrf.mxu1  ;;  %v3196_v35 = vadd.f32 %v4230_v29, %v5873_v7  ;;  %v3186_v29 = vadd.f32 %v5893_v43, %v5873_v7 }
 0x3ca   : > { %4073 = vmatpush3.msra.mxu1 %v3220_v31  ;;  %v3213_v31 = vmax.f32 %v2911_v8, 0.0  ;;  %v5936_v14 = vpop.f32.mrf.mxu0  ;;  %v3272_v46 = vmax.f32 %v3206_v0, 0.0  ;;  %v3156_v0 = vadd.f32 %v5865_v1, %v5873_v7  ;;  %v3146_v1 = vadd.f32 %v5859_v28, %v5873_v7 }
 0x3cb   : > { %4074 = vmatprep.subr.mxu1 %v3235_v49  ;;  %v3228_v49 = vmax.f32 %v2986_v36, 0.0  ;;  %v3270_v36 = vmax.f32 %v3196_v35, 0.0  ;;  %v3136_v28 = vadd.f32 %v5851_v26, %v5873_v7 }
 0x3cc   : > { %4075 = vmatpush3.msra.mxu1 %v3219_v50  ;;  %v3212_v50 = vmax.f32 %v2906_v17, 0.0  ;;  %v4197_v47 = vpop.f32.mrf.mxu0 }
 0x3cd   : > { %4076 = vmatprep.subr.mxu1 %v3234_v51  ;;  %v2891_v51 = vadd.f32 %v5873_v7, %v5813_v48  ;;  %v3121_v48 = vadd.f32 %v5873_v7, %v5847_v24  ;;  %v3111_v24 = vadd.f32 %v5873_v7, %v5839_v62  ;;  %v3101_v62 = vadd.f32 %v5873_v7, %v5833_v10 }
 0x3ce   : > { %4077 = vmatpush3.msra.mxu1 %v3218_v40  ;;  %v3226_v40 = vmax.f32 %v2976_v4, 0.0  ;;  %v3086_v45 = vadd.f32 %v4197_v47, %v5873_v7  ;;  %v3258_v35 = vmax.f32 %v3136_v28, 0.0 }
 0x3cf   : > { %4078 = vmatprep.subr.mxu1 %v3233_v63  ;;  %v3210_v63 = vmax.f32 %v2896_v58, 0.0  ;;  %v3209_v60 = vmax.f32 %v2891_v51, 0.0  ;;  %v3251_v23 = vmax.f32 %v3101_v62, 0.0  ;;  %v3266_v58 = vmax.f32 %v3176_v27, 0.0 }
 0x3d0   : > { %4079 = vmatpush3.msra.mxu1 %v3217_v16  ;;  %v3201_v16 = vadd.f32 %v5873_v7, %v3200_v9  ;;  %v3151_v9 = vadd.f32 %v5873_v7, %v5867_v5  ;;  %v3141_v5 = vadd.f32 %v5873_v7, %v5861_v30  ;;  %v3131_v30 = vadd.f32 %v5873_v7, %v5855_v41 }
 0x3d1   : > { %4080 = vmatprep.subr.mxu1 %v3232_v21  ;;  %v3291_v21 = vcombine.high %v5809_v61, %v5809_v61 }
 0x3d2   : > { %4081 = vmatpush3.msra.mxu1 %v3216_v15  ;;  %v3080_v15 = vpop.f32.mrf.mxu0  ;;  %v3271_v8 = vmax.f32 %v3201_v16, 0.0  ;;  %v3260_v16 = vmax.f32 %v3146_v1, 0.0 }
 0x3d3   : > { %4082 = vmatprep.subr.mxu1 %v3231_v53  ;;  %v3191_v53 = vadd.f32 %v5873_v7, %v3190_v34  ;;  %v3254_v34 = vmax.f32 %v3116_v19, 0.0 }
 0x3d4   : > { %4083 = vmatpush3.msra.mxu1 %v3215_v57  ;;  %v3255_v57 = vmax.f32 %v3121_v48, 0.0  ;;  %v4200_v22 = vpop.f32.mrf.mxu0  ;;  %v3259_v48 = vmax.f32 %v3141_v5, 0.0 }
 0x3d5   : > { %4084 = vmatprep.subr.mxu1 %v3230_v39  ;;  %v3106_v39 = vadd.f32 %v5831_v18, %v5873_v7  ;;  %v3269_v17 = vmax.f32 %v3191_v53, 0.0  ;;  %v3096_v43 = vadd.f32 %v4200_v22, %v5873_v7 }
 0x3d6   : > { %4085 = vmatpush3.msra.mxu1 %v3214_v37  ;;  %v3253_v37 = vmax.f32 %v3111_v24, 0.0  ;;  %v3090_v18 = vpop.f32.mrf.mxu0 }
 0x3d7   : > { %4086 = vmatprep.subr.mxu1 %v3229_v13  ;;  %v3268_v13 = vmax.f32 %v3186_v29, 0.0  ;;  %v3252_v42 = vmax.f32 %v3106_v39, 0.0  ;;  %v3250_v4 = vmax.f32 %v3096_v43, 0.0  ;;  %v3091_v10 = vadd.f32 %v5873_v7, %v3090_v18 }
 0x3d8   : > { %4087 = vmatpush3.msra.mxu1 %v3213_v31 }
 0x3d9   : > { %4088 = vmatprep.subr.mxu1 %v3228_v49  ;;  %v3166_v49 = vadd.f32 %v5869_v38, %v5873_v7  ;;  %v3076_v38 = vadd.f32 %v5926_v2, %v5873_v7  ;;  %v3066_v2 = vadd.f32 %v5906_v33, %v5873_v7  ;;  %v3056_v33 = vadd.f32 %v5888_v56, %v5873_v7 }
 0x3da   : > { %4089 = vmatpush3.msra.mxu1 %v3212_v50  ;;  %v3161_v50 = vadd.f32 %v5873_v7, %v5871_v6 }
 0x3db   : > { %4090 = vmatprep.subr.mxu1 %v3227_v32  ;;  %v3249_v32 = vmax.f32 %v3091_v10, 0.0  ;;  %v3264_v51 = vmax.f32 %v3166_v49, 0.0  ;;  %v3246_v3 = vmax.f32 %v3076_v38, 0.0  ;;  %v3242_v26 = vmax.f32 %v3056_v33, 0.0 }
 0x3dc   : > { %4091 = vmatpush3.msra.mxu1 %v3211_v12  ;;  %v3248_v12 = vmax.f32 %v3086_v45, 0.0  ;;  %v3263_v6 = vmax.f32 %v3161_v50, 0.0 }
 0x3dd   : > { %4092 = vmatprep.subr.mxu1 %v3226_v40  ;;  %v3071_v40 = vadd.f32 %v5873_v7, %v5936_v14  ;;  %v3061_v14 = vadd.f32 %v5873_v7, %v5916_v20  ;;  %v3051_v20 = vadd.f32 %v5873_v7, %v5896_v44 }
 0x3de   : > { %4093 = vmatpush3.msra.mxu1 %v3210_v63  ;;  %v3262_v63 = vmax.f32 %v3156_v0, 0.0 }
 0x3df   : > { %4094 = vmatprep.subr.mxu1 %v3225_v11  ;;  %v3261_v11 = vmax.f32 %v3151_v9, 0.0  ;;  %v3241_v56 = vmax.f32 %v3051_v20, 0.0 }
 0x3e0   : > { %4095 = vmatpush3.msra.mxu1 %v3209_v60  ;;  %v3244_v60 = vmax.f32 %v3066_v2, 0.0 }
 0x3e1   : > { %4099 = vmatprep.subr.mxu1 %v3272_v46  ;;  %3361 = vmatmul.mubr.f32.vlgmr.msra.gmra.mxu1 %v5805_v54  ;;  %v3181_v54 = vadd.f32 %v5873_v7, %v5903_v52  ;;  %v3171_v52 = vadd.f32 %v5873_v7, %v5885_v59  ;;  %v3081_v59 = vadd.f32 %v5873_v7, %v3080_v15  ;;  %v3245_v46 = vmax.f32 %v3071_v40, 0.0 }
 0x3e2   : > { %4100 = vmatpush3.msra.mxu1 %v3256_v55  ;;  %3430 = vmatprep.mubr.f32.mxu1 %v3291_v21  ;;  %v3243_v21 = vmax.f32 %v3061_v14, 0.0  ;;  %v3257_v15 = vmax.f32 %v3131_v30, 0.0 }
 0x3e3   : > { %4101 = vmatprep.subr.mxu1 %v3271_v8  ;;  %v3267_v31 = vmax.f32 %v3181_v54, 0.0  ;;  %v3265_v25 = vmax.f32 %v3171_v52, 0.0  ;;  %v3247_v47 = vmax.f32 %v3081_v59, 0.0 }
 0x3e4   : > { %4102 = vmatpush3.msra.mxu1 %v3255_v57 }
 0x3e5   : > { %4103 = vmatprep.subr.mxu1 %v3270_v36 }
 0x3e6   : > { %4104 = vmatpush3.msra.mxu1 %v3254_v34 }
 0x3e7   : > { %4105 = vmatprep.subr.mxu1 %v3269_v17 }
 0x3e8   : > { %4106 = vmatpush3.msra.mxu1 %v3253_v37 }
 0x3e9   : > { %4107 = vmatprep.subr.mxu1 %v3268_v13 }
 0x3ea   : > { %4108 = vmatpush3.msra.mxu1 %v3252_v42 }
 0x3eb   : > { %4109 = vmatprep.subr.mxu1 %v3267_v31 }
 0x3ec   : > { %4110 = vmatpush3.msra.mxu1 %v3251_v23 }
 0x3ed   : > { %4111 = vmatprep.subr.mxu1 %v3266_v58 }
 0x3ee   : > { %4112 = vmatpush3.msra.mxu1 %v3250_v4 }
 0x3ef   : > { %4113 = vmatprep.subr.mxu1 %v3265_v25 }
 0x3f0   : > { %4114 = vmatpush3.msra.mxu1 %v3249_v32 }
 0x3f1   : > { %4115 = vmatprep.subr.mxu1 %v3264_v51 }
 0x3f2   : > { %4116 = vmatpush3.msra.mxu1 %v3248_v12 }
 0x3f3   : > { %4117 = vmatprep.subr.mxu1 %v3263_v6 }
 0x3f4   : > { %4118 = vmatpush3.msra.mxu1 %v3247_v47 }
 0x3f5   : > { %4119 = vmatprep.subr.mxu1 %v3262_v63 }
 0x3f6   : > { %4120 = vmatpush3.msra.mxu1 %v3246_v3 }
 0x3f7   : > { %4121 = vmatprep.subr.mxu1 %v3261_v11 }
 0x3f8   : > { %4122 = vmatpush3.msra.mxu1 %v3245_v46 }
 0x3f9   : > { %4123 = vmatprep.subr.mxu1 %v3260_v16 }
 0x3fa   : > { %4124 = vmatpush3.msra.mxu1 %v3244_v60 }
 0x3fb   : > { %4125 = vmatprep.subr.mxu1 %v3259_v48 }
 0x3fc   : > { %4126 = vmatpush3.msra.mxu1 %v3243_v21 }
 0x3fd   : > { %4127 = vmatprep.subr.mxu1 %v3258_v35 }
 0x3fe   : > { %4128 = vmatpush3.msra.mxu1 %v3242_v26 }
 0x3ff   : > { %4129 = vmatprep.subr.mxu1 %v3257_v15 }
 0x400   : > { %4130 = vmatpush3.msra.mxu1 %v3241_v56 }
 0x401   : > { %3431 = vmatmul.mubr.f32.vlgmr.msra.gmra.mxu1 %v5809_v61 }
 0x4a1   : > { %v4096_v41 = vpop.f32.mrf.mxu1 }
 0x4a3   : > { %v4097_v19 = vpop.f32.mrf.mxu1 }
 0x4a4   : > { %v4098_v7 = vadd.f32 %v4097_v19, %v4096_v41 }
 0x4c1   : > { %v4131_v55 = vpop.f32.mrf.mxu1 }
 0x4c3   : > { %v4132_v53 = vpop.f32.mrf.mxu1 }
 0x4c4   : > { %v4133_v44 = vadd.f32 %v4132_v53, %v4131_v55 }
 0x4c6   : > { %v3433_v8 = vadd.f32 %v4133_v44, %v4098_v7 }
 0x4c8   : > { %3437 = vst.msk [vmem:[%s5102_s4] sm:$0x3] %vm3436_vm2, %v3433_v8 }
 0x4c9 PF: > { %s6113_s19 = sld [smem:[#allocation18_spill]]  ;;  %s3452_s12 = sshll.u32 %s5102_s4, 4  ;;  %s3453_s12 = int_to_ptr.vmem [resolvable:$true] %s3452_s12 }
 0x4ca   : > { %s6115_s15 = sld [smem:[#allocation26_spill]]  ;;  %s3439_s27 = scalar_lea.sflag [#allocation5], %s5091_s0 }
 0x4cb   : > { %s4702_s11 = scalar_lea.vmem %s3453_s12, 32  ;;  %s4842_s9 = smov [#allocation11]  }
 0x4cc   : > { %p4703_p5 = scmp.ne.s32.totalorder %s3453_s12, %s4702_s11  ;;  %s4706_s1 = sshll.u32 %s4842_s9, 4  ;;  %s4707_s1 = int_to_ptr.vmem [resolvable:$false] %s4706_s1 }
 0x4cd   : > { %s4708_s3 = scalar_lea.vmem %s4707_s1, 64  ;;  %p4709_p4 = scmp.lt.s32.totalorder %s3453_s12, %s4707_s1 }
 0x4ce   : > { %p4704_p0 = pnand %p4703_p5, %p5039_p10  ;;  %p4710_p2 = scmp.lt.s32.totalorder %s4708_s3, %s4702_s11 }
 0x4cf   : > { %s3835_s18 = sshll.u32 %s6113_s19, 5 }
 0x4d0   : > { %s3450_s10 = scalar_lea.hbm %s6115_s15, %s3835_s18  ;;  %p4705_p3 = pneg %p4704_p0 }
 0x4d1   : > { %p4711_p6 = por %p4710_p2, %p4709_p4 }
 0x4d3   : > { %p4712_p13 = pnand %p4711_p6, %p4705_p3 }
 0x4d5   : > { %4715 = shalt.err (!%p4712_p13)
}
 0x4d6   : > { %s4716_s6 = scalar_lea.hbm %s3450_s10, 32  ;;  %s4720_s28 = scalar_lea.hbm %s6115_s15, 96 }
 0x4d7   : > { %p4717_p12 = scmp.ne.s32.totalorder %s3450_s10, %s4716_s6  ;;  %p4721_p1 = scmp.lt.s32.totalorder %s3450_s10, %s6115_s15 }
 0x4d8   : > { %p4722_p8 = scmp.lt.s32.totalorder %s4720_s28, %s4716_s6 }
 0x4d9   : > { %p4718_p7 = pnand %p4717_p12, %p5039_p10 }
 0x4da   : > { %p4723_p5 = por %p4722_p8, %p4721_p1 }
 0x4db   : > { %p4719_p9 = pneg %p4718_p7 }
 0x4dd   : > { %p4724_p0 = pnand %p4723_p5, %p4719_p9 }
 0x4df   : > { %4727 = shalt.err (!%p4724_p0)
}
 0x4e0   : > { %4251 = dma.vmem_to_hbm [thread:$0]  (%p5039_p10), %s3453_s12, 32, %s3450_s10, %s3439_s27  }
 0x4e1 PF: > { %s6116_s18 = sld [smem:[#allocation16_spill]]  ;;  %p4276_p3 = scmp.ge.s32.totalorder %s4830_s7, 2 }
 0x4e3   : > { %p4268_p4 = pnand %p4276_p3, %p5043_p11 }
 0x4e5   : > { %p4269_p2 = pneg %p4268_p4 }
 0x4e7   : > { %s3464_s16 = sand.u32 1, %s6116_s18  }
 0x4e8   : > { %s3465_s21 = scalar_lea.sflag [#allocation5], %s3464_s16 }
 0x4e9   : > { %4785 = dma.done.wait (%p4269_p2), %s3465_s21, 32  }
 0x4ea   : > { %4787 = vsyncadd (%p4269_p2), %s3465_s21, 4294967264  ;;  %s26_s7 = sadd.s32 1, %s4830_s7   ;;  %s6117_s13 = sld [smem:[#allocation19_spill]] }
 0x4eb   : > { %p23_p6 = scmp.ge.s32.totalorder %s26_s7, 11   ;;  %s6118_s21 = smov %s4794_s22 }
 0x4ec   : > { %s6119_s22 = smov %s4798_s23  ;;  %s6120_s23 = smov %s5054_s17 }
 0x4ed   : > { %s6121_s24 = smov %s4806_s25  ;;  %s6122_s25 = smov %s4810_s26 }
 0x4ee   : > { %s6123_s26 = smov %s5059_s2  ;;  %s6124_s27 = smov %s4822_s29 }
 0x4ef   : > { %s6125_s28 = smov %s4826_s30  ;;  %s6126_s29 = smov %s6129_s14 }
 0x4f0   : > { %s6127_s30 = smov %s6117_s13  ;;  %25 = sbr.rel (!%p23_p6) target bundleno = 19 (0x13), region = 120 }
 0x4f5   :  { %3470 = vsyncpa [#allocation4], 1 }
 0x4f6   :  { %3472 = vsyncpa [#allocation4 + $0x1], 1 }
 0x4f7   :  { %3473 = vsyncpa [#allocation7], 1 }
 0x4f8   :  { %3474 = vsyncpa [#allocation10], 1 }
 0x4f9   :  { %3476 = vsyncpa [#allocation10 + $0x1], 1 }
 0x4fa   :  { %3477 = vsyncpa [#allocation5], 1 }
 0x4fb   :  { %3479 = vsyncpa [#allocation5 + $0x1], 1 }

</bundles_post_ra>
